<compile_context>
chip_gen: v7x
topology: tpu7x:2x2x1
jax: 0.10.0
libtpu: 0.0.40
codegen_flags: <defaults>
</compile_context>

<pallas_src>
import functools

import jax
import jax.numpy as jnp
from jax import lax
from jax.experimental import pallas as pl
from jax.experimental.pallas import tpu as pltpu


def attn_kernel(x_ref, wqkv_ref, wo_ref, bias_ref, o_ref, *, head, dh, dp):
    """Full multi-head attention for one batch element (channels-first).

    x_ref   : (1, C, N)      bf16 input; channels on sublanes, spatial on lanes
    wqkv_ref: (3*head*dp, C) bf16 fused qkv weight (q rows pre-scaled, dh->dp zero pad)
    wo_ref  : (C, head*dp)   bf16 output 1x1-conv weight (padded columns are zero)
    bias_ref: (C, 1)         f32 output conv bias (broadcasts along N)
    o_ref   : (1, C, N)      f32 output slab
    """
    Cp = head * dp
    N = x_ref.shape[-1]
    x = x_ref[0]                                                      # (C, N) bf16

    # Fused QKV projection: one bf16 MXU matmul with f32 accumulation, then a
    # single bulk cast to bf16 for all downstream MXU consumers.
    qkv = jnp.dot(wqkv_ref[...], x, preferred_element_type=jnp.float32)   # (3Cp, N)
    qkv_b = qkv.astype(jnp.bfloat16)

    # (dp, N) constant with a single row of ones at sublane `dh` (a zero-padded
    # row of v).  Adding it to v folds the softmax denominator into the pv
    # matmul: row `dh` of (v_aug @ p) is sum_j p[j, :].
    ones_row = (lax.broadcasted_iota(jnp.int32, (dp, N), 0) == dh
                ).astype(jnp.bfloat16)

    outs = []
    for h in range(head):                                             # unrolled (head=4)
        qT = qkv_b[h * dp:(h + 1) * dp]                               # (dp, N), scale folded
        kT = qkv_b[Cp + h * dp:Cp + (h + 1) * dp]                     # (dp, N)
        vT = qkv_b[2 * Cp + h * dp:2 * Cp + (h + 1) * dp]             # (dp, N)

        # sim^T[j, i] = sum_d k[d, j] q[d, i]: contract dim 0 of both operands,
        # no explicit transpose / no lane-sparse (N, dp) intermediate.
        simT = lax.dot_general(kT, qT, (((0,), (0,)), ((), ())),
                               preferred_element_type=jnp.float32)    # (N_k, N_q) f32

        # Numerically-stable softmax over the key axis (axis 0 here); exp in
        # bf16 (bf16 EUP on v6e/v7x; keep f32 on v5e); normalization deferred
        # until after p @ v.
        simT = simT - jnp.max(simT, axis=0, keepdims=True)
        p = jnp.exp(simT.astype(jnp.bfloat16))                        # (N_k, N_q) bf16

        # pv rows 0..dh-1 = unnormalized attention output, row dh = softmax
        # denominator (from the ones row), rows dh+1.. = 0.
        v_aug = vT + ones_row                                         # (dp, N) bf16
        pv = jnp.dot(v_aug, p, preferred_element_type=jnp.float32)    # (dp, N_q) f32

        denom = pv[dh:dh + 1]                                         # (1, N_q)
        outs.append(pv * pl.reciprocal(denom, approx=False))          # (dp, N_q) f32

    # Single fused output projection over all heads (K = head*dp = 32); the
    # padded rows (the "1" row and zero rows) meet zero wo columns and vanish.
    out_all = jnp.concatenate(outs, axis=0).astype(jnp.bfloat16)      # (Cp, N)
    o = jnp.dot(wo_ref[...], out_all, preferred_element_type=jnp.float32)  # (C, N)

    # TODO(synk): nn.Dropout on the attention matrix is identity in eval mode;
    # training-mode stochastic dropout is not implemented here.

    o_ref[0] = o + bias_ref[...]                                      # bias (C,1)->(C,N)


def attention_forward(x_nchw, w_qkv, w_out, b_out, head):
    """x_nchw: (B, C, H, W) float32; returns (B, C, H, W) float32."""
    b, C, H, W = x_nchw.shape
    N = H * W
    dh = C // head
    dp = ((dh + 7) // 8) * 8            # pad head dim to the sublane tile (4 -> 8)
    scale = float(dh) ** (-0.5)

    # Channels-first flatten (pure reshape); bf16 input halves DMA bytes and
    # feeds the MXU its native dtype.
    x_flat = x_nchw.reshape(b, C, N).astype(jnp.bfloat16)

    # Fused qkv weight: fold 1/sqrt(dh) into the q rows and zero-pad each
    # head's dh rows to dp so in-kernel per-head slices are tile-aligned.
    def pad_heads_rows(w):                       # (head*dh, C) -> (head*dp, C)
        w = w.reshape(head, dh, C)
        w = jnp.pad(w, ((0, 0), (0, dp - dh), (0, 0)))
        return w.reshape(head * dp, C)

    wq, wk, wv = w_qkv[:C] * scale, w_qkv[C:2 * C], w_qkv[2 * C:]
    wqkv_pad = jnp.concatenate(
        [pad_heads_rows(wq), pad_heads_rows(wk), pad_heads_rows(wv)],
        axis=0).astype(jnp.bfloat16)             # (3*head*dp, C)

    # Output 1x1-conv weight with matching zero-padded per-head columns.
    wo_pad = jnp.pad(w_out.reshape(C, head, dh),
                     ((0, 0), (0, 0), (0, dp - dh))
                     ).reshape(C, head * dp).astype(jnp.bfloat16)     # (C, head*dp)
    bias = b_out.reshape(C, 1).astype(jnp.float32)

    # NOTE: for larger batches in real use, block several batch elements per
    # grid step (block_shape (Bblk, C, N)) to amortize per-step overhead.
    out_flat = pl.pallas_call(
        functools.partial(attn_kernel, head=head, dh=dh, dp=dp),
        out_shape=jax.ShapeDtypeStruct((b, C, N), jnp.float32),
        grid_spec=pltpu.PrefetchScalarGridSpec(
            num_scalar_prefetch=0,
            grid=(b,),
            in_specs=[
                pl.BlockSpec((1, C, N), lambda bi: (bi, 0, 0)),
                pl.BlockSpec((3 * head * dp, C), lambda bi: (0, 0)),
                pl.BlockSpec((C, head * dp), lambda bi: (0, 0)),
                pl.BlockSpec((C, 1), lambda bi: (0, 0)),
            ],
            out_specs=pl.BlockSpec((1, C, N), lambda bi: (bi, 0, 0)),
        ),
        compiler_params=pltpu.CompilerParams(
            dimension_semantics=("parallel",)),
    )(x_flat, wqkv_pad, wo_pad, bias)

    # (B, C, N) -> (B, C, H, W). Pure reshape.
    return out_flat.reshape(b, C, H, W)


def attention_reference(x, w_qkv, w_out, b_out, head):
    """Pure-JAX reference mirroring the PyTorch forward (eval mode), f32."""
    b, C, H, W = x.shape
    dh = C // head
    qkv = jnp.einsum('oc,bchw->bohw', w_qkv, x)
    q, k, v = jnp.split(qkv, 3, axis=1)
    rearr = lambda t: t.reshape(b, head, dh, H * W)
    q, k, v = rearr(q), rearr(k), rearr(v)
    q = q * (float(dh) ** (-0.5))
    sim = jnp.einsum('bhdi,bhdj->bhij', q, k)
    sim = sim - jnp.max(sim, axis=-1, keepdims=True)
    attn = jax.nn.softmax(sim, axis=-1)
    out = jnp.einsum('bhij,bhdj->bhid', attn, v)          # (b, h, N, dh)
    out = out.transpose(0, 1, 3, 2).reshape(b, head * dh, H, W)
    return jnp.einsum('oc,bchw->bohw', w_out, out) + b_out[None, :, None, None]


if __name__ == "__main__":
    # Module config: resolution=16 -> head=4, dim_head = channel/4.
    B, C, H, W = 2, 16, 16, 16
    head = 4
    hidden = C  # head * dim_head

    key = jax.random.PRNGKey(0)
    kx, kq, ko, kb = jax.random.split(key, 4)
    x = jax.random.normal(kx, (B, C, H, W), dtype=jnp.float32)
    # 1x1 conv weights, squeezed: to_qkv (3*hidden, C), to_out (C, hidden) + bias (C,)
    w_qkv = 0.1 * jax.random.normal(kq, (3 * hidden, C), dtype=jnp.float32)
    w_out = 0.1 * jax.random.normal(ko, (C, hidden), dtype=jnp.float32)
    b_out = 0.1 * jax.random.normal(kb, (C,), dtype=jnp.float32)

    out = attention_forward(x, w_qkv, w_out, b_out, head)
    out = jax.block_until_ready(out)

    ref = attention_reference(x, w_qkv, w_out, b_out, head)
    assert out.shape == (B, C, H, W)
    # bf16 MXU operands + bf16 softmax exp -> tolerance loosened vs f32 reference.
    assert jnp.allclose(out, ref, atol=1e-2, rtol=1e-2), "mismatch vs reference"

    print("KERNEL_OK")
</pallas_src>

<mosaic_0001>
module attributes {stable_mosaic.version = 11 : i64} {
  func.func @attn_kernel(%arg0: i32, %arg1: memref<1x16x256xbf16, #tpu.memory_space<vmem>>, %arg2: memref<96x16xbf16, #tpu.memory_space<vmem>>, %arg3: memref<16x32xbf16, #tpu.memory_space<vmem>>, %arg4: memref<16x1xf32, #tpu.memory_space<vmem>>, %arg5: memref<1x16x256xf32, #tpu.memory_space<vmem>>) attributes {dimension_semantics = [#tpu.dimension_semantics<parallel>], iteration_bounds = array<i64: 2>, scalar_prefetch = 0 : i64, scratch_operands = 0 : i64, tpu.core_type = #tpu.core_type<tc>, window_params = [{transform_indices = @transform_0, window_bounds = array<i64: 1, 16, 256>}, {pipeline_mode = #tpu.pipeline_mode<synchronous>, transform_indices = @transform_1, window_bounds = array<i64: 96, 16>}, {pipeline_mode = #tpu.pipeline_mode<synchronous>, transform_indices = @transform_2, window_bounds = array<i64: 16, 32>}, {pipeline_mode = #tpu.pipeline_mode<synchronous>, transform_indices = @transform_3, window_bounds = array<i64: 16, 1>}, {transform_indices = @transform_4, window_bounds = array<i64: 1, 16, 256>}]} {
    %c0 = arith.constant 0 : index
    %c0_0 = arith.constant 0 : index
    %c0_1 = arith.constant 0 : index
    %0 = vector.load %arg1[%c0, %c0_0, %c0_1] : memref<1x16x256xbf16, #tpu.memory_space<vmem>>, vector<1x16x256xbf16>
    %1 = vector.shape_cast %0 : vector<1x16x256xbf16> to vector<16x256xbf16>
    %c0_2 = arith.constant 0 : index
    %c0_3 = arith.constant 0 : index
    %2 = vector.load %arg2[%c0_2, %c0_3] : memref<96x16xbf16, #tpu.memory_space<vmem>>, vector<96x16xbf16>
    %cst = arith.constant dense<0.000000e+00> : vector<96x256xf32>
    %3 = tpu.matmul %2, %1, %cst {dimension_numbers = #tpu.dot_dimension_numbers<[1], [0], [0], [1], [0, 0, 1, 1], [], []>} : vector<96x16xbf16>, vector<16x256xbf16>, vector<96x256xf32> -> vector<96x256xf32>
    %4 = arith.truncf %3 : vector<96x256xf32> to vector<96x256xbf16>
    %5 = tpu.iota {dimensions = array<i32: 0>} : vector<8x256xi32>
    %c4_i32 = arith.constant 4 : i32
    %6 = vector.broadcast %c4_i32 : i32 to vector<8x256xi32>
    %7 = arith.cmpi eq, %5, %6 : vector<8x256xi32>
    %8 = arith.extui %7 : vector<8x256xi1> to vector<8x256xi32>
    %9 = arith.sitofp %8 : vector<8x256xi32> to vector<8x256xf32>
    %10 = arith.truncf %9 : vector<8x256xf32> to vector<8x256xbf16>
    %11 = vector.extract_strided_slice %4 {offsets = [0, 0], sizes = [8, 256], strides = [1, 1]} : vector<96x256xbf16> to vector<8x256xbf16>
    %12 = vector.extract_strided_slice %4 {offsets = [32, 0], sizes = [8, 256], strides = [1, 1]} : vector<96x256xbf16> to vector<8x256xbf16>
    %13 = vector.extract_strided_slice %4 {offsets = [64, 0], sizes = [8, 256], strides = [1, 1]} : vector<96x256xbf16> to vector<8x256xbf16>
    %cst_4 = arith.constant dense<0.000000e+00> : vector<256x256xf32>
    %14 = tpu.matmul %12, %11, %cst_4 {dimension_numbers = #tpu.dot_dimension_numbers<[0], [0], [1], [1], [0, 1, 1, 1], [], []>} : vector<8x256xbf16>, vector<8x256xbf16>, vector<256x256xf32> -> vector<256x256xf32>
    %cst_5 = arith.constant dense<0xFF800000> : vector<256xf32>
    %15 = vector.multi_reduction <maximumf>, %14, %cst_5 [0] : vector<256x256xf32> to vector<256xf32>
    %16 = vector.shape_cast %15 : vector<256xf32> to vector<1x256xf32>
    %17 = vector.broadcast %16 : vector<1x256xf32> to vector<256x256xf32>
    %18 = arith.subf %14, %17 : vector<256x256xf32>
    %19 = arith.truncf %18 : vector<256x256xf32> to vector<256x256xbf16>
    %20 = math.exp %19 : vector<256x256xbf16>
    %21 = arith.addf %13, %10 : vector<8x256xbf16>
    %cst_6 = arith.constant dense<0.000000e+00> : vector<8x256xf32>
    %22 = tpu.matmul %21, %20, %cst_6 {dimension_numbers = #tpu.dot_dimension_numbers<[1], [0], [0], [1], [0, 0, 1, 1], [], []>} : vector<8x256xbf16>, vector<256x256xbf16>, vector<8x256xf32> -> vector<8x256xf32>
    %23 = vector.extract_strided_slice %22 {offsets = [4, 0], sizes = [1, 256], strides = [1, 1]} : vector<8x256xf32> to vector<1x256xf32>
    %24 = tpu.reciprocal %23 : vector<1x256xf32> -> vector<1x256xf32>
    %25 = vector.broadcast %24 : vector<1x256xf32> to vector<8x256xf32>
    %26 = arith.mulf %22, %25 : vector<8x256xf32>
    %27 = vector.extract_strided_slice %4 {offsets = [8, 0], sizes = [8, 256], strides = [1, 1]} : vector<96x256xbf16> to vector<8x256xbf16>
    %28 = vector.extract_strided_slice %4 {offsets = [40, 0], sizes = [8, 256], strides = [1, 1]} : vector<96x256xbf16> to vector<8x256xbf16>
    %29 = vector.extract_strided_slice %4 {offsets = [72, 0], sizes = [8, 256], strides = [1, 1]} : vector<96x256xbf16> to vector<8x256xbf16>
    %cst_7 = arith.constant dense<0.000000e+00> : vector<256x256xf32>
    %30 = tpu.matmul %28, %27, %cst_7 {dimension_numbers = #tpu.dot_dimension_numbers<[0], [0], [1], [1], [0, 1, 1, 1], [], []>} : vector<8x256xbf16>, vector<8x256xbf16>, vector<256x256xf32> -> vector<256x256xf32>
    %cst_8 = arith.constant dense<0xFF800000> : vector<256xf32>
    %31 = vector.multi_reduction <maximumf>, %30, %cst_8 [0] : vector<256x256xf32> to vector<256xf32>
    %32 = vector.shape_cast %31 : vector<256xf32> to vector<1x256xf32>
    %33 = vector.broadcast %32 : vector<1x256xf32> to vector<256x256xf32>
    %34 = arith.subf %30, %33 : vector<256x256xf32>
    %35 = arith.truncf %34 : vector<256x256xf32> to vector<256x256xbf16>
    %36 = math.exp %35 : vector<256x256xbf16>
    %37 = arith.addf %29, %10 : vector<8x256xbf16>
    %cst_9 = arith.constant dense<0.000000e+00> : vector<8x256xf32>
    %38 = tpu.matmul %37, %36, %cst_9 {dimension_numbers = #tpu.dot_dimension_numbers<[1], [0], [0], [1], [0, 0, 1, 1], [], []>} : vector<8x256xbf16>, vector<256x256xbf16>, vector<8x256xf32> -> vector<8x256xf32>
    %39 = vector.extract_strided_slice %38 {offsets = [4, 0], sizes = [1, 256], strides = [1, 1]} : vector<8x256xf32> to vector<1x256xf32>
    %40 = tpu.reciprocal %39 : vector<1x256xf32> -> vector<1x256xf32>
    %41 = vector.broadcast %40 : vector<1x256xf32> to vector<8x256xf32>
    %42 = arith.mulf %38, %41 : vector<8x256xf32>
    %43 = vector.extract_strided_slice %4 {offsets = [16, 0], sizes = [8, 256], strides = [1, 1]} : vector<96x256xbf16> to vector<8x256xbf16>
    %44 = vector.extract_strided_slice %4 {offsets = [48, 0], sizes = [8, 256], strides = [1, 1]} : vector<96x256xbf16> to vector<8x256xbf16>
    %45 = vector.extract_strided_slice %4 {offsets = [80, 0], sizes = [8, 256], strides = [1, 1]} : vector<96x256xbf16> to vector<8x256xbf16>
    %cst_10 = arith.constant dense<0.000000e+00> : vector<256x256xf32>
    %46 = tpu.matmul %44, %43, %cst_10 {dimension_numbers = #tpu.dot_dimension_numbers<[0], [0], [1], [1], [0, 1, 1, 1], [], []>} : vector<8x256xbf16>, vector<8x256xbf16>, vector<256x256xf32> -> vector<256x256xf32>
    %cst_11 = arith.constant dense<0xFF800000> : vector<256xf32>
    %47 = vector.multi_reduction <maximumf>, %46, %cst_11 [0] : vector<256x256xf32> to vector<256xf32>
    %48 = vector.shape_cast %47 : vector<256xf32> to vector<1x256xf32>
    %49 = vector.broadcast %48 : vector<1x256xf32> to vector<256x256xf32>
    %50 = arith.subf %46, %49 : vector<256x256xf32>
    %51 = arith.truncf %50 : vector<256x256xf32> to vector<256x256xbf16>
    %52 = math.exp %51 : vector<256x256xbf16>
    %53 = arith.addf %45, %10 : vector<8x256xbf16>
    %cst_12 = arith.constant dense<0.000000e+00> : vector<8x256xf32>
    %54 = tpu.matmul %53, %52, %cst_12 {dimension_numbers = #tpu.dot_dimension_numbers<[1], [0], [0], [1], [0, 0, 1, 1], [], []>} : vector<8x256xbf16>, vector<256x256xbf16>, vector<8x256xf32> -> vector<8x256xf32>
    %55 = vector.extract_strided_slice %54 {offsets = [4, 0], sizes = [1, 256], strides = [1, 1]} : vector<8x256xf32> to vector<1x256xf32>
    %56 = tpu.reciprocal %55 : vector<1x256xf32> -> vector<1x256xf32>
    %57 = vector.broadcast %56 : vector<1x256xf32> to vector<8x256xf32>
    %58 = arith.mulf %54, %57 : vector<8x256xf32>
    %59 = vector.extract_strided_slice %4 {offsets = [24, 0], sizes = [8, 256], strides = [1, 1]} : vector<96x256xbf16> to vector<8x256xbf16>
    %60 = vector.extract_strided_slice %4 {offsets = [56, 0], sizes = [8, 256], strides = [1, 1]} : vector<96x256xbf16> to vector<8x256xbf16>
    %61 = vector.extract_strided_slice %4 {offsets = [88, 0], sizes = [8, 256], strides = [1, 1]} : vector<96x256xbf16> to vector<8x256xbf16>
    %cst_13 = arith.constant dense<0.000000e+00> : vector<256x256xf32>
    %62 = tpu.matmul %60, %59, %cst_13 {dimension_numbers = #tpu.dot_dimension_numbers<[0], [0], [1], [1], [0, 1, 1, 1], [], []>} : vector<8x256xbf16>, vector<8x256xbf16>, vector<256x256xf32> -> vector<256x256xf32>
    %cst_14 = arith.constant dense<0xFF800000> : vector<256xf32>
    %63 = vector.multi_reduction <maximumf>, %62, %cst_14 [0] : vector<256x256xf32> to vector<256xf32>
    %64 = vector.shape_cast %63 : vector<256xf32> to vector<1x256xf32>
    %65 = vector.broadcast %64 : vector<1x256xf32> to vector<256x256xf32>
    %66 = arith.subf %62, %65 : vector<256x256xf32>
    %67 = arith.truncf %66 : vector<256x256xf32> to vector<256x256xbf16>
    %68 = math.exp %67 : vector<256x256xbf16>
    %69 = arith.addf %61, %10 : vector<8x256xbf16>
    %cst_15 = arith.constant dense<0.000000e+00> : vector<8x256xf32>
    %70 = tpu.matmul %69, %68, %cst_15 {dimension_numbers = #tpu.dot_dimension_numbers<[1], [0], [0], [1], [0, 0, 1, 1], [], []>} : vector<8x256xbf16>, vector<256x256xbf16>, vector<8x256xf32> -> vector<8x256xf32>
    %71 = vector.extract_strided_slice %70 {offsets = [4, 0], sizes = [1, 256], strides = [1, 1]} : vector<8x256xf32> to vector<1x256xf32>
    %72 = tpu.reciprocal %71 : vector<1x256xf32> -> vector<1x256xf32>
    %73 = vector.broadcast %72 : vector<1x256xf32> to vector<8x256xf32>
    %74 = arith.mulf %70, %73 : vector<8x256xf32>
    %75 = tpu.concatenate %26, %42, %58, %74 in 0 : vector<8x256xf32>, vector<8x256xf32>, vector<8x256xf32>, vector<8x256xf32> -> vector<32x256xf32>
    %76 = arith.truncf %75 : vector<32x256xf32> to vector<32x256xbf16>
    %c0_16 = arith.constant 0 : index
    %c0_17 = arith.constant 0 : index
    %77 = vector.load %arg3[%c0_16, %c0_17] : memref<16x32xbf16, #tpu.memory_space<vmem>>, vector<16x32xbf16>
    %cst_18 = arith.constant dense<0.000000e+00> : vector<16x256xf32>
    %78 = tpu.matmul %77, %76, %cst_18 {dimension_numbers = #tpu.dot_dimension_numbers<[1], [0], [0], [1], [0, 0, 1, 1], [], []>} : vector<16x32xbf16>, vector<32x256xbf16>, vector<16x256xf32> -> vector<16x256xf32>
    %c0_19 = arith.constant 0 : index
    %c0_20 = arith.constant 0 : index
    %79 = vector.load %arg4[%c0_19, %c0_20] : memref<16x1xf32, #tpu.memory_space<vmem>>, vector<16x1xf32>
    %80 = vector.broadcast %79 : vector<16x1xf32> to vector<16x256xf32>
    %81 = arith.addf %78, %80 : vector<16x256xf32>
    %c0_21 = arith.constant 0 : index
    %c0_22 = arith.constant 0 : index
    %c0_23 = arith.constant 0 : index
    %82 = vector.load %arg5[%c0_21, %c0_22, %c0_23] : memref<1x16x256xf32, #tpu.memory_space<vmem>>, vector<1x16x256xf32>
    %83 = vector.shape_cast %82 : vector<1x16x256xf32> to vector<16x256xf32>
    %84 = vector.shape_cast %81 : vector<16x256xf32> to vector<1x16x256xf32>
    tpu.vector_store %arg5[%c0_21, %c0_22, %c0_23], %84 {strides = array<i32>} : memref<1x16x256xf32, #tpu.memory_space<vmem>>, vector<1x16x256xf32>,
    return
  }
  func.func @transform_0(%arg0: i32) -> (i32, i32, i32) {
    %c0_i32 = arith.constant 0 : i32
    %c0_i32_0 = arith.constant 0 : i32
    %c0_i32_1 = arith.constant 0 : i32
    return %arg0, %c0_i32, %c0_i32_0 : i32, i32, i32
  }
  func.func @transform_1(%arg0: i32) -> (i32, i32) {
    %c0_i32 = arith.constant 0 : i32
    %c0_i32_0 = arith.constant 0 : i32
    %c0_i32_1 = arith.constant 0 : i32
    return %c0_i32, %c0_i32_0 : i32, i32
  }
  func.func @transform_2(%arg0: i32) -> (i32, i32) {
    %c0_i32 = arith.constant 0 : i32
    %c0_i32_0 = arith.constant 0 : i32
    %c0_i32_1 = arith.constant 0 : i32
    return %c0_i32, %c0_i32_0 : i32, i32
  }
  func.func @transform_3(%arg0: i32) -> (i32, i32) {
    %c0_i32 = arith.constant 0 : i32
    %c0_i32_0 = arith.constant 0 : i32
    %c0_i32_1 = arith.constant 0 : i32
    return %c0_i32, %c0_i32_0 : i32, i32
  }
  func.func @transform_4(%arg0: i32) -> (i32, i32, i32) {
    %c0_i32 = arith.constant 0 : i32
    %c0_i32_0 = arith.constant 0 : i32
    %c0_i32_1 = arith.constant 0 : i32
    return %arg0, %c0_i32, %c0_i32_0 : i32, i32, i32
  }
}

</mosaic_0001>

<bundles_post_ra>
// kernel: tpu_custom_call.1
= control target key start
LH: loop header
LB: loop body
LE: loop exit
PB: predicated region body
PF: predicated region fallthrough
CT: control target
= control target key end

     0   :  { %9 = vsyncpa [#allocation3], 0  ;;  %s5388_s0 = inlined_call_operand.vmem [shape: bf16[2,16,256], index: 0, kind: input, shape index: {}]   ;;  %s5389_s1 = inlined_call_operand.vmem [shape: bf16[96,16], index: 1, kind: input, shape index: {}]   ;;  %s5390_s2 = inlined_call_operand.vmem [shape: bf16[16,32], index: 2, kind: input, shape index: {}]   ;;  %s5391_s3 = inlined_call_operand.vmem [shape: f32[16,1], index: 3, kind: input, shape index: {}]   ;;  %s5392_s4 = inlined_call_operand.hbm [shape: f32[2,16,256], index: 4, kind: output, shape index: {}]  }
   0x1   :  { %11 = vsyncpa [#allocation3 + $0x1], 0  ;;  %s3488_s15 = smov 0   ;;  %s3490_s16 = smov 0  }
   0x2   :  { %s3492_s17 = smov 0   ;;  %s3494_s18 = smov 0  }
   0x3 LB: > { %s3509_s19 = sadd.s32 4294967295, %s3456_s18   ;;  %s2968_s20 = sadd.s32 4294967294, %s3456_s18   ;;  %s3456_s18 = sphi %s3494_s18, %s5835_s18   ;;  %s3452_s17 = sphi %s3492_s17, %s5834_s17   ;;  %s3448_s16 = sphi %s3490_s16, %s5833_s16   ;;  %s3444_s15 = sphi %s3488_s15, %s5832_s15  }
   0x4   : > { %s3513_s21 = sadd.s32 1, %s3456_s18   ;;  %s113_s22 = sadd.s32 1, %s3452_s17 }
   0x5   : > { %s110_s23 = ssub.s32 %s3456_s18, %s3513_s21  ;;  %p123_p0 = scmp.ne.s32.totalorder %s3452_s17, %s3448_s16 }
   0x6   : > { %p111_p1 = scmp.eq.s32.totalorder %s110_s23, 0  ;;  %p124_p2 = scmp.eq.s32.totalorder %s3509_s19, 1 }
   0x7   : > { %p129_p3 = scmp.ne.s32.totalorder %s3448_s16, %s3444_s15  ;;  %p130_p4 = scmp.eq.s32.totalorder %s2968_s20, 1 }
   0x8   : > { %s3524_s24 = scalar_select %p111_p1, %s3452_s17, %s113_s22  }
   0x9   : > { %p3526_p5 = por %p124_p2, %p123_p0  ;;  %p3530_p6 = por %p130_p4, %p129_p3 }
   0xa   : > { %p2971_p7 = scmp.ge.s32.totalorder %s3456_s18, 1  ;;  %p165_p8 = scmp.lt.s32.totalorder %s3456_s18, 3 }
   0xc   : > { %p166_p9 = pnand %p2971_p7, %p165_p8 }
   0xe   : > { %169 = sbr.rel (%p166_p9) target bundleno = 2667 (0xa6b), region = 36 }
  0x15   : > { %p191_p10 = scmp.lt.s32.totalorder %s3509_s19, 1  ;;  %v5393_v0 = vmov 0   ;;  %v3115_v3 = vld [vmem:[%s5389_s1] sm:$0xff]   ;;  %vm251_vm0 = vcmask 130048   ;;  %v3116_v4 = vld [vmem:[%s5389_s1 + $0x8] sm:$0xff]   ;;  %v3117_v5 = vld [vmem:[%s5389_s1 + $0x10] sm:$0xff]   ;;  %v375_v31 = vlaneseq }
  0x16   : > { %302 = vmatprep.mubr.bf16.mxu1 %v5393_v0  ;;  %v3118_v6 = vld [vmem:[%s5389_s1 + $0x18] sm:$0xff]   ;;  %v3119_v7 = vld [vmem:[%s5389_s1 + $0x20] sm:$0xff]   ;;  %v3120_v8 = vld [vmem:[%s5389_s1 + $0x28] sm:$0xff]   ;;  %vm462_vm1 = vcmask 1043456   ;;  %vm413_vm2 = vcmask 64512   ;;  %v3459_v38 = vmov 0.0  }
  0x17   : > { %s192_s27 = scalar_select %p191_p10, %s3509_s19, 1  ;;  %v3587_v33 = vshrl.u32 %v375_v31, 7  ;;  %vm2841_vm4 = vcmask 261120  }
  0x18   : > { %s188_s7 = sand.u32 1, %s3448_s16   ;;  %s3066_s11 = sshll.u32 %s3509_s19, 9 }
  0x19   : > { %s3065_s28 = sshll.u32 %s192_s27, 4  ;;  %5535 = vst [vmem:[#allocation9_spill] sm:$0xff] %v3587_v33  ;;  %vm377_vm3 = vcmp.eq.s32.totalorder %v3587_v33, 4  ;;  %s2972_s8 = sshll.u32 %s188_s7, 5 }
  0x1a   : > { %s195_s5 = scalar_lea.vmem %s5388_s0, %s3065_s28  ;;  %v2989_v39 = vsel %vm377_vm3, 1.0, %v3459_v38  ;;  %s190_s9 = scalar_lea.vmem [#allocation2], %s2972_s8 }
  0x1b   : > { %v3112_v1 = vld [vmem:[%s195_s5 + $0x4] ss:$8 sps:$4 sm:$0xff]   ;;  %v3114_v2 = vld [vmem:[%s195_s5] ss:$8 sps:$4 sm:$0xff]   ;;  %v3593_v43 = vpack.c.bf16 %v2989_v39, %v2989_v39  ;;  %s2906_s10 = sshll.u32 %s190_s9, 4  ;;  %s5345_s14 = scalar_lea.hbm %s5392_s4, %s3066_s11  ;;  %s5340_s10 = int_to_ptr.vmem [resolvable:$true] %s2906_s10 }
  0x1c   : > { %270 = vmatprep.subr.bf16.mxu1 %v3112_v1  ;;  %s5347_s19 = scalar_lea.sflag [#allocation3], %s188_s7  ;;  %s3394_s20 = scalar_lea.vmem %s5340_s10, 512 }
  0x1d   : > { %271 = vmatpush1.bf16.msra.mxu1 %v3114_v2  ;;  %5536 = vst [vmem:[#allocation10_spill] sm:$0xff] %v3593_v43  ;;  %v3596_v47 = vrot.slane %v3593_v43, 4  ;;  %p3395_p11 = scmp.ne.s32.totalorder %s5340_s10, %s3394_s20  ;;  %s3460_s22 = smov [#allocation2]  }
  0x1e   : > { %s3398_s23 = sshll.u32 %s3460_s22, 4  ;;  %s3399_s23 = int_to_ptr.vmem [resolvable:$false] %s3398_s23 }
  0x1f   : > { %5537 = vst [vmem:[#allocation11_spill] sm:$0xff] %v3596_v47  ;;  %p3396_p12 = pnand %p3395_p11, %p3526_p5  ;;  %s3400_s27 = scalar_lea.vmem %s3399_s23, 1024 }
  0x20   : > { %2983 = vmatmul.mubr.msk.bf16.vlgmr.msra.gmra.mrb[0].mxu1 %vm251_vm0, %v3115_v3  ;;  %p3401_p0 = scmp.lt.s32.totalorder %s5340_s10, %s3399_s23  ;;  %p3402_p1 = scmp.lt.s32.totalorder %s3400_s27, %s3394_s20 }
  0x21   : > { %312 = vmatprep.mubr.bf16.mxu1 %v5393_v0  ;;  %p3397_p13 = pneg %p3396_p12 }
  0x22   : > { %p3403_p2 = por %p3402_p1, %p3401_p0 }
  0x24   : > { %p3404_p3 = pnand %p3403_p2, %p3397_p13 }
  0x28   : > { %2984 = vmatmul.mubr.msk.bf16.gmra.mrb[4].mxu1 %vm251_vm0, %v3116_v4 }
  0x29   : > { %322 = vmatprep.mubr.bf16.mxu1 %v5393_v0 }
  0x30   : > { %2985 = vmatmul.mubr.msk.bf16.gmra.mrb[8].mxu1 %vm251_vm0, %v3117_v5 }
  0x31   : > { %332 = vmatprep.mubr.bf16.mxu1 %v5393_v0 }
  0x38   : > { %2986 = vmatmul.mubr.msk.bf16.gmra.mrb[12].mxu1 %vm251_vm0, %v3118_v6 }
  0x39   : > { %342 = vmatprep.mubr.bf16.mxu1 %v5393_v0 }
  0x40   : > { %2987 = vmatmul.mubr.msk.bf16.gmra.mrb[16].mxu1 %vm251_vm0, %v3119_v7 }
  0x41   : > { %352 = vmatprep.mubr.bf16.mxu1 %v5393_v0 }
  0x48   : > { %2988 = vmatmul.mubr.msk.bf16.gmra.mrb[20].mxu1 %vm251_vm0, %v3120_v8 }
  0x49   : > { %501 = vmatprep.mubr.bf16.mxu1 %v5393_v0 }
  0xf3   : > { %v304_v9 = vpop.f32.mrb[0].mxu1 }
  0xf4   : > { %v306_v10 = vpop.f32.mrb[1].mxu1 }
  0xf5   : > { %v308_v11 = vpop.f32.mrb[2].mxu1 }
  0xf6   : > { %v3572_v12 = vpack.c.bf16 %v308_v11, %v304_v9  ;;  %v310_v13 = vpop.f32.mrb[3].mxu1 }
  0xf7   : > { %v3574_v14 = vpack.c.bf16 %v310_v13, %v306_v10 }
  0xf8   : > { %5531 = vst [vmem:[#allocation5_spill] sm:$0xff] %v3572_v12  ;;  %v464_v15 = vsel %vm462_vm1, %v3572_v12, 0 }
  0xf9   : > { %5532 = vst [vmem:[#allocation6_spill] sm:$0xff] %v3574_v14  ;;  %2990 = vmatprep.subr.msk.bf16.mxu1 %vm462_vm1, %v3574_v14 }
  0xfa   : > { %470 = vmatpush1.bf16.msra.mxu1 %v464_v15 }
  0xfb   : > { %v314_v16 = vpop.f32.mrb[4].mxu1 }
  0xfc   : > { %v316_v17 = vpop.f32.mrb[5].mxu1 }
  0xfd   : > { %v318_v18 = vpop.f32.mrb[6].mxu1 }
  0xfe   : > { %v3580_v19 = vpack.c.bf16 %v318_v18, %v314_v16  ;;  %v320_v20 = vpop.f32.mrb[7].mxu1 }
  0xff   : > { %v3582_v21 = vpack.c.bf16 %v320_v20, %v316_v17 }
 0x100   : > { %5533 = vst [vmem:[#allocation7_spill] sm:$0xff] %v3580_v19 }
 0x101   : > { %5534 = vst [vmem:[#allocation8_spill] sm:$0xff] %v3582_v21 }
 0x103   : > { %v324_v22 = vpop.f32.mrb[8].mxu1 }
 0x104   : > { %v326_v23 = vpop.f32.mrb[9].mxu1 }
 0x105   : > { %v328_v24 = vpop.f32.mrb[10].mxu1 }
 0x106   : > { %v367_v25 = vpack.c.bf16 %v328_v24, %v324_v22  ;;  %v330_v26 = vpop.f32.mrb[11].mxu1 }
 0x107   : > { %v368_v27 = vpack.c.bf16 %v330_v26, %v326_v23 }
 0x108   : > { %381 = vxpose.xlu0.c.b16.start.end [1/1] (short) %v367_v25, 128  ;;  %v985_v28 = vrot.slane %v367_v25, 4 }
 0x109   : > { %v986_v29 = vrot.slane %v368_v27, 4 }
 0x10a   : > { %989 = vxpose.xlu1.c.b16.start.end [1/1] (short) %v985_v28, 128 }
 0x10b   : > { %v334_v35 = vpop.f32.mrb[12].mxu1 }
 0x10c   : > { %v336_v36 = vpop.f32.mrb[13].mxu1 }
 0x10d   : > { %v338_v37 = vpop.f32.mrb[14].mxu1 }
 0x10e   : > { %v369_v40 = vpack.c.bf16 %v338_v37, %v334_v35  ;;  %v340_v41 = vpop.f32.mrb[15].mxu1 }
 0x10f   : > { %v370_v42 = vpack.c.bf16 %v340_v41, %v336_v36 }
 0x110   : > { %v2204_v5 = vrot.slane %v369_v40, 4 }
 0x111   : > { %v2205_v6 = vrot.slane %v370_v42, 4 }
 0x113   : > { %v344_v45 = vpop.f32.mrb[16].mxu1 }
 0x114   : > { %v346_v46 = vpop.f32.mrb[17].mxu1 }
 0x115   : > { %v348_v48 = vpop.f32.mrb[18].mxu1 }
 0x116   : > { %v3599_v49 = vpack.c.bf16 %v348_v48, %v344_v45  ;;  %v350_v50 = vpop.f32.mrb[19].mxu1 }
 0x117   : > { %v372_v51 = vpack.c.bf16 %v350_v50, %v346_v46 }
 0x118   : > { %5538 = vst [vmem:[#allocation12_spill] sm:$0xff] %v3599_v49 }
 0x119   : > { %v1542_v54 = vadd.bf16 %v3596_v47, %v372_v51  ;;  %v929_v55 = vadd.bf16 %v3593_v43, %v372_v51 }
 0x11b   : > { %v354_v57 = vpop.f32.mrb[20].mxu1  ;;  %962 = vmatprep.mubr.bf16.mxu0 %v929_v55  ;;  %v1546_v20 = vrot.slane %v1542_v54, 4 }
 0x11c   : > { %v356_v58 = vpop.f32.mrb[21].mxu1 }
 0x11d   : > { %v358_v59 = vpop.f32.mrb[22].mxu1 }
 0x11e   : > { %v3609_v60 = vpack.c.bf16 %v358_v59, %v354_v57  ;;  %v360_v61 = vpop.f32.mrb[23].mxu1 }
 0x11f   : > { %v3612_v62 = vpack.c.bf16 %v360_v61, %v356_v58 }
 0x120   : > { %5539 = vst [vmem:[#allocation13_spill] sm:$0xff] %v3609_v60 }
 0x121   : > { %5540 = vst [vmem:[#allocation14_spill] sm:$0xff] %v3612_v62 }
 0x125   : > { %397 = vxpose.xlu0.c.b16.start.end [1/1] (short) %v368_v27, 128 }
 0x127   : > { %1005 = vxpose.xlu1.c.b16.start.end [1/1] (short) %v986_v29, 128 }
 0x142   : > { %1602 = vxpose.xlu0.c.b16.start.end [1/1] (short) %v369_v40, 128 }
 0x144   : > { %1618 = vxpose.xlu1.c.b16.start.end [1/1] (short) %v370_v42, 128 }
 0x15f   : > { %2208 = vxpose.xlu0.c.b16.start.end [1/1] (short) %v2204_v5, 128 }
 0x161   : > { %2224 = vxpose.xlu1.c.b16.start.end [1/1] (short) %v2205_v6, 128 }
 0x165   : > { %3111 = vset.pattern.permute.xlu1 %v5393_v0 }
 0x168   : > { %3110 = vset.pattern.permute.xlu0 %v5393_v0 }
 0x16e   : > { %v389_v30 = vpop.trf.xlu0 }
 0x16f   : > { %2991 = vmatmul.mubr.msk.bf16.vlgmr.msra.gmra.mrb[24].mxu1 %vm413_vm2, %v389_v30 }
 0x170   : > { %511 = vmatprep.mubr.bf16.mxu1 %v5393_v0 }
 0x172   : > { %v390_v32 = vpop.trf.xlu0 }
 0x176   : > { %v391_v34 = vpop.trf.xlu0 }
 0x177   : > { %2992 = vmatmul.mubr.msk.bf16.gmra.mrb[28].mxu1 %vm413_vm2, %v390_v32 }
 0x178   : > { %521 = vmatprep.mubr.bf16.mxu1 %v5393_v0 }
 0x17a   : > { %v392_v44 = vpop.trf.xlu0 }
 0x17e   : > { %v393_v56 = vpop.trf.xlu0 }
 0x17f   : > { %2993 = vmatmul.mubr.msk.bf16.gmra.mrb[32].mxu1 %vm413_vm2, %v391_v34 }
 0x180   : > { %531 = vmatprep.mubr.bf16.mxu1 %v5393_v0 }
 0x182   : > { %v394_v4 = vpop.trf.xlu0 }
 0x186   : > { %v395_v7 = vpop.trf.xlu0 }
 0x187   : > { %2994 = vmatmul.mubr.msk.bf16.gmra.mrb[36].mxu1 %vm413_vm2, %v392_v44 }
 0x188   : > { %541 = vmatprep.mubr.bf16.mxu1 %v5393_v0 }
 0x18a   : > { %v396_v8 = vpop.trf.xlu0 }
 0x18e   : > { %v405_v9 = vpop.trf.xlu0 }
 0x18f   : > { %2995 = vmatmul.mubr.msk.bf16.gmra.mrb[40].mxu1 %vm413_vm2, %v393_v56 }
 0x190   : > { %551 = vmatprep.mubr.bf16.mxu1 %v5393_v0 }
 0x192   : > { %v406_v10 = vpop.trf.xlu0 }
 0x196   : > { %v407_v11 = vpop.trf.xlu0 }
 0x197   : > { %2996 = vmatmul.mubr.msk.bf16.gmra.mrb[44].mxu1 %vm413_vm2, %v394_v4 }
 0x198   : > { %561 = vmatprep.mubr.bf16.mxu1 %v5393_v0 }
 0x19a   : > { %v408_v13 = vpop.trf.xlu0 }
 0x19e   : > { %v409_v15 = vpop.trf.xlu0 }
 0x19f   : > { %2997 = vmatmul.mubr.msk.bf16.gmra.mrb[48].mxu1 %vm413_vm2, %v395_v7 }
 0x1a0   : > { %571 = vmatprep.mubr.bf16.mxu1 %v5393_v0 }
 0x1a2   : > { %v410_v16 = vpop.trf.xlu0 }
 0x1a6   : > { %v411_v17 = vpop.trf.xlu0 }
 0x1a7   : > { %2998 = vmatmul.mubr.msk.bf16.gmra.mrb[52].mxu1 %vm413_vm2, %v396_v8 }
 0x1a8   : > { %581 = vmatprep.mubr.bf16.mxu1 %v5393_v0 }
 0x1aa   : > { %v412_v18 = vpop.trf.xlu0 }
 0x1af   : > { %2999 = vmatmul.mubr.msk.bf16.gmra.mrb[56].mxu1 %vm413_vm2, %v405_v9 }
 0x1b0   : > { %591 = vmatprep.mubr.bf16.mxu1 %v5393_v0 }
 0x1b7   : > { %3000 = vmatmul.mubr.msk.bf16.gmra.mrb[60].mxu1 %vm413_vm2, %v406_v10 }
 0x1b8   : > { %601 = vmatprep.mubr.bf16.mxu1 %v5393_v0 }
 0x1bf   : > { %3001 = vmatmul.mubr.msk.bf16.gmra.mrb[64].mxu1 %vm413_vm2, %v407_v11 }
 0x1c0   : > { %611 = vmatprep.mubr.bf16.mxu1 %v5393_v0 }
 0x1c7   : > { %3002 = vmatmul.mubr.msk.bf16.gmra.mrb[68].mxu1 %vm413_vm2, %v408_v13 }
 0x1c8   : > { %621 = vmatprep.mubr.bf16.mxu1 %v5393_v0 }
 0x1cf   : > { %3003 = vmatmul.mubr.msk.bf16.gmra.mrb[72].mxu1 %vm413_vm2, %v409_v15 }
 0x1d0   : > { %631 = vmatprep.mubr.bf16.mxu1 %v5393_v0 }
 0x1d7   : > { %3004 = vmatmul.mubr.msk.bf16.gmra.mrb[76].mxu1 %vm413_vm2, %v410_v16 }
 0x1d8   : > { %641 = vmatprep.mubr.bf16.mxu1 %v5393_v0 }
 0x1df   : > { %3005 = vmatmul.mubr.msk.bf16.gmra.mrb[80].mxu1 %vm413_vm2, %v411_v17 }
 0x1e0   : > { %651 = vmatprep.mubr.bf16.mxu1 %v5393_v0 }
 0x1e7   : > { %3006 = vmatmul.mubr.msk.bf16.gmra.mrb[84].mxu1 %vm413_vm2, %v412_v18 }
 0x1e8   : > { %1581 = vmatprep.mubr.bf16.mxu1 %v1546_v20 }
 0x242   : > { %v3645_v22 = vpop.f32.mrb[24].mxu1 }
 0x243   : > { %v3647_v23 = vpop.f32.mrb[25].mxu1 }
 0x244   : > { %v3649_v24 = vpop.f32.mrb[26].mxu1 }
 0x245   : > { %5541 = vst [vmem:[#allocation15_spill] sm:$0xff] %v3649_v24  ;;  %v3651_v25 = vpop.f32.mrb[27].mxu1 }
 0x24a   : > { %v3653_v26 = vpop.f32.mrb[28].mxu1 }
 0x24b   : > { %5542 = vst [vmem:[#allocation16_spill] sm:$0xff] %v3653_v26  ;;  %v662_v27 = vmax.f32 %v3645_v22, %v3653_v26  ;;  %v3657_v28 = vpop.f32.mrb[29].mxu1 }
 0x24c   : > { %v699_v29 = vmax.f32 %v3647_v23, %v3657_v28  ;;  %v3661_v30 = vpop.f32.mrb[30].mxu1 }
 0x24d   : > { %5543 = vst [vmem:[#allocation17_spill] sm:$0xff] %v3661_v30  ;;  %v663_v31 = vmax.f32 %v3649_v24, %v3661_v30  ;;  %v3665_v32 = vpop.f32.mrb[31].mxu1 }
 0x24e   : > { %v700_v34 = vmax.f32 %v3651_v25, %v3665_v32 }
 0x252   : > { %v3669_v35 = vpop.f32.mrb[32].mxu1 }
 0x253   : > { %5544 = vst [vmem:[#allocation18_spill] sm:$0xff] %v3669_v35  ;;  %v664_v36 = vmax.f32 %v662_v27, %v3669_v35  ;;  %v3672_v37 = vpop.f32.mrb[33].mxu1 }
 0x254   : > { %v701_v38 = vmax.f32 %v699_v29, %v3672_v37  ;;  %v3675_v39 = vpop.f32.mrb[34].mxu1 }
 0x255   : > { %v665_v40 = vmax.f32 %v663_v31, %v3675_v39  ;;  %v3678_v41 = vpop.f32.mrb[35].mxu1 }
 0x256   : > { %v702_v42 = vmax.f32 %v700_v34, %v3678_v41 }
 0x25a   : > { %v3681_v44 = vpop.f32.mrb[36].mxu1 }
 0x25b   : > { %v666_v45 = vmax.f32 %v664_v36, %v3681_v44  ;;  %v3684_v46 = vpop.f32.mrb[37].mxu1 }
 0x25c   : > { %v703_v48 = vmax.f32 %v701_v38, %v3684_v46  ;;  %v3687_v50 = vpop.f32.mrb[38].mxu1 }
 0x25d   : > { %v667_v51 = vmax.f32 %v665_v40, %v3687_v50  ;;  %v3690_v54 = vpop.f32.mrb[39].mxu1 }
 0x25e   : > { %v704_v55 = vmax.f32 %v702_v42, %v3690_v54 }
 0x262   : > { %v3693_v56 = vpop.f32.mrb[40].mxu1 }
 0x263   : > { %v668_v57 = vmax.f32 %v666_v45, %v3693_v56  ;;  %v3696_v58 = vpop.f32.mrb[41].mxu1 }
 0x264   : > { %v705_v59 = vmax.f32 %v703_v48, %v3696_v58  ;;  %v3699_v61 = vpop.f32.mrb[42].mxu1 }
 0x265   : > { %v669_v4 = vmax.f32 %v667_v51, %v3699_v61  ;;  %v3702_v5 = vpop.f32.mrb[43].mxu1 }
 0x266   : > { %v706_v6 = vmax.f32 %v704_v55, %v3702_v5 }
 0x26a   : > { %v3705_v7 = vpop.f32.mrb[44].mxu1 }
 0x26b   : > { %v670_v8 = vmax.f32 %v668_v57, %v3705_v7  ;;  %v3708_v9 = vpop.f32.mrb[45].mxu1 }
 0x26c   : > { %5545 = vst [vmem:[#allocation19_spill] sm:$0xff] %v3708_v9  ;;  %v707_v10 = vmax.f32 %v705_v59, %v3708_v9  ;;  %v3711_v11 = vpop.f32.mrb[46].mxu1 }
 0x26d   : > { %v671_v13 = vmax.f32 %v669_v4, %v3711_v11  ;;  %v3714_v15 = vpop.f32.mrb[47].mxu1 }
 0x26e   : > { %5546 = vst [vmem:[#allocation20_spill] sm:$0xff] %v3714_v15  ;;  %v708_v16 = vmax.f32 %v706_v6, %v3714_v15 }
 0x272   : > { %v3717_v17 = vpop.f32.mrb[48].mxu1 }
 0x273   : > { %v672_v18 = vmax.f32 %v670_v8, %v3717_v17  ;;  %v3720_v20 = vpop.f32.mrb[49].mxu1 }
 0x274   : > { %5547 = vst [vmem:[#allocation21_spill] sm:$0xff] %v3720_v20  ;;  %v709_v27 = vmax.f32 %v707_v10, %v3720_v20  ;;  %v3723_v29 = vpop.f32.mrb[50].mxu1 }
 0x275   : > { %v673_v31 = vmax.f32 %v671_v13, %v3723_v29  ;;  %v3726_v34 = vpop.f32.mrb[51].mxu1 }
 0x276   : > { %5548 = vst [vmem:[#allocation22_spill] sm:$0xff] %v3726_v34  ;;  %v710_v36 = vmax.f32 %v708_v16, %v3726_v34 }
 0x27a   : > { %v3729_v38 = vpop.f32.mrb[52].mxu1 }
 0x27b   : > { %v674_v40 = vmax.f32 %v672_v18, %v3729_v38  ;;  %v3732_v42 = vpop.f32.mrb[53].mxu1 }
 0x27c   : > { %5549 = vst [vmem:[#allocation23_spill] sm:$0xff] %v3732_v42  ;;  %v711_v45 = vmax.f32 %v709_v27, %v3732_v42  ;;  %v3735_v48 = vpop.f32.mrb[54].mxu1 }
 0x27d   : > { %v675_v51 = vmax.f32 %v673_v31, %v3735_v48  ;;  %v3738_v55 = vpop.f32.mrb[55].mxu1 }
 0x27e   : > { %5550 = vst [vmem:[#allocation24_spill] sm:$0xff] %v3738_v55  ;;  %v712_v57 = vmax.f32 %v710_v36, %v3738_v55 }
 0x282   : > { %v3741_v59 = vpop.f32.mrb[56].mxu1 }
 0x283   : > { %v676_v4 = vmax.f32 %v674_v40, %v3741_v59  ;;  %v3744_v6 = vpop.f32.mrb[57].mxu1 }
 0x284   : > { %5551 = vst [vmem:[#allocation25_spill] sm:$0xff] %v3744_v6  ;;  %v713_v8 = vmax.f32 %v711_v45, %v3744_v6  ;;  %v3747_v10 = vpop.f32.mrb[58].mxu1 }
 0x285   : > { %v677_v13 = vmax.f32 %v675_v51, %v3747_v10  ;;  %v3750_v16 = vpop.f32.mrb[59].mxu1 }
 0x286   : > { %5552 = vst [vmem:[#allocation26_spill] sm:$0xff] %v3750_v16  ;;  %v714_v18 = vmax.f32 %v712_v57, %v3750_v16 }
 0x28a   : > { %v3753_v27 = vpop.f32.mrb[60].mxu1 }
 0x28b   : > { %v678_v31 = vmax.f32 %v676_v4, %v3753_v27  ;;  %v3756_v36 = vpop.f32.mrb[61].mxu1 }
 0x28c   : > { %5553 = vst [vmem:[#allocation27_spill] sm:$0xff] %v3756_v36  ;;  %v715_v40 = vmax.f32 %v713_v8, %v3756_v36  ;;  %v3759_v1 = vpop.f32.mrb[62].mxu1 }
 0x28d   : > { %v679_v45 = vmax.f32 %v677_v13, %v3759_v1  ;;  %v3762_v63 = vpop.f32.mrb[63].mxu1 }
 0x28e   : > { %5554 = vst [vmem:[#allocation28_spill] sm:$0xff] %v3762_v63  ;;  %v716_v51 = vmax.f32 %v714_v18, %v3762_v63 }
 0x292   : > { %v3765_v3 = vpop.f32.mrb[64].mxu1 }
 0x293   : > { %v680_v57 = vmax.f32 %v678_v31, %v3765_v3  ;;  %v3768_v53 = vpop.f32.mrb[65].mxu1 }
 0x294   : > { %5555 = vst [vmem:[#allocation29_spill] sm:$0xff] %v3768_v53  ;;  %v717_v4 = vmax.f32 %v715_v40, %v3768_v53  ;;  %v3771_v2 = vpop.f32.mrb[66].mxu1 }
 0x295   : > { %v681_v8 = vmax.f32 %v679_v45, %v3771_v2  ;;  %v3774_v0 = vpop.f32.mrb[67].mxu1 }
 0x296   : > { %5556 = vst [vmem:[#allocation30_spill] sm:$0xff] %v3774_v0  ;;  %v718_v13 = vmax.f32 %v716_v51, %v3774_v0 }
 0x29a   : > { %v3777_v52 = vpop.f32.mrb[68].mxu1 }
 0x29b   : > { %v682_v18 = vmax.f32 %v680_v57, %v3777_v52  ;;  %v3780_v60 = vpop.f32.mrb[69].mxu1 }
 0x29c   : > { %5557 = vst [vmem:[#allocation31_spill] sm:$0xff] %v3780_v60  ;;  %v719_v31 = vmax.f32 %v717_v4, %v3780_v60  ;;  %v3783_v33 = vpop.f32.mrb[70].mxu1 }
 0x29d   : > { %v683_v40 = vmax.f32 %v681_v8, %v3783_v33  ;;  %v3786_v19 = vpop.f32.mrb[71].mxu1 }
 0x29e   : > { %5558 = vst [vmem:[#allocation32_spill] sm:$0xff] %v3786_v19  ;;  %v720_v45 = vmax.f32 %v718_v13, %v3786_v19 }
 0x2a2   : > { %v3789_v21 = vpop.f32.mrb[72].mxu1 }
 0x2a3   : > { %v684_v51 = vmax.f32 %v682_v18, %v3789_v21  ;;  %v3792_v47 = vpop.f32.mrb[73].mxu1 }
 0x2a4   : > { %5559 = vst [vmem:[#allocation33_spill] sm:$0xff] %v3792_v47  ;;  %v721_v57 = vmax.f32 %v719_v31, %v3792_v47  ;;  %v3795_v62 = vpop.f32.mrb[74].mxu1 }
 0x2a5   : > { %v685_v4 = vmax.f32 %v683_v40, %v3795_v62  ;;  %v3798_v49 = vpop.f32.mrb[75].mxu1 }
 0x2a6   : > { %5560 = vst [vmem:[#allocation34_spill] sm:$0xff] %v3798_v49  ;;  %v722_v8 = vmax.f32 %v720_v45, %v3798_v49 }
 0x2aa   : > { %v3801_v43 = vpop.f32.mrb[76].mxu1 }
 0x2ab   : > { %v686_v13 = vmax.f32 %v684_v51, %v3801_v43  ;;  %v3804_v14 = vpop.f32.mrb[77].mxu1 }
 0x2ac   : > { %5561 = vst [vmem:[#allocation35_spill] sm:$0xff] %v3804_v14  ;;  %v723_v18 = vmax.f32 %v721_v57, %v3804_v14  ;;  %v3807_v12 = vpop.f32.mrb[78].mxu1 }
 0x2ad   : > { %v687_v31 = vmax.f32 %v685_v4, %v3807_v12  ;;  %v3810_v47 = vpop.f32.mrb[79].mxu1 }
 0x2ae   : > { %5562 = vst [vmem:[#allocation36_spill] sm:$0xff] %v3810_v47  ;;  %v724_v40 = vmax.f32 %v722_v8, %v3810_v47 }
 0x2b2   : > { %v3813_v19 = vpop.f32.mrb[80].mxu1 }
 0x2b3   : > { %v688_v45 = vmax.f32 %v686_v13, %v3813_v19  ;;  %v3816_v49 = vpop.f32.mrb[81].mxu1 }
 0x2b4   : > { %5563 = vst [vmem:[#allocation37_spill] sm:$0xff] %v3816_v49  ;;  %v725_v51 = vmax.f32 %v723_v18, %v3816_v49  ;;  %v3819_v60 = vpop.f32.mrb[82].mxu1 }
 0x2b5   : > { %v689_v57 = vmax.f32 %v687_v31, %v3819_v60  ;;  %v3822_v14 = vpop.f32.mrb[83].mxu1 }
 0x2b6   : > { %5564 = vst [vmem:[#allocation38_spill] sm:$0xff] %v3822_v14  ;;  %v726_v4 = vmax.f32 %v724_v40, %v3822_v14 }
 0x2ba   : > { %v653_v0 = vpop.f32.mrb[84].mxu1 }
 0x2bb   : > { %v690_v53 = vmax.f32 %v688_v45, %v653_v0  ;;  %v3825_v63 = vpop.f32.mrb[85].mxu1 }
 0x2bc   : > { %v727_v8 = vmax.f32 %v725_v51, %v3825_v63  ;;  %v657_v47 = vpop.f32.mrb[86].mxu1 }
 0x2bd   : > { %v691_v13 = vmax.f32 %v689_v57, %v657_v47  ;;  %v659_v36 = vpop.f32.mrb[87].mxu1 }
 0x2be   : > { %v728_v16 = vmax.f32 %v726_v4, %v659_v36 }
 0x2bf   : > { %v692_v6 = vmax.f32 %v690_v53, %v691_v13  ;;  %v5569_v13 = vld [vmem:[#allocation20_spill] sm:$0xff] }
 0x2c0   : > { %v729_v18 = vmax.f32 %v727_v8, %v728_v16 }
 0x2c1   : > { %v693_v49 = vrot.slane %v692_v6, 4 }
 0x2c2   : > { %v730_v55 = vrot.slane %v729_v18, 4 }
 0x2c3   : > { %v694_v42 = vmax.f32 %v692_v6, %v693_v49 }
 0x2c4   : > { %v731_v31 = vmax.f32 %v729_v18, %v730_v55  ;;  %v5570_v18 = vld [vmem:[#allocation21_spill] sm:$0xff] }
 0x2c5   : > { %v695_v34 = vrot.slane %v694_v42, 2 }
 0x2c6   : > { %v732_v20 = vrot.slane %v731_v31, 2 }
 0x2c7   : > { %v696_v15 = vmax.f32 %v694_v42, %v695_v34 }
 0x2c8   : > { %v733_v40 = vmax.f32 %v731_v31, %v732_v20  ;;  %v5571_v31 = vld [vmem:[#allocation22_spill] sm:$0xff] }
 0x2c9   : > { %v697_v14 = vrot.slane %v696_v15, 1 }
 0x2ca   : > { %v734_v9 = vrot.slane %v733_v40, 1 }
 0x2cb   : > { %v3828_v45 = vmax.f32 %v696_v15, %v697_v14 }
 0x2cc   : > { %v3866_v8 = vmax.f32 %v733_v40, %v734_v9 }
 0x2cd   : > { %5565 = vst [vmem:[#allocation39_spill] sm:$0xff] %v3828_v45  ;;  %v796_v51 = vsub.f32 %v653_v0, %v3828_v45  ;;  %v798_v57 = vsub.f32 %v657_v47, %v3828_v45  ;;  %v746_v0 = vsub.f32 %v3675_v39, %v3828_v45  ;;  %v748_v47 = vsub.f32 %v3681_v44, %v3828_v45 }
 0x2ce   : > { %v750_v34 = vsub.f32 %v3687_v50, %v3828_v45  ;;  %v752_v42 = vsub.f32 %v3693_v56, %v3828_v45  ;;  %v754_v55 = vsub.f32 %v3699_v61, %v3828_v45  ;;  %v756_v6 = vsub.f32 %v3705_v7, %v3828_v45 }
 0x2cf   : > { %v3844_v15 = vpack.c.bf16 %v798_v57, %v796_v51  ;;  %v758_v39 = vsub.f32 %v3711_v11, %v3828_v45  ;;  %v760_v4 = vsub.f32 %v3717_v17, %v3828_v45  ;;  %v762_v44 = vsub.f32 %v3723_v29, %v3828_v45 }
 0x2d0   : > { %v764_v50 = vsub.f32 %v3729_v38, %v3828_v45  ;;  %v766_v56 = vsub.f32 %v3735_v48, %v3828_v45  ;;  %v768_v61 = vsub.f32 %v3741_v59, %v3828_v45  ;;  %v770_v7 = vsub.f32 %v3747_v10, %v3828_v45 }
 0x2d1   : > { %5566 = vst [vmem:[#allocation40_spill] sm:$0xff] %v3844_v15  ;;  %v772_v11 = vsub.f32 %v3753_v27, %v3828_v45  ;;  %v774_v17 = vsub.f32 %v3759_v1, %v3828_v45  ;;  %v776_v29 = vsub.f32 %v3765_v3, %v3828_v45  ;;  %v778_v38 = vsub.f32 %v3771_v2, %v3828_v45 }
 0x2d2   : > { %v780_v9 = vsub.f32 %v3777_v52, %v3828_v45  ;;  %v782_v48 = vsub.f32 %v3783_v33, %v3828_v45  ;;  %v784_v59 = vsub.f32 %v3789_v21, %v3828_v45  ;;  %v786_v10 = vsub.f32 %v3795_v62, %v3828_v45 }
 0x2d3   : > { %v788_v1 = vsub.f32 %v3801_v43, %v3828_v45  ;;  %v790_v3 = vsub.f32 %v3807_v12, %v3828_v45  ;;  %v792_v2 = vsub.f32 %v3813_v19, %v3828_v45  ;;  %v794_v52 = vsub.f32 %v3819_v60, %v3828_v45 }
 0x2d4   : > { %v797_v33 = vsub.f32 %v3825_v63, %v3866_v8  ;;  %v799_v21 = vsub.f32 %v659_v36, %v3866_v8  ;;  %v737_v62 = vsub.f32 %v3647_v23, %v3866_v8  ;;  %v739_v43 = vsub.f32 %v3651_v25, %v3866_v8 }
 0x2d5   : > { %v741_v12 = vsub.f32 %v3657_v28, %v3866_v8  ;;  %v743_v19 = vsub.f32 %v3665_v32, %v3866_v8  ;;  %v745_v60 = vsub.f32 %v3672_v37, %v3866_v8  ;;  %v747_v63 = vsub.f32 %v3678_v41, %v3866_v8  ;;  %v5568_v32 = vld [vmem:[#allocation19_spill] sm:$0xff] }
 0x2d6   : > { %v749_v27 = vsub.f32 %v3684_v46, %v3866_v8  ;;  %v3913_v36 = vpack.c.bf16 %v799_v21, %v797_v33  ;;  %v751_v23 = vsub.f32 %v3690_v54, %v3866_v8  ;;  %v753_v25 = vsub.f32 %v3696_v58, %v3866_v8  ;;  %v5572_v54 = vld [vmem:[#allocation23_spill] sm:$0xff]  ;;  %v5573_v58 = vld [vmem:[#allocation24_spill] sm:$0xff]  ;;  %v5575_v21 = vld [vmem:[#allocation26_spill] sm:$0xff] }
 0x2d7   : > { %v755_v28 = vsub.f32 %v3702_v5, %v3866_v8  ;;  %v757_v37 = vsub.f32 %v5568_v32, %v3866_v8  ;;  %v759_v41 = vsub.f32 %v5569_v13, %v3866_v8  ;;  %v761_v46 = vsub.f32 %v5570_v18, %v3866_v8  ;;  %v5574_v5 = vld [vmem:[#allocation25_spill] sm:$0xff]  ;;  %v5576_v13 = vld [vmem:[#allocation27_spill] sm:$0xff]  ;;  %v5577_v18 = vld [vmem:[#allocation28_spill] sm:$0xff] }
 0x2d8   : > { %5567 = vst [vmem:[#allocation41_spill] sm:$0xff] %v3913_v36  ;;  %v763_v40 = vsub.f32 %v5571_v31, %v3866_v8  ;;  %v765_v51 = vsub.f32 %v5572_v54, %v3866_v8  ;;  %v767_v57 = vsub.f32 %v5573_v58, %v3866_v8  ;;  %v769_v33 = vsub.f32 %v5574_v5, %v3866_v8  ;;  %v5578_v31 = vld [vmem:[#allocation29_spill] sm:$0xff]  ;;  %v5579_v54 = vld [vmem:[#allocation30_spill] sm:$0xff]  ;;  %v5580_v58 = vld [vmem:[#allocation31_spill] sm:$0xff] }
 0x2d9   : > { %v771_v32 = vsub.f32 %v5575_v21, %v3866_v8  ;;  %v773_v14 = vsub.f32 %v5576_v13, %v3866_v8  ;;  %v775_v20 = vsub.f32 %v5577_v18, %v3866_v8  ;;  %v777_v49 = vsub.f32 %v5578_v31, %v3866_v8  ;;  %v5581_v5 = vld [vmem:[#allocation32_spill] sm:$0xff]  ;;  %v5582_v21 = vld [vmem:[#allocation33_spill] sm:$0xff]  ;;  %v5583_v13 = vld [vmem:[#allocation34_spill] sm:$0xff] }
 0x2da   : > { %v779_v16 = vsub.f32 %v5579_v54, %v3866_v8  ;;  %v781_v53 = vsub.f32 %v5580_v58, %v3866_v8  ;;  %v783_v15 = vsub.f32 %v5581_v5, %v3866_v8  ;;  %v785_v36 = vsub.f32 %v5582_v21, %v3866_v8  ;;  %v5584_v18 = vld [vmem:[#allocation35_spill] sm:$0xff]  ;;  %v5585_v31 = vld [vmem:[#allocation36_spill] sm:$0xff]  ;;  %v5586_v54 = vld [vmem:[#allocation37_spill] sm:$0xff] }
 0x2db   : > { %v787_v35 = vsub.f32 %v5583_v13, %v3866_v8  ;;  %v789_v30 = vsub.f32 %v5584_v18, %v3866_v8  ;;  %v791_v26 = vsub.f32 %v5585_v31, %v3866_v8  ;;  %v793_v24 = vsub.f32 %v5586_v54, %v3866_v8  ;;  %v5587_v58 = vld [vmem:[#allocation38_spill] sm:$0xff]  ;;  %v5588_v5 = vld [vmem:[#allocation39_spill] sm:$0xff]  ;;  %v5592_v54 = vld [vmem:[#allocation16_spill] sm:$0xff] }
 0x2dc   : > { %v795_v45 = vsub.f32 %v5587_v58, %v3866_v8  ;;  %v5589_v21 = vsub.f32 %v3645_v22, %v5588_v5  ;;  %v5590_v13 = vld [vmem:[#allocation15_spill] sm:$0xff]  ;;  %v5593_v8 = vsub.f32 %v5592_v54, %v5588_v5  ;;  %v5594_v58 = vld [vmem:[#allocation17_spill] sm:$0xff] }
 0x2dd   : > { %v5591_v18 = vsub.f32 %v5590_v13, %v5588_v5  ;;  %v5595_v22 = vsub.f32 %v5594_v58, %v5588_v5  ;;  %v806_v58 = vpack.c.bf16 %v750_v34, %v748_v47  ;;  %v3984_v34 = vpack.c.bf16 %v778_v38, %v776_v29 }
 0x2de   : > { %v3986_v47 = vpack.c.bf16 %v782_v48, %v780_v9  ;;  %v3996_v29 = vpack.c.bf16 %v779_v16, %v777_v49  ;;  %v3998_v38 = vpack.c.bf16 %v783_v15, %v781_v53  ;;  %v4000_v9 = vpack.c.bf16 %v787_v35, %v785_v36 }
 0x2df   : > { %v800_v31 = vpack.c.bf16 %v5591_v18, %v5589_v21  ;;  %v802_v13 = vpack.c.bf16 %v5595_v22, %v5593_v8  ;;  %v5596_v18 = vld [vmem:[#allocation18_spill] sm:$0xff]  ;;  %v808_v8 = vpack.c.bf16 %v754_v55, %v752_v42  ;;  %v810_v22 = vpack.c.bf16 %v758_v39, %v756_v6 }
 0x2e0   : > { %v5597_v21 = vsub.f32 %v5596_v18, %v5588_v5  ;;  %v3976_v5 = vpack.c.bf16 %v762_v44, %v760_v4  ;;  %v3978_v18 = vpack.c.bf16 %v766_v56, %v764_v50  ;;  %v3988_v42 = vpack.c.bf16 %v786_v10, %v784_v59 }
 0x2e1   : > { %v3990_v55 = vpack.c.bf16 %v790_v3, %v788_v1  ;;  %v3992_v6 = vpack.c.bf16 %v794_v52, %v792_v2  ;;  %v801_v39 = vpack.c.bf16 %v739_v43, %v737_v62  ;;  %v803_v4 = vpack.c.bf16 %v743_v19, %v741_v12 }
 0x2e2   : > { %v804_v54 = vpack.c.bf16 %v746_v0, %v5597_v21  ;;  %5598 = vst [vmem:[#allocation19_spill] sm:$0xff] %v3976_v5  ;;  %v3980_v0 = vpack.c.bf16 %v770_v7, %v768_v61  ;;  %v3982_v21 = vpack.c.bf16 %v774_v17, %v772_v11  ;;  %v805_v44 = vpack.c.bf16 %v747_v63, %v745_v60 }
 0x2e3   : > { %v807_v5 = vpack.c.bf16 %v751_v23, %v749_v27  ;;  %v809_v50 = vpack.c.bf16 %v755_v28, %v753_v25  ;;  %v811_v56 = vpack.c.bf16 %v759_v41, %v757_v37  ;;  %v813_v61 = vpack.c.bf16 %v763_v40, %v761_v46 }
 0x2e4   : > { %v815_v7 = vpack.c.bf16 %v767_v57, %v765_v51  ;;  %v817_v11 = vpack.c.bf16 %v771_v32, %v769_v33  ;;  %v3994_v17 = vpack.c.bf16 %v775_v20, %v773_v14  ;;  %v4002_v48 = vpack.c.bf16 %v791_v26, %v789_v30 }
 0x2e5   : > { %v4004_v59 = vpack.c.bf16 %v795_v45, %v793_v24  ;;  %v833_v10 = vmul.bf16 1069105081, %v800_v31  ;;  %v836_v1 = vmul.bf16 1069105081, %v801_v39  ;;  %v842_v3 = vmul.bf16 1069105081, %v803_v4 }
 0x2e6   : > { %v839_v2 = vmul.bf16 1069105081, %v802_v13  ;;  %v848_v52 = vmul.bf16 1069105081, %v805_v44  ;;  %v845_v20 = vmul.bf16 1069105081, %v804_v54 }
 0x2e7   : > { %3122 = vpow.bf16 %v836_v1  ;;  %v854_v16 = vmul.bf16 1069105081, %v807_v5  ;;  %v851_v53 = vmul.bf16 1069105081, %v806_v58  ;;  %v860_v35 = vmul.bf16 1069105081, %v809_v50 }
 0x2e8   : > { %3124 = vpow.bf16 %v833_v10  ;;  %v857_v45 = vmul.bf16 1069105081, %v808_v8  ;;  %v866_v49 = vmul.bf16 1069105081, %v811_v56  ;;  %v863_v62 = vmul.bf16 1069105081, %v810_v22 }
 0x2e9   : > { %3126 = vpow.bf16 %v842_v3  ;;  %v872_v43 = vmul.bf16 1069105081, %v813_v61  ;;  %v5599_v60 = vld [vmem:[#allocation19_spill] sm:$0xff]  ;;  %v878_v27 = vmul.bf16 1069105081, %v815_v7  ;;  %v5600_v7 = vld [vmem:[#allocation41_spill] sm:$0xff] }
 0x2ea   : > { %3128 = vpow.bf16 %v839_v2  ;;  %v869_v63 = vmul.bf16 1069105081, %v5599_v60  ;;  %v875_v25 = vmul.bf16 1069105081, %v3978_v18  ;;  %v884_v28 = vmul.bf16 1069105081, %v817_v11 }
 0x2eb   : > { %3130 = vpow.bf16 %v848_v52  ;;  %v881_v46 = vmul.bf16 1069105081, %v3980_v0  ;;  %v890_v40 = vmul.bf16 1069105081, %v3994_v17  ;;  %v887_v33 = vmul.bf16 1069105081, %v3982_v21 }
 0x2ec   : > { %3132 = vpow.bf16 %v845_v20  ;;  %v896_v32 = vmul.bf16 1069105081, %v3996_v29  ;;  %v893_v54 = vmul.bf16 1069105081, %v3984_v34  ;;  %v902_v58 = vmul.bf16 1069105081, %v3998_v38 }
 0x2ed   : > { %3134 = vpow.bf16 %v854_v16  ;;  %v899_v5 = vmul.bf16 1069105081, %v3986_v47  ;;  %v908_v18 = vmul.bf16 1069105081, %v4000_v9  ;;  %v905_v34 = vmul.bf16 1069105081, %v3988_v42 }
 0x2ee   : > { %3136 = vpow.bf16 %v851_v53  ;;  %v914_v39 = vmul.bf16 1069105081, %v4002_v48  ;;  %v911_v47 = vmul.bf16 1069105081, %v3990_v55  ;;  %v920_v50 = vmul.bf16 1069105081, %v4004_v59 }
 0x2ef   : > { %3138 = vpow.bf16 %v860_v35  ;;  %v917_v42 = vmul.bf16 1069105081, %v3992_v6  ;;  %v926_v11 = vmul.bf16 1069105081, %v5600_v7  ;;  %v5601_v38 = vld [vmem:[#allocation40_spill] sm:$0xff]  ;;  %v5602_v2 = vld [vmem:[#allocation5_spill] sm:$0xff] }
 0x2f0   : > { %3140 = vpow.bf16 %v857_v45  ;;  %v923_v9 = vmul.bf16 1069105081, %v5601_v38  ;;  %v1023_v52 = vrot.slane %v5602_v2, 4  ;;  %v5603_v20 = vld [vmem:[#allocation6_spill] sm:$0xff]  ;;  %v5605_v35 = vld [vmem:[#allocation12_spill] sm:$0xff]  ;;  %v997_v45 = vpop.trf.xlu1 }
 0x2f1   : > { %3142 = vpow.bf16 %v866_v49  ;;  %v1024_v16 = vrot.slane %v5603_v20, 4  ;;  %v5604_v53 = vld [vmem:[#allocation10_spill] sm:$0xff] }
 0x2f2   : > { %v3123_v26 = vpop.eup %3122  ;;  %3144 = vpow.bf16 %v863_v62 }
 0x2f3   : > { %v3125_v30 = vpop.eup %3124  ;;  %930 = vmatprep.subr.bf16.mxu0 %v3123_v26  ;;  %3146 = vpow.bf16 %v872_v43  ;;  %v5606_v26 = vadd.bf16 %v5604_v53, %v5605_v35 }
 0x2f4   : > { %v3127_v24 = vpop.eup %3126  ;;  %931 = vmatpush1.bf16.msra.mxu0 %v3125_v30  ;;  %3148 = vpow.bf16 %v869_v63  ;;  %v1074_v30 = vsel %vm462_vm1, %v1023_v52, 0  ;;  %v998_v49 = vpop.trf.xlu1 }
 0x2f5   : > { %932 = vmatprep.subr.bf16.mxu0 %v3127_v24  ;;  %v3129_v14 = vpop.eup %3128  ;;  %3150 = vpow.bf16 %v878_v27  ;;  %v5607_v24 = vmov 0  }
 0x2f6   : > { %v3131_v15 = vpop.eup %3130  ;;  %3152 = vpow.bf16 %v875_v25 }
 0x2f7   : > { %v3133_v12 = vpop.eup %3132  ;;  %3154 = vpow.bf16 %v884_v28 }
 0x2f8   : > { %933 = vmatpush1.bf16.msra.mxu0 %v3129_v14  ;;  %v3135_v19 = vpop.eup %3134  ;;  %3156 = vpow.bf16 %v881_v46  ;;  %v999_v14 = vpop.trf.xlu1 }
 0x2f9   : > { %934 = vmatprep.subr.bf16.mxu0 %v3131_v15  ;;  %v3137_v36 = vpop.eup %3136  ;;  %3158 = vpow.bf16 %v890_v40 }
 0x2fa   : > { %v3139_v23 = vpop.eup %3138  ;;  %3160 = vpow.bf16 %v887_v33 }
 0x2fb   : > { %v3141_v37 = vpop.eup %3140  ;;  %3162 = vpow.bf16 %v896_v32 }
 0x2fc   : > { %935 = vmatpush1.bf16.msra.mxu0 %v3133_v12  ;;  %v3143_v41 = vpop.eup %3142  ;;  %3164 = vpow.bf16 %v893_v54  ;;  %v1000_v15 = vpop.trf.xlu1 }
 0x2fd   : > { %936 = vmatprep.subr.bf16.mxu0 %v3135_v19  ;;  %v3145_v51 = vpop.eup %3144  ;;  %3166 = vpow.bf16 %v902_v58 }
 0x2fe   : > { %v3147_v57 = vpop.eup %3146  ;;  %3168 = vpow.bf16 %v899_v5 }
 0x2ff   : > { %v3149_v31 = vpop.eup %3148  ;;  %3170 = vpow.bf16 %v908_v18 }
 0x300   : > { %937 = vmatpush1.bf16.msra.mxu0 %v3137_v36  ;;  %v3151_v13 = vpop.eup %3150  ;;  %3172 = vpow.bf16 %v905_v34  ;;  %v1001_v62 = vpop.trf.xlu1 }
 0x301   : > { %938 = vmatprep.subr.bf16.mxu0 %v3139_v23  ;;  %v3153_v8 = vpop.eup %3152  ;;  %3174 = vpow.bf16 %v914_v39 }
 0x302   : > { %v3155_v22 = vpop.eup %3154  ;;  %3176 = vpow.bf16 %v911_v47 }
 0x303   : > { %v3157_v0 = vpop.eup %3156  ;;  %3178 = vpow.bf16 %v920_v50 }
 0x304   : > { %939 = vmatpush1.bf16.msra.mxu0 %v3141_v37  ;;  %v3159_v21 = vpop.eup %3158  ;;  %3180 = vpow.bf16 %v917_v42  ;;  %v1002_v43 = vpop.trf.xlu1 }
 0x305   : > { %940 = vmatprep.subr.bf16.mxu0 %v3143_v41  ;;  %v3161_v4 = vpop.eup %3160  ;;  %3182 = vpow.bf16 %v926_v11  ;;  %v5608_v41 = vld [vmem:[#allocation14_spill] sm:$0xff] }
 0x306   : > { %v3163_v44 = vpop.eup %3162  ;;  %3184 = vpow.bf16 %v923_v9  ;;  %v5609_v46 = vadd.bf16 %v5604_v53, %v5608_v41 }
 0x307   : > { %v3165_v56 = vpop.eup %3164 }
 0x308   : > { %941 = vmatpush1.bf16.msra.mxu0 %v3145_v51  ;;  %v3167_v61 = vpop.eup %3166  ;;  %v1003_v12 = vpop.trf.xlu1 }
 0x309   : > { %942 = vmatprep.subr.bf16.mxu0 %v3147_v57  ;;  %v3169_v17 = vpop.eup %3168 }
 0x30a   : > { %v3171_v29 = vpop.eup %3170 }
 0x30b   : > { %v3173_v55 = vpop.eup %3172 }
 0x30c   : > { %943 = vmatpush1.bf16.msra.mxu0 %v3149_v31  ;;  %v3175_v48 = vpop.eup %3174  ;;  %v1004_v19 = vpop.trf.xlu1 }
 0x30d   : > { %944 = vmatprep.subr.bf16.mxu0 %v3151_v13  ;;  %v3177_v59 = vpop.eup %3176 }
 0x30e   : > { %v3179_v6 = vpop.eup %3178 }
 0x30f   : > { %v3181_v10 = vpop.eup %3180 }
 0x310   : > { %945 = vmatpush1.bf16.msra.mxu0 %v3153_v8  ;;  %v3183_v1 = vpop.eup %3182  ;;  %v1013_v60 = vpop.trf.xlu1 }
 0x311   : > { %946 = vmatprep.subr.bf16.mxu0 %v3155_v22  ;;  %v3185_v3 = vpop.eup %3184 }
 0x314   : > { %947 = vmatpush1.bf16.msra.mxu0 %v3157_v0  ;;  %v1014_v63 = vpop.trf.xlu1 }
 0x315   : > { %948 = vmatprep.subr.bf16.mxu0 %v3159_v21 }
 0x318   : > { %949 = vmatpush1.bf16.msra.mxu0 %v3161_v4  ;;  %v1015_v27 = vpop.trf.xlu1 }
 0x319   : > { %950 = vmatprep.subr.bf16.mxu0 %v3163_v44 }
 0x31c   : > { %951 = vmatpush1.bf16.msra.mxu0 %v3165_v56  ;;  %v1016_v36 = vpop.trf.xlu1 }
 0x31d   : > { %952 = vmatprep.subr.bf16.mxu0 %v3167_v61 }
 0x320   : > { %953 = vmatpush1.bf16.msra.mxu0 %v3169_v17  ;;  %v1017_v23 = vpop.trf.xlu1 }
 0x321   : > { %954 = vmatprep.subr.bf16.mxu0 %v3171_v29 }
 0x324   : > { %955 = vmatpush1.bf16.msra.mxu0 %v3173_v55  ;;  %v1018_v25 = vpop.trf.xlu1 }
 0x325   : > { %956 = vmatprep.subr.bf16.mxu0 %v3175_v48 }
 0x328   : > { %957 = vmatpush1.bf16.msra.mxu0 %v3177_v59  ;;  %v1019_v28 = vpop.trf.xlu1 }
 0x329   : > { %958 = vmatprep.subr.bf16.mxu0 %v3179_v6 }
 0x32c   : > { %959 = vmatpush1.bf16.msra.mxu0 %v3181_v10  ;;  %v1020_v37 = vpop.trf.xlu1 }
 0x32d   : > { %960 = vmatprep.subr.bf16.mxu0 %v3183_v1 }
 0x330   : > { %961 = vmatpush1.bf16.msra.mxu0 %v3185_v3 }
 0x331   : > { %3007 = vmatprep.subr.msk.bf16.mxu0 %vm462_vm1, %v1024_v16 }
 0x333   : > { %963 = vmatmul.mubr.bf16.vlgmr.msra.gmra.mrb[0].mxu0 %v5606_v26 }
 0x334   : > { %1080 = vmatpush1.bf16.msra.mxu0 %v1074_v30  ;;  %1111 = vmatprep.mubr.bf16.mxu0 %v5607_v24 }
 0x33b   : > { %3008 = vmatmul.mubr.msk.bf16.vlgmr.msra.gmra.mrb[4].mxu0 %vm413_vm2, %v997_v45 }
 0x33c   : > { %1121 = vmatprep.mubr.bf16.mxu0 %v5607_v24 }
 0x343   : > { %3009 = vmatmul.mubr.msk.bf16.gmra.mrb[8].mxu0 %vm413_vm2, %v998_v49 }
 0x344   : > { %1131 = vmatprep.mubr.bf16.mxu0 %v5607_v24 }
 0x34b   : > { %3010 = vmatmul.mubr.msk.bf16.gmra.mrb[12].mxu0 %vm413_vm2, %v999_v14 }
 0x34c   : > { %1141 = vmatprep.mubr.bf16.mxu0 %v5607_v24 }
 0x353   : > { %3011 = vmatmul.mubr.msk.bf16.gmra.mrb[16].mxu0 %vm413_vm2, %v1000_v15 }
 0x354   : > { %1151 = vmatprep.mubr.bf16.mxu0 %v5607_v24 }
 0x35b   : > { %3012 = vmatmul.mubr.msk.bf16.gmra.mrb[20].mxu0 %vm413_vm2, %v1001_v62 }
 0x35c   : > { %1161 = vmatprep.mubr.bf16.mxu0 %v5607_v24 }
 0x363   : > { %3013 = vmatmul.mubr.msk.bf16.gmra.mrb[24].mxu0 %vm413_vm2, %v1002_v43 }
 0x364   : > { %1171 = vmatprep.mubr.bf16.mxu0 %v5607_v24 }
 0x36b   : > { %3014 = vmatmul.mubr.msk.bf16.gmra.mrb[28].mxu0 %vm413_vm2, %v1003_v12 }
 0x36c   : > { %1181 = vmatprep.mubr.bf16.mxu0 %v5607_v24 }
 0x373   : > { %3015 = vmatmul.mubr.msk.bf16.gmra.mrb[32].mxu0 %vm413_vm2, %v1004_v19 }
 0x374   : > { %1191 = vmatprep.mubr.bf16.mxu0 %v5607_v24 }
 0x37b   : > { %3016 = vmatmul.mubr.msk.bf16.gmra.mrb[36].mxu0 %vm413_vm2, %v1013_v60 }
 0x37c   : > { %1201 = vmatprep.mubr.bf16.mxu0 %v5607_v24 }
 0x383   : > { %3017 = vmatmul.mubr.msk.bf16.gmra.mrb[40].mxu0 %vm413_vm2, %v1014_v63 }
 0x384   : > { %1211 = vmatprep.mubr.bf16.mxu0 %v5607_v24 }
 0x38b   : > { %3018 = vmatmul.mubr.msk.bf16.gmra.mrb[44].mxu0 %vm413_vm2, %v1015_v27 }
 0x38c   : > { %1221 = vmatprep.mubr.bf16.mxu0 %v5607_v24 }
 0x393   : > { %3019 = vmatmul.mubr.msk.bf16.gmra.mrb[48].mxu0 %vm413_vm2, %v1016_v36 }
 0x394   : > { %1231 = vmatprep.mubr.bf16.mxu0 %v5607_v24 }
 0x39b   : > { %3020 = vmatmul.mubr.msk.bf16.gmra.mrb[52].mxu0 %vm413_vm2, %v1017_v23 }
 0x39c   : > { %1241 = vmatprep.mubr.bf16.mxu0 %v5607_v24 }
 0x3a3   : > { %3021 = vmatmul.mubr.msk.bf16.gmra.mrb[56].mxu0 %vm413_vm2, %v1018_v25 }
 0x3a4   : > { %1251 = vmatprep.mubr.bf16.mxu0 %v5607_v24 }
 0x3ab   : > { %3022 = vmatmul.mubr.msk.bf16.gmra.mrb[60].mxu0 %vm413_vm2, %v1019_v28 }
 0x3ac   : > { %1261 = vmatprep.mubr.bf16.mxu0 %v5607_v24 }
 0x3b3   : > { %3023 = vmatmul.mubr.msk.bf16.gmra.mrb[64].mxu0 %vm413_vm2, %v1020_v37 }
 0x3b4   : > { %2181 = vmatprep.mubr.bf16.mxu0 %v5609_v46 }
 0x406   : > { %v4065_v40 = vpop.f32.mrb[0].mxu0 }
 0x407   : > { %5610 = vst [vmem:[#allocation20_spill] sm:$0xff] %v4065_v40  ;;  %v4067_v51 = vpop.f32.mrb[1].mxu0 }
 0x408   : > { %5611 = vst [vmem:[#allocation21_spill] sm:$0xff] %v4067_v51  ;;  %v968_v57 = vpop.f32.mrb[2].mxu0 }
 0x409   : > { %v969_v33 = vpop.f32.mrb[3].mxu0 }
 0x40e   : > { %v4069_v32 = vpop.f32.mrb[4].mxu0 }
 0x40f   : > { %v4071_v31 = vpop.f32.mrb[5].mxu0 }
 0x410   : > { %v4073_v13 = vpop.f32.mrb[6].mxu0 }
 0x411   : > { %5612 = vst [vmem:[#allocation22_spill] sm:$0xff] %v4073_v13  ;;  %v4075_v54 = vpop.f32.mrb[7].mxu0 }
 0x416   : > { %v4077_v58 = vpop.f32.mrb[8].mxu0 }
 0x417   : > { %5613 = vst [vmem:[#allocation23_spill] sm:$0xff] %v4077_v58  ;;  %v1272_v8 = vmax.f32 %v4069_v32, %v4077_v58  ;;  %v4081_v22 = vpop.f32.mrb[9].mxu0 }
 0x418   : > { %v1309_v5 = vmax.f32 %v4071_v31, %v4081_v22  ;;  %v4085_v18 = vpop.f32.mrb[10].mxu0 }
 0x419   : > { %5614 = vst [vmem:[#allocation24_spill] sm:$0xff] %v4085_v18  ;;  %v1273_v0 = vmax.f32 %v4073_v13, %v4085_v18  ;;  %v4089_v21 = vpop.f32.mrb[11].mxu0 }
 0x41a   : > { %v1310_v34 = vmax.f32 %v4075_v54, %v4089_v21 }
 0x41e   : > { %v4093_v39 = vpop.f32.mrb[12].mxu0 }
 0x41f   : > { %5615 = vst [vmem:[#allocation25_spill] sm:$0xff] %v4093_v39  ;;  %v1274_v4 = vmax.f32 %v1272_v8, %v4093_v39  ;;  %v4096_v44 = vpop.f32.mrb[13].mxu0 }
 0x420   : > { %v1311_v47 = vmax.f32 %v1309_v5, %v4096_v44  ;;  %v4099_v50 = vpop.f32.mrb[14].mxu0 }
 0x421   : > { %v1275_v56 = vmax.f32 %v1273_v0, %v4099_v50  ;;  %v4102_v61 = vpop.f32.mrb[15].mxu0 }
 0x422   : > { %v1312_v42 = vmax.f32 %v1310_v34, %v4102_v61 }
 0x426   : > { %v4105_v7 = vpop.f32.mrb[16].mxu0 }
 0x427   : > { %v1276_v11 = vmax.f32 %v1274_v4, %v4105_v7  ;;  %v4108_v17 = vpop.f32.mrb[17].mxu0 }
 0x428   : > { %v1313_v29 = vmax.f32 %v1311_v47, %v4108_v17  ;;  %v4111_v38 = vpop.f32.mrb[18].mxu0 }
 0x429   : > { %v1277_v9 = vmax.f32 %v1275_v56, %v4111_v38  ;;  %v4114_v55 = vpop.f32.mrb[19].mxu0 }
 0x42a   : > { %v1314_v48 = vmax.f32 %v1312_v42, %v4114_v55 }
 0x42e   : > { %v4117_v59 = vpop.f32.mrb[20].mxu0 }
 0x42f   : > { %v1278_v6 = vmax.f32 %v1276_v11, %v4117_v59  ;;  %v4120_v10 = vpop.f32.mrb[21].mxu0 }
 0x430   : > { %v1315_v1 = vmax.f32 %v1313_v29, %v4120_v10  ;;  %v4123_v3 = vpop.f32.mrb[22].mxu0 }
 0x431   : > { %v1279_v2 = vmax.f32 %v1277_v9, %v4123_v3  ;;  %v4126_v52 = vpop.f32.mrb[23].mxu0 }
 0x432   : > { %v1316_v20 = vmax.f32 %v1314_v48, %v4126_v52 }
 0x436   : > { %v4129_v16 = vpop.f32.mrb[24].mxu0 }
 0x437   : > { %v1280_v26 = vmax.f32 %v1278_v6, %v4129_v16  ;;  %v4132_v30 = vpop.f32.mrb[25].mxu0 }
 0x438   : > { %5616 = vst [vmem:[#allocation26_spill] sm:$0xff] %v4132_v30  ;;  %v1317_v45 = vmax.f32 %v1315_v1, %v4132_v30  ;;  %v4135_v49 = vpop.f32.mrb[26].mxu0 }
 0x439   : > { %v1281_v14 = vmax.f32 %v1279_v2, %v4135_v49  ;;  %v4138_v15 = vpop.f32.mrb[27].mxu0 }
 0x43a   : > { %5617 = vst [vmem:[#allocation27_spill] sm:$0xff] %v4138_v15  ;;  %v1318_v62 = vmax.f32 %v1316_v20, %v4138_v15 }
 0x43e   : > { %v4141_v43 = vpop.f32.mrb[28].mxu0 }
 0x43f   : > { %v1282_v12 = vmax.f32 %v1280_v26, %v4141_v43  ;;  %v4144_v19 = vpop.f32.mrb[29].mxu0 }
 0x440   : > { %5618 = vst [vmem:[#allocation28_spill] sm:$0xff] %v4144_v19  ;;  %v1319_v60 = vmax.f32 %v1317_v45, %v4144_v19  ;;  %v4147_v63 = vpop.f32.mrb[30].mxu0 }
 0x441   : > { %v1283_v27 = vmax.f32 %v1281_v14, %v4147_v63  ;;  %v4150_v36 = vpop.f32.mrb[31].mxu0 }
 0x442   : > { %5619 = vst [vmem:[#allocation29_spill] sm:$0xff] %v4150_v36  ;;  %v1320_v23 = vmax.f32 %v1318_v62, %v4150_v36 }
 0x446   : > { %v4153_v25 = vpop.f32.mrb[32].mxu0 }
 0x447   : > { %v1284_v28 = vmax.f32 %v1282_v12, %v4153_v25  ;;  %v4156_v37 = vpop.f32.mrb[33].mxu0 }
 0x448   : > { %5620 = vst [vmem:[#allocation30_spill] sm:$0xff] %v4156_v37  ;;  %v1321_v46 = vmax.f32 %v1319_v60, %v4156_v37  ;;  %v4159_v57 = vpop.f32.mrb[34].mxu0 }
 0x449   : > { %v1285_v33 = vmax.f32 %v1283_v27, %v4159_v57  ;;  %v4162_v8 = vpop.f32.mrb[35].mxu0 }
 0x44a   : > { %5621 = vst [vmem:[#allocation31_spill] sm:$0xff] %v4162_v8  ;;  %v1322_v5 = vmax.f32 %v1320_v23, %v4162_v8 }
 0x44e   : > { %v4165_v0 = vpop.f32.mrb[36].mxu0 }
 0x44f   : > { %v1286_v34 = vmax.f32 %v1284_v28, %v4165_v0  ;;  %v4168_v4 = vpop.f32.mrb[37].mxu0 }
 0x450   : > { %5622 = vst [vmem:[#allocation32_spill] sm:$0xff] %v4168_v4  ;;  %v1323_v47 = vmax.f32 %v1321_v46, %v4168_v4  ;;  %v4171_v56 = vpop.f32.mrb[38].mxu0 }
 0x451   : > { %v1287_v42 = vmax.f32 %v1285_v33, %v4171_v56  ;;  %v4174_v11 = vpop.f32.mrb[39].mxu0 }
 0x452   : > { %5623 = vst [vmem:[#allocation33_spill] sm:$0xff] %v4174_v11  ;;  %v1324_v29 = vmax.f32 %v1322_v5, %v4174_v11 }
 0x456   : > { %v4177_v9 = vpop.f32.mrb[40].mxu0 }
 0x457   : > { %v1288_v48 = vmax.f32 %v1286_v34, %v4177_v9  ;;  %v4180_v6 = vpop.f32.mrb[41].mxu0 }
 0x458   : > { %5624 = vst [vmem:[#allocation34_spill] sm:$0xff] %v4180_v6  ;;  %v1325_v1 = vmax.f32 %v1323_v47, %v4180_v6  ;;  %v4183_v2 = vpop.f32.mrb[42].mxu0 }
 0x459   : > { %v1289_v20 = vmax.f32 %v1287_v42, %v4183_v2  ;;  %v4186_v26 = vpop.f32.mrb[43].mxu0 }
 0x45a   : > { %5625 = vst [vmem:[#allocation35_spill] sm:$0xff] %v4186_v26  ;;  %v1326_v45 = vmax.f32 %v1324_v29, %v4186_v26 }
 0x45e   : > { %v4189_v14 = vpop.f32.mrb[44].mxu0 }
 0x45f   : > { %v1290_v62 = vmax.f32 %v1288_v48, %v4189_v14  ;;  %v4192_v12 = vpop.f32.mrb[45].mxu0 }
 0x460   : > { %5626 = vst [vmem:[#allocation36_spill] sm:$0xff] %v4192_v12  ;;  %v1327_v60 = vmax.f32 %v1325_v1, %v4192_v12  ;;  %v4195_v27 = vpop.f32.mrb[46].mxu0 }
 0x461   : > { %v1291_v23 = vmax.f32 %v1289_v20, %v4195_v27  ;;  %v4198_v28 = vpop.f32.mrb[47].mxu0 }
 0x462   : > { %5627 = vst [vmem:[#allocation37_spill] sm:$0xff] %v4198_v28  ;;  %v1328_v46 = vmax.f32 %v1326_v45, %v4198_v28 }
 0x466   : > { %v4201_v33 = vpop.f32.mrb[48].mxu0 }
 0x467   : > { %v1292_v5 = vmax.f32 %v1290_v62, %v4201_v33  ;;  %v4204_v34 = vpop.f32.mrb[49].mxu0 }
 0x468   : > { %5628 = vst [vmem:[#allocation38_spill] sm:$0xff] %v4204_v34  ;;  %v1329_v47 = vmax.f32 %v1327_v60, %v4204_v34  ;;  %v4207_v42 = vpop.f32.mrb[50].mxu0 }
 0x469   : > { %v1293_v29 = vmax.f32 %v1291_v23, %v4207_v42  ;;  %v4210_v48 = vpop.f32.mrb[51].mxu0 }
 0x46a   : > { %5629 = vst [vmem:[#allocation39_spill] sm:$0xff] %v4210_v48  ;;  %v1330_v1 = vmax.f32 %v1328_v46, %v4210_v48 }
 0x46e   : > { %v4213_v20 = vpop.f32.mrb[52].mxu0 }
 0x46f   : > { %v1294_v45 = vmax.f32 %v1292_v5, %v4213_v20  ;;  %v4216_v53 = vpop.f32.mrb[53].mxu0 }
 0x470   : > { %5630 = vst [vmem:[#allocation15_spill] sm:$0xff] %v4216_v53  ;;  %v1331_v62 = vmax.f32 %v1329_v47, %v4216_v53  ;;  %v4219_v51 = vpop.f32.mrb[54].mxu0 }
 0x471   : > { %v1295_v60 = vmax.f32 %v1293_v29, %v4219_v51  ;;  %v4222_v40 = vpop.f32.mrb[55].mxu0 }
 0x472   : > { %5631 = vst [vmem:[#allocation16_spill] sm:$0xff] %v4222_v40  ;;  %v1332_v23 = vmax.f32 %v1330_v1, %v4222_v40 }
 0x476   : > { %v4225_v41 = vpop.f32.mrb[56].mxu0 }
 0x477   : > { %v1296_v46 = vmax.f32 %v1294_v45, %v4225_v41  ;;  %v4228_v24 = vpop.f32.mrb[57].mxu0 }
 0x478   : > { %5632 = vst [vmem:[#allocation17_spill] sm:$0xff] %v4228_v24  ;;  %v1333_v5 = vmax.f32 %v1331_v62, %v4228_v24  ;;  %v4231_v35 = vpop.f32.mrb[58].mxu0 }
 0x479   : > { %v1297_v47 = vmax.f32 %v1295_v60, %v4231_v35  ;;  %v4234_v53 = vpop.f32.mrb[59].mxu0 }
 0x47a   : > { %5633 = vst [vmem:[#allocation18_spill] sm:$0xff] %v4234_v53  ;;  %v1334_v29 = vmax.f32 %v1332_v23, %v4234_v53 }
 0x47e   : > { %v4237_v48 = vpop.f32.mrb[60].mxu0 }
 0x47f   : > { %v1298_v1 = vmax.f32 %v1296_v46, %v4237_v48  ;;  %v4240_v40 = vpop.f32.mrb[61].mxu0 }
 0x480   : > { %5634 = vst [vmem:[#allocation19_spill] sm:$0xff] %v4240_v40  ;;  %v1335_v45 = vmax.f32 %v1333_v5, %v4240_v40  ;;  %v4243_v34 = vpop.f32.mrb[62].mxu0 }
 0x481   : > { %v1299_v62 = vmax.f32 %v1297_v47, %v4243_v34  ;;  %v4246_v24 = vpop.f32.mrb[63].mxu0 }
 0x482   : > { %5635 = vst [vmem:[#allocation41_spill] sm:$0xff] %v4246_v24  ;;  %v1336_v60 = vmax.f32 %v1334_v29, %v4246_v24 }
 0x486   : > { %v1263_v28 = vpop.f32.mrb[64].mxu0 }
 0x487   : > { %v1300_v12 = vmax.f32 %v1298_v1, %v1263_v28  ;;  %v4249_v26 = vpop.f32.mrb[65].mxu0 }
 0x488   : > { %v1337_v23 = vmax.f32 %v1335_v45, %v4249_v26  ;;  %v1267_v53 = vpop.f32.mrb[66].mxu0 }
 0x489   : > { %v1301_v46 = vmax.f32 %v1299_v62, %v1267_v53  ;;  %v1269_v6 = vpop.f32.mrb[67].mxu0 }
 0x48a   : > { %v1338_v11 = vmax.f32 %v1336_v60, %v1269_v6 }
 0x48b   : > { %v1302_v4 = vmax.f32 %v1300_v12, %v1301_v46  ;;  %v5640_v46 = vld [vmem:[#allocation27_spill] sm:$0xff] }
 0x48c   : > { %v1339_v5 = vmax.f32 %v1337_v23, %v1338_v11 }
 0x48d   : > { %v1303_v40 = vrot.slane %v1302_v4, 4 }
 0x48e   : > { %v1340_v8 = vrot.slane %v1339_v5, 4 }
 0x48f   : > { %v1304_v37 = vmax.f32 %v1302_v4, %v1303_v40 }
 0x490   : > { %v1341_v47 = vmax.f32 %v1339_v5, %v1340_v8  ;;  %v5641_v5 = vld [vmem:[#allocation28_spill] sm:$0xff] }
 0x491   : > { %v1305_v36 = vrot.slane %v1304_v37, 2 }
 0x492   : > { %v1342_v19 = vrot.slane %v1341_v47, 2 }
 0x493   : > { %v1306_v15 = vmax.f32 %v1304_v37, %v1305_v36 }
 0x494   : > { %v1343_v29 = vmax.f32 %v1341_v47, %v1342_v19  ;;  %v5642_v47 = vld [vmem:[#allocation29_spill] sm:$0xff] }
 0x495   : > { %v1307_v24 = vrot.slane %v1306_v15, 1 }
 0x496   : > { %v1344_v30 = vrot.slane %v1343_v29, 1 }
 0x497   : > { %v4252_v1 = vmax.f32 %v1306_v15, %v1307_v24 }
 0x498   : > { %v4290_v23 = vmax.f32 %v1343_v29, %v1344_v30 }
 0x499   : > { %5636 = vst [vmem:[#allocation40_spill] sm:$0xff] %v4252_v1  ;;  %v1406_v45 = vsub.f32 %v1263_v28, %v4252_v1  ;;  %v1408_v62 = vsub.f32 %v1267_v53, %v4252_v1  ;;  %v1356_v15 = vsub.f32 %v4099_v50, %v4252_v1  ;;  %v1358_v53 = vsub.f32 %v4105_v7, %v4252_v1 }
 0x49a   : > { %v1360_v37 = vsub.f32 %v4111_v38, %v4252_v1  ;;  %v1362_v8 = vsub.f32 %v4117_v59, %v4252_v1  ;;  %v1364_v4 = vsub.f32 %v4123_v3, %v4252_v1  ;;  %v1366_v28 = vsub.f32 %v4129_v16, %v4252_v1 }
 0x49b   : > { %v4268_v36 = vpack.c.bf16 %v1408_v62, %v1406_v45  ;;  %v1368_v50 = vsub.f32 %v4135_v49, %v4252_v1  ;;  %v1370_v60 = vsub.f32 %v4141_v43, %v4252_v1  ;;  %v1372_v7 = vsub.f32 %v4147_v63, %v4252_v1 }
 0x49c   : > { %v1374_v38 = vsub.f32 %v4153_v25, %v4252_v1  ;;  %v1376_v59 = vsub.f32 %v4159_v57, %v4252_v1  ;;  %v1378_v3 = vsub.f32 %v4165_v0, %v4252_v1  ;;  %v1380_v16 = vsub.f32 %v4171_v56, %v4252_v1 }
 0x49d   : > { %5637 = vst [vmem:[#allocation5_spill] sm:$0xff] %v4268_v36  ;;  %v1382_v49 = vsub.f32 %v4177_v9, %v4252_v1  ;;  %v1384_v43 = vsub.f32 %v4183_v2, %v4252_v1  ;;  %v1386_v63 = vsub.f32 %v4189_v14, %v4252_v1  ;;  %v1388_v25 = vsub.f32 %v4195_v27, %v4252_v1 }
 0x49e   : > { %v1390_v30 = vsub.f32 %v4201_v33, %v4252_v1  ;;  %v1392_v57 = vsub.f32 %v4207_v42, %v4252_v1  ;;  %v1394_v0 = vsub.f32 %v4213_v20, %v4252_v1  ;;  %v1396_v56 = vsub.f32 %v4219_v51, %v4252_v1 }
 0x49f   : > { %v1398_v9 = vsub.f32 %v4225_v41, %v4252_v1  ;;  %v1400_v2 = vsub.f32 %v4231_v35, %v4252_v1  ;;  %v1402_v14 = vsub.f32 %v4237_v48, %v4252_v1  ;;  %v1404_v27 = vsub.f32 %v4243_v34, %v4252_v1 }
 0x4a0   : > { %v1407_v33 = vsub.f32 %v4249_v26, %v4290_v23  ;;  %v1409_v42 = vsub.f32 %v1269_v6, %v4290_v23  ;;  %v1347_v51 = vsub.f32 %v4071_v31, %v4290_v23  ;;  %v1349_v41 = vsub.f32 %v4075_v54, %v4290_v23 }
 0x4a1   : > { %v1351_v35 = vsub.f32 %v4081_v22, %v4290_v23  ;;  %v1353_v48 = vsub.f32 %v4089_v21, %v4290_v23  ;;  %v1355_v34 = vsub.f32 %v4096_v44, %v4290_v23  ;;  %v1357_v26 = vsub.f32 %v4102_v61, %v4290_v23  ;;  %v5639_v21 = vld [vmem:[#allocation26_spill] sm:$0xff] }
 0x4a2   : > { %v1359_v6 = vsub.f32 %v4108_v17, %v4290_v23  ;;  %v4337_v20 = vpack.c.bf16 %v1409_v42, %v1407_v33  ;;  %v1361_v31 = vsub.f32 %v4114_v55, %v4290_v23  ;;  %v1363_v54 = vsub.f32 %v4120_v10, %v4290_v23  ;;  %v5643_v55 = vld [vmem:[#allocation30_spill] sm:$0xff]  ;;  %v5644_v10 = vld [vmem:[#allocation31_spill] sm:$0xff]  ;;  %v5646_v42 = vld [vmem:[#allocation33_spill] sm:$0xff] }
 0x4a3   : > { %v1365_v22 = vsub.f32 %v4126_v52, %v4290_v23  ;;  %v1367_v44 = vsub.f32 %v5639_v21, %v4290_v23  ;;  %v1369_v61 = vsub.f32 %v5640_v46, %v4290_v23  ;;  %v1371_v17 = vsub.f32 %v5641_v5, %v4290_v23  ;;  %v5645_v52 = vld [vmem:[#allocation32_spill] sm:$0xff]  ;;  %v5647_v46 = vld [vmem:[#allocation34_spill] sm:$0xff]  ;;  %v5648_v5 = vld [vmem:[#allocation35_spill] sm:$0xff] }
 0x4a4   : > { %5638 = vst [vmem:[#allocation6_spill] sm:$0xff] %v4337_v20  ;;  %v1373_v29 = vsub.f32 %v5642_v47, %v4290_v23  ;;  %v1375_v45 = vsub.f32 %v5643_v55, %v4290_v23  ;;  %v1377_v62 = vsub.f32 %v5644_v10, %v4290_v23  ;;  %v1379_v33 = vsub.f32 %v5645_v52, %v4290_v23  ;;  %v5649_v47 = vld [vmem:[#allocation36_spill] sm:$0xff]  ;;  %v5650_v55 = vld [vmem:[#allocation37_spill] sm:$0xff]  ;;  %v5651_v10 = vld [vmem:[#allocation38_spill] sm:$0xff] }
 0x4a5   : > { %v1381_v21 = vsub.f32 %v5646_v42, %v4290_v23  ;;  %v1383_v24 = vsub.f32 %v5647_v46, %v4290_v23  ;;  %v1385_v19 = vsub.f32 %v5648_v5, %v4290_v23  ;;  %v1387_v40 = vsub.f32 %v5649_v47, %v4290_v23  ;;  %v5652_v52 = vld [vmem:[#allocation39_spill] sm:$0xff]  ;;  %v5654_v46 = vld [vmem:[#allocation16_spill] sm:$0xff]  ;;  %v5655_v5 = vld [vmem:[#allocation17_spill] sm:$0xff] }
 0x4a6   : > { %v1389_v11 = vsub.f32 %v5650_v55, %v4290_v23  ;;  %v1391_v12 = vsub.f32 %v5651_v10, %v4290_v23  ;;  %v1393_v36 = vsub.f32 %v5652_v52, %v4290_v23  ;;  %v5653_v42 = vld [vmem:[#allocation15_spill] sm:$0xff]  ;;  %v1397_v39 = vsub.f32 %v5654_v46, %v4290_v23  ;;  %v5656_v47 = vld [vmem:[#allocation18_spill] sm:$0xff]  ;;  %v5658_v10 = vld [vmem:[#allocation41_spill] sm:$0xff] }
 0x4a7   : > { %v1395_v20 = vsub.f32 %v5653_v42, %v4290_v23  ;;  %v1399_v18 = vsub.f32 %v5655_v5, %v4290_v23  ;;  %v1401_v58 = vsub.f32 %v5656_v47, %v4290_v23  ;;  %v5657_v55 = vld [vmem:[#allocation19_spill] sm:$0xff]  ;;  %v1405_v1 = vsub.f32 %v5658_v10, %v4290_v23  ;;  %v5659_v52 = vld [vmem:[#allocation40_spill] sm:$0xff]  ;;  %v5661_v46 = vld [vmem:[#allocation22_spill] sm:$0xff] }
 0x4a8   : > { %v1403_v13 = vsub.f32 %v5657_v55, %v4290_v23  ;;  %v5660_v42 = vsub.f32 %v4069_v32, %v5659_v52  ;;  %v5662_v5 = vsub.f32 %v5661_v46, %v5659_v52  ;;  %v5663_v55 = vld [vmem:[#allocation23_spill] sm:$0xff]  ;;  %v5665_v23 = vld [vmem:[#allocation24_spill] sm:$0xff] }
 0x4a9   : > { %v5664_v10 = vsub.f32 %v5663_v55, %v5659_v52  ;;  %v5666_v32 = vsub.f32 %v5665_v23, %v5659_v52  ;;  %v1416_v23 = vpack.c.bf16 %v1360_v37, %v1358_v53  ;;  %v4408_v37 = vpack.c.bf16 %v1388_v25, %v1386_v63 }
 0x4aa   : > { %v1410_v47 = vpack.c.bf16 %v5662_v5, %v5660_v42  ;;  %v5667_v5 = vld [vmem:[#allocation25_spill] sm:$0xff]  ;;  %v4410_v53 = vpack.c.bf16 %v1392_v57, %v1390_v30  ;;  %v4420_v63 = vpack.c.bf16 %v1389_v11, %v1387_v40  ;;  %v4422_v25 = vpack.c.bf16 %v1393_v36, %v1391_v12 }
 0x4ab   : > { %v1412_v46 = vpack.c.bf16 %v5666_v32, %v5664_v10  ;;  %v5668_v42 = vsub.f32 %v5667_v5, %v5659_v52  ;;  %v1418_v10 = vpack.c.bf16 %v1364_v4, %v1362_v8  ;;  %v1420_v32 = vpack.c.bf16 %v1368_v50, %v1366_v28 }
 0x4ac   : > { %v4400_v5 = vpack.c.bf16 %v1372_v7, %v1370_v60  ;;  %v4402_v52 = vpack.c.bf16 %v1376_v59, %v1374_v38  ;;  %v4412_v4 = vpack.c.bf16 %v1396_v56, %v1394_v0  ;;  %v4414_v8 = vpack.c.bf16 %v1400_v2, %v1398_v9 }
 0x4ad   : > { %v1414_v55 = vpack.c.bf16 %v1356_v15, %v5668_v42  ;;  %v4404_v15 = vpack.c.bf16 %v1380_v16, %v1378_v3  ;;  %v4406_v42 = vpack.c.bf16 %v1384_v43, %v1382_v49  ;;  %v4416_v28 = vpack.c.bf16 %v1404_v27, %v1402_v14 }
 0x4ae   : > { %5669 = vst [vmem:[#allocation26_spill] sm:$0xff] %v4400_v5  ;;  %v1411_v50 = vpack.c.bf16 %v1349_v41, %v1347_v51  ;;  %v1413_v7 = vpack.c.bf16 %v1353_v48, %v1351_v35  ;;  %v1415_v60 = vpack.c.bf16 %v1357_v26, %v1355_v34  ;;  %v1417_v5 = vpack.c.bf16 %v1361_v31, %v1359_v6 }
 0x4af   : > { %v1419_v38 = vpack.c.bf16 %v1365_v22, %v1363_v54  ;;  %v1421_v59 = vpack.c.bf16 %v1369_v61, %v1367_v44  ;;  %v1423_v3 = vpack.c.bf16 %v1373_v29, %v1371_v17  ;;  %v1425_v16 = vpack.c.bf16 %v1377_v62, %v1375_v45 }
 0x4b0   : > { %v1427_v49 = vpack.c.bf16 %v1381_v21, %v1379_v33  ;;  %v4418_v43 = vpack.c.bf16 %v1385_v19, %v1383_v24  ;;  %v4424_v30 = vpack.c.bf16 %v1397_v39, %v1395_v20  ;;  %v4426_v57 = vpack.c.bf16 %v1401_v58, %v1399_v18 }
 0x4b1   : > { %v4428_v0 = vpack.c.bf16 %v1405_v1, %v1403_v13  ;;  %v1443_v56 = vmul.bf16 1069105081, %v1410_v47  ;;  %v1446_v9 = vmul.bf16 1069105081, %v1411_v50  ;;  %v1452_v2 = vmul.bf16 1069105081, %v1413_v7 }
 0x4b2   : > { %v1449_v14 = vmul.bf16 1069105081, %v1412_v46  ;;  %v1458_v27 = vmul.bf16 1069105081, %v1415_v60  ;;  %v1455_v19 = vmul.bf16 1069105081, %v1414_v55 }
 0x4b3   : > { %3186 = vpow.bf16 %v1446_v9  ;;  %v1464_v11 = vmul.bf16 1069105081, %v1417_v5  ;;  %v1461_v12 = vmul.bf16 1069105081, %v1416_v23  ;;  %v1470_v39 = vmul.bf16 1069105081, %v1419_v38 }
 0x4b4   : > { %3188 = vpow.bf16 %v1443_v56  ;;  %v1467_v1 = vmul.bf16 1069105081, %v1418_v10  ;;  %v1476_v40 = vmul.bf16 1069105081, %v1421_v59  ;;  %v1473_v51 = vmul.bf16 1069105081, %v1420_v32 }
 0x4b5   : > { %3190 = vpow.bf16 %v1452_v2  ;;  %v1482_v41 = vmul.bf16 1069105081, %v1423_v3  ;;  %v5670_v34 = vld [vmem:[#allocation26_spill] sm:$0xff]  ;;  %v1488_v6 = vmul.bf16 1069105081, %v1425_v16 }
 0x4b6   : > { %3192 = vpow.bf16 %v1449_v14  ;;  %v1479_v26 = vmul.bf16 1069105081, %v5670_v34  ;;  %v1485_v54 = vmul.bf16 1069105081, %v4402_v52  ;;  %v1494_v22 = vmul.bf16 1069105081, %v1427_v49 }
 0x4b7   : > { %3194 = vpow.bf16 %v1458_v27  ;;  %v1491_v17 = vmul.bf16 1069105081, %v4404_v15  ;;  %v1500_v29 = vmul.bf16 1069105081, %v4418_v43  ;;  %v1497_v33 = vmul.bf16 1069105081, %v4406_v42 }
 0x4b8   : > { %3196 = vpow.bf16 %v1455_v19  ;;  %v1506_v21 = vmul.bf16 1069105081, %v4420_v63  ;;  %v1503_v55 = vmul.bf16 1069105081, %v4408_v37  ;;  %v1512_v23 = vmul.bf16 1069105081, %v4422_v25 }
 0x4b9   : > { %3198 = vpow.bf16 %v1464_v11  ;;  %v1509_v5 = vmul.bf16 1069105081, %v4410_v53  ;;  %v1518_v52 = vmul.bf16 1069105081, %v4424_v30  ;;  %v1515_v37 = vmul.bf16 1069105081, %v4412_v4 }
 0x4ba   : > { %3200 = vpow.bf16 %v1461_v12  ;;  %v1524_v50 = vmul.bf16 1069105081, %v4426_v57  ;;  %v1521_v53 = vmul.bf16 1069105081, %v4414_v8  ;;  %v1530_v38 = vmul.bf16 1069105081, %v4428_v0 }
 0x4bb   : > { %3202 = vpow.bf16 %v1470_v39  ;;  %v1527_v4 = vmul.bf16 1069105081, %v4416_v28  ;;  %v5671_v16 = vld [vmem:[#allocation6_spill] sm:$0xff]  ;;  %v5672_v25 = vld [vmem:[#allocation5_spill] sm:$0xff]  ;;  %v5673_v14 = vld [vmem:[#allocation11_spill] sm:$0xff] }
 0x4bc   : > { %3204 = vpow.bf16 %v1467_v1  ;;  %v1536_v49 = vmul.bf16 1069105081, %v5671_v16  ;;  %v1533_v30 = vmul.bf16 1069105081, %v5672_v25  ;;  %v5674_v27 = vld [vmem:[#allocation12_spill] sm:$0xff]  ;;  %v5677_v39 = vld [vmem:[#allocation7_spill] sm:$0xff] }
 0x4bd   : > { %3206 = vpow.bf16 %v1476_v40  ;;  %v5675_v19 = vadd.bf16 %v5673_v14, %v5674_v27  ;;  %v5676_v12 = vld [vmem:[#allocation8_spill] sm:$0xff] }
 0x4be   : > { %v3187_v58 = vpop.eup %3186  ;;  %3208 = vpow.bf16 %v1473_v51 }
 0x4bf   : > { %v3189_v18 = vpop.eup %3188  ;;  %1549 = vmatprep.subr.bf16.mxu1 %v3187_v58  ;;  %3210 = vpow.bf16 %v1482_v41  ;;  %v1545_v11 = vrot.slane %v5675_v19, 4  ;;  %v1683_v58 = vsel %vm462_vm1, %v5677_v39, 0 }
 0x4c0   : > { %v3191_v13 = vpop.eup %3190  ;;  %1550 = vmatpush1.bf16.msra.mxu1 %v3189_v18  ;;  %3212 = vpow.bf16 %v1479_v26  ;;  %v5678_v18 = vmov 0  }
 0x4c1   : > { %1551 = vmatprep.subr.bf16.mxu1 %v3191_v13  ;;  %v3193_v24 = vpop.eup %3192  ;;  %3214 = vpow.bf16 %v1488_v6  ;;  %v1610_v13 = vpop.trf.xlu0 }
 0x4c2   : > { %v3195_v36 = vpop.eup %3194  ;;  %3216 = vpow.bf16 %v1485_v54 }
 0x4c3   : > { %v3197_v35 = vpop.eup %3196  ;;  %3218 = vpow.bf16 %v1494_v22 }
 0x4c4   : > { %1552 = vmatpush1.bf16.msra.mxu1 %v3193_v24  ;;  %v3199_v48 = vpop.eup %3198  ;;  %3220 = vpow.bf16 %v1491_v17 }
 0x4c5   : > { %1553 = vmatprep.subr.bf16.mxu1 %v3195_v36  ;;  %v3201_v20 = vpop.eup %3200  ;;  %3222 = vpow.bf16 %v1500_v29  ;;  %v1611_v1 = vpop.trf.xlu0  ;;  %v5681_v29 = vld [vmem:[#allocation20_spill] sm:$0xff] }
 0x4c6   : > { %v3203_v31 = vpop.eup %3202  ;;  %3224 = vpow.bf16 %v1497_v33 }
 0x4c7   : > { %v3205_v44 = vpop.eup %3204  ;;  %3226 = vpow.bf16 %v1506_v21 }
 0x4c8   : > { %1554 = vmatpush1.bf16.msra.mxu1 %v3197_v35  ;;  %v3207_v61 = vpop.eup %3206  ;;  %3228 = vpow.bf16 %v1503_v55 }
 0x4c9   : > { %1555 = vmatprep.subr.bf16.mxu1 %v3199_v48  ;;  %v3209_v45 = vpop.eup %3208  ;;  %3230 = vpow.bf16 %v1512_v23  ;;  %v1612_v40 = vpop.trf.xlu0 }
 0x4ca   : > { %v3211_v62 = vpop.eup %3210  ;;  %3232 = vpow.bf16 %v1509_v5  ;;  %v1626_v48 = vpop.trf.xlu1 }
 0x4cb   : > { %v3213_v47 = vpop.eup %3212  ;;  %3234 = vpow.bf16 %v1518_v52 }
 0x4cc   : > { %1556 = vmatpush1.bf16.msra.mxu1 %v3201_v20  ;;  %v3215_v46 = vpop.eup %3214  ;;  %3236 = vpow.bf16 %v1515_v37 }
 0x4cd   : > { %1557 = vmatprep.subr.bf16.mxu1 %v3203_v31  ;;  %v3217_v10 = vpop.eup %3216  ;;  %3238 = vpow.bf16 %v1524_v50  ;;  %v1613_v24 = vpop.trf.xlu0 }
 0x4ce   : > { %v3219_v32 = vpop.eup %3218  ;;  %3240 = vpow.bf16 %v1521_v53  ;;  %v1627_v34 = vpop.trf.xlu1 }
 0x4cf   : > { %v3221_v15 = vpop.eup %3220  ;;  %3242 = vpow.bf16 %v1530_v38 }
 0x4d0   : > { %1558 = vmatpush1.bf16.msra.mxu1 %v3205_v44  ;;  %v3223_v42 = vpop.eup %3222  ;;  %3244 = vpow.bf16 %v1527_v4  ;;  %v5679_v44 = vld [vmem:[#allocation14_spill] sm:$0xff] }
 0x4d1   : > { %1559 = vmatprep.subr.bf16.mxu1 %v3207_v61  ;;  %v3225_v7 = vpop.eup %3224  ;;  %3246 = vpow.bf16 %v1536_v49  ;;  %v1614_v36 = vpop.trf.xlu0  ;;  %v5680_v61 = vadd.bf16 %v5673_v14, %v5679_v44 }
 0x4d2   : > { %v3227_v60 = vpop.eup %3226  ;;  %3248 = vpow.bf16 %v1533_v30  ;;  %v1628_v26 = vpop.trf.xlu1 }
 0x4d3   : > { %v3229_v59 = vpop.eup %3228  ;;  %v2762_v17 = vrot.slane %v5680_v61, 4  ;;  %3250 = vrcp.f32 %v5681_v29 }
 0x4d4   : > { %1560 = vmatpush1.bf16.msra.mxu1 %v3209_v45  ;;  %v3231_v3 = vpop.eup %3230  ;;  %v5682_v45 = vld [vmem:[#allocation21_spill] sm:$0xff] }
 0x4d5   : > { %1561 = vmatprep.subr.bf16.mxu1 %v3211_v62  ;;  %v3233_v43 = vpop.eup %3232  ;;  %v1615_v51 = vpop.trf.xlu0  ;;  %3252 = vrcp.f32 %v5682_v45 }
 0x4d6   : > { %v3235_v63 = vpop.eup %3234  ;;  %v1629_v6 = vpop.trf.xlu1 }
 0x4d7   : > { %v3237_v8 = vpop.eup %3236 }
 0x4d8   : > { %1562 = vmatpush1.bf16.msra.mxu1 %v3213_v47  ;;  %v3239_v57 = vpop.eup %3238 }
 0x4d9   : > { %1563 = vmatprep.subr.bf16.mxu1 %v3215_v46  ;;  %v3241_v0 = vpop.eup %3240  ;;  %v1616_v41 = vpop.trf.xlu0  ;;  %v5683_v46 = vld [vmem:[#allocation9_spill] sm:$0xff] }
 0x4da   : > { %v3243_v28 = vpop.eup %3242  ;;  %v1630_v20 = vpop.trf.xlu1  ;;  %v4492_v55 = vsub.s32 4, %v5683_v46 }
 0x4db   : > { %v3245_v56 = vpop.eup %3244 }
 0x4dc   : > { %1564 = vmatpush1.bf16.msra.mxu1 %v3217_v10  ;;  %v3247_v9 = vpop.eup %3246  ;;  %5684 = vst [vmem:[#allocation27_spill] sm:$0xff] %v4492_v55 }
 0x4dd   : > { %1565 = vmatprep.subr.bf16.mxu1 %v3219_v32  ;;  %v3249_v2 = vpop.eup %3248  ;;  %v1617_v35 = vpop.trf.xlu0 }
 0x4de   : > { %v1631_v31 = vpop.trf.xlu1  ;;  %v3251_v23 = vpop.eup %3250 }
 0x4df   : > { %v3253_v10 = vpop.eup %3252  ;;  %v976_v52 = vrot.slane %v3251_v23, %v4492_v55 }
 0x4e0   : > { %1566 = vmatpush1.bf16.msra.mxu1 %v3221_v15  ;;  %v980_v37 = vrot.slane %v3253_v10, %v4492_v55 }
 0x4e1   : > { %1567 = vmatprep.subr.bf16.mxu1 %v3223_v42  ;;  %v4507_v38 = vmul.f32 %v976_v52, %v5681_v29 }
 0x4e2   : > { %v1632_v54 = vpop.trf.xlu1 }
 0x4e3   : > { %5686 = vst [vmem:[#allocation29_spill] sm:$0xff] %v4507_v38 }
 0x4e4   : > { %1568 = vmatpush1.bf16.msra.mxu1 %v3225_v7 }
 0x4e5   : > { %1569 = vmatprep.subr.bf16.mxu1 %v3227_v60 }
 0x4e6   : > { %v1633_v22 = vpop.trf.xlu1 }
 0x4e8   : > { %1570 = vmatpush1.bf16.msra.mxu1 %v3229_v59 }
 0x4e9   : > { %1571 = vmatprep.subr.bf16.mxu1 %v3231_v3  ;;  %v4512_v3 = vmul.f32 %v980_v37, %v5682_v45 }
 0x4eb   : > { %5688 = vst [vmem:[#allocation31_spill] sm:$0xff] %v4512_v3 }
 0x4ec   : > { %1572 = vmatpush1.bf16.msra.mxu1 %v3233_v43 }
 0x4ed   : > { %1573 = vmatprep.subr.bf16.mxu1 %v3235_v63 }
 0x4f0   : > { %1574 = vmatpush1.bf16.msra.mxu1 %v3237_v8 }
 0x4f1   : > { %1575 = vmatprep.subr.bf16.mxu1 %v3239_v57 }
 0x4f4   : > { %1576 = vmatpush1.bf16.msra.mxu1 %v3241_v0 }
 0x4f5   : > { %1577 = vmatprep.subr.bf16.mxu1 %v3243_v28 }
 0x4f8   : > { %1578 = vmatpush1.bf16.msra.mxu1 %v3245_v56 }
 0x4f9   : > { %1579 = vmatprep.subr.bf16.mxu1 %v3247_v9 }
 0x4fc   : > { %1580 = vmatpush1.bf16.msra.mxu1 %v3249_v2 }
 0x4fd   : > { %3024 = vmatprep.subr.msk.bf16.mxu1 %vm462_vm1, %v5676_v12 }
 0x4ff   : > { %1582 = vmatmul.mubr.bf16.vlgmr.msra.gmra.mrb[88].mxu1 %v1545_v11 }
 0x500   : > { %1689 = vmatpush1.bf16.msra.mxu1 %v1683_v58  ;;  %1720 = vmatprep.mubr.bf16.mxu1 %v5678_v18 }
 0x507   : > { %3025 = vmatmul.mubr.msk.bf16.vlgmr.msra.gmra.mrb[92].mxu1 %vm413_vm2, %v1610_v13 }
 0x508   : > { %1730 = vmatprep.mubr.bf16.mxu1 %v5678_v18 }
 0x50f   : > { %3026 = vmatmul.mubr.msk.bf16.gmra.mrb[96].mxu1 %vm413_vm2, %v1611_v1 }
 0x510   : > { %1740 = vmatprep.mubr.bf16.mxu1 %v5678_v18 }
 0x517   : > { %3027 = vmatmul.mubr.msk.bf16.gmra.mrb[100].mxu1 %vm413_vm2, %v1612_v40 }
 0x518   : > { %1750 = vmatprep.mubr.bf16.mxu1 %v5678_v18 }
 0x51f   : > { %3028 = vmatmul.mubr.msk.bf16.gmra.mrb[104].mxu1 %vm413_vm2, %v1613_v24 }
 0x520   : > { %1760 = vmatprep.mubr.bf16.mxu1 %v5678_v18 }
 0x527   : > { %3029 = vmatmul.mubr.msk.bf16.gmra.mrb[108].mxu1 %vm413_vm2, %v1614_v36 }
 0x528   : > { %1770 = vmatprep.mubr.bf16.mxu1 %v5678_v18 }
 0x52f   : > { %3030 = vmatmul.mubr.msk.bf16.gmra.mrb[112].mxu1 %vm413_vm2, %v1615_v51 }
 0x530   : > { %1780 = vmatprep.mubr.bf16.mxu1 %v5678_v18 }
 0x537   : > { %3031 = vmatmul.mubr.msk.bf16.gmra.mrb[116].mxu1 %vm413_vm2, %v1616_v41 }
 0x538   : > { %1790 = vmatprep.mubr.bf16.mxu1 %v5678_v18 }
 0x53f   : > { %3032 = vmatmul.mubr.msk.bf16.gmra.mrb[120].mxu1 %vm413_vm2, %v1617_v35 }
 0x540   : > { %1800 = vmatprep.mubr.bf16.mxu1 %v5678_v18 }
 0x547   : > { %3033 = vmatmul.mubr.msk.bf16.gmra.mrb[124].mxu1 %vm413_vm2, %v1626_v48 }
 0x548   : > { %1810 = vmatprep.mubr.bf16.mxu1 %v5678_v18 }
 0x54f   : > { %3034 = vmatmul.mubr.msk.bf16.gmra.mrb[128].mxu1 %vm413_vm2, %v1627_v34 }
 0x550   : > { %1820 = vmatprep.mubr.bf16.mxu1 %v5678_v18 }
 0x557   : > { %3035 = vmatmul.mubr.msk.bf16.gmra.mrb[132].mxu1 %vm413_vm2, %v1628_v26 }
 0x558   : > { %1830 = vmatprep.mubr.bf16.mxu1 %v5678_v18 }
 0x55f   : > { %3036 = vmatmul.mubr.msk.bf16.gmra.mrb[136].mxu1 %vm413_vm2, %v1629_v6 }
 0x560   : > { %1840 = vmatprep.mubr.bf16.mxu1 %v5678_v18 }
 0x567   : > { %3037 = vmatmul.mubr.msk.bf16.gmra.mrb[140].mxu1 %vm413_vm2, %v1630_v20 }
 0x568   : > { %1850 = vmatprep.mubr.bf16.mxu1 %v5678_v18 }
 0x56f   : > { %3038 = vmatmul.mubr.msk.bf16.gmra.mrb[144].mxu1 %vm413_vm2, %v1631_v31 }
 0x570   : > { %1860 = vmatprep.mubr.bf16.mxu1 %v5678_v18 }
 0x577   : > { %3039 = vmatmul.mubr.msk.bf16.gmra.mrb[148].mxu1 %vm413_vm2, %v1632_v54 }
 0x578   : > { %1870 = vmatprep.mubr.bf16.mxu1 %v5678_v18 }
 0x57f   : > { %3040 = vmatmul.mubr.msk.bf16.gmra.mrb[152].mxu1 %vm413_vm2, %v1633_v22 }
 0x580   : > { %2797 = vmatprep.mubr.bf16.mxu1 %v2762_v17 }
 0x5d2   : > { %v1583_v62 = vpop.f32.mrb[88].mxu1 }
 0x5d3   : > { %3254 = vrcp.f32 %v1583_v62  ;;  %v1585_v33 = vpop.f32.mrb[89].mxu1 }
 0x5d4   : > { %3256 = vrcp.f32 %v1585_v33  ;;  %v1587_v21 = vpop.f32.mrb[90].mxu1 }
 0x5d5   : > { %v1588_v47 = vpop.f32.mrb[91].mxu1 }
 0x5da   : > { %v4494_v32 = vpop.f32.mrb[92].mxu1 }
 0x5db   : > { %v4496_v5 = vpop.f32.mrb[93].mxu1 }
 0x5dc   : > { %v4499_v15 = vpop.f32.mrb[94].mxu1 }
 0x5dd   : > { %5685 = vst [vmem:[#allocation28_spill] sm:$0xff] %v4499_v15  ;;  %v3255_v42 = vpop.eup %3254  ;;  %v4502_v50 = vpop.f32.mrb[95].mxu1 }
 0x5de   : > { %v3257_v7 = vpop.eup %3256  ;;  %v1595_v60 = vrot.slane %v3255_v42, %v4492_v55 }
 0x5df   : > { %v1599_v53 = vrot.slane %v3257_v7, %v4492_v55 }
 0x5e0   : > { %v4509_v59 = vmul.f32 %v1595_v60, %v1583_v62 }
 0x5e1   : > { %v4514_v4 = vmul.f32 %v1599_v53, %v1585_v33 }
 0x5e2   : > { %5687 = vst [vmem:[#allocation30_spill] sm:$0xff] %v4509_v59  ;;  %v4518_v49 = vpop.f32.mrb[96].mxu1 }
 0x5e3   : > { %5689 = vst [vmem:[#allocation32_spill] sm:$0xff] %v4514_v4  ;;  %5690 = vst [vmem:[#allocation33_spill] sm:$0xff] %v4518_v49  ;;  %v1881_v63 = vmax.f32 %v4494_v32, %v4518_v49  ;;  %v4524_v25 = vpop.f32.mrb[97].mxu1 }
 0x5e4   : > { %v1918_v30 = vmax.f32 %v4496_v5, %v4524_v25  ;;  %v4528_v8 = vpop.f32.mrb[98].mxu1 }
 0x5e5   : > { %5691 = vst [vmem:[#allocation34_spill] sm:$0xff] %v4528_v8  ;;  %v1882_v57 = vmax.f32 %v4499_v15, %v4528_v8  ;;  %v4532_v0 = vpop.f32.mrb[99].mxu1 }
 0x5e6   : > { %v1919_v28 = vmax.f32 %v4502_v50, %v4532_v0 }
 0x5ea   : > { %v4536_v56 = vpop.f32.mrb[100].mxu1 }
 0x5eb   : > { %5692 = vst [vmem:[#allocation35_spill] sm:$0xff] %v4536_v56  ;;  %v1883_v9 = vmax.f32 %v1881_v63, %v4536_v56  ;;  %v4539_v2 = vpop.f32.mrb[101].mxu1 }
 0x5ec   : > { %v1920_v27 = vmax.f32 %v1918_v30, %v4539_v2  ;;  %v4542_v19 = vpop.f32.mrb[102].mxu1 }
 0x5ed   : > { %v1884_v11 = vmax.f32 %v1882_v57, %v4542_v19  ;;  %v4545_v58 = vpop.f32.mrb[103].mxu1 }
 0x5ee   : > { %v1921_v13 = vmax.f32 %v1919_v28, %v4545_v58 }
 0x5f2   : > { %v4548_v1 = vpop.f32.mrb[104].mxu1 }
 0x5f3   : > { %v1885_v40 = vmax.f32 %v1883_v9, %v4548_v1  ;;  %v4551_v24 = vpop.f32.mrb[105].mxu1 }
 0x5f4   : > { %v1922_v36 = vmax.f32 %v1920_v27, %v4551_v24  ;;  %v4554_v51 = vpop.f32.mrb[106].mxu1 }
 0x5f5   : > { %v1886_v41 = vmax.f32 %v1884_v11, %v4554_v51  ;;  %v4557_v35 = vpop.f32.mrb[107].mxu1 }
 0x5f6   : > { %v1923_v48 = vmax.f32 %v1921_v13, %v4557_v35 }
 0x5fa   : > { %v4560_v34 = vpop.f32.mrb[108].mxu1 }
 0x5fb   : > { %v1887_v26 = vmax.f32 %v1885_v40, %v4560_v34  ;;  %v4563_v6 = vpop.f32.mrb[109].mxu1 }
 0x5fc   : > { %v1924_v20 = vmax.f32 %v1922_v36, %v4563_v6  ;;  %v4566_v31 = vpop.f32.mrb[110].mxu1 }
 0x5fd   : > { %v1888_v54 = vmax.f32 %v1886_v41, %v4566_v31  ;;  %v4569_v22 = vpop.f32.mrb[111].mxu1 }
 0x5fe   : > { %v1925_v44 = vmax.f32 %v1923_v48, %v4569_v22 }
 0x602   : > { %v4572_v61 = vpop.f32.mrb[112].mxu1 }
 0x603   : > { %v1889_v17 = vmax.f32 %v1887_v26, %v4572_v61  ;;  %v4575_v29 = vpop.f32.mrb[113].mxu1 }
 0x604   : > { %5693 = vst [vmem:[#allocation36_spill] sm:$0xff] %v4575_v29  ;;  %v1926_v45 = vmax.f32 %v1924_v20, %v4575_v29  ;;  %v4578_v62 = vpop.f32.mrb[114].mxu1 }
 0x605   : > { %v1890_v33 = vmax.f32 %v1888_v54, %v4578_v62  ;;  %v4581_v21 = vpop.f32.mrb[115].mxu1 }
 0x606   : > { %5694 = vst [vmem:[#allocation37_spill] sm:$0xff] %v4581_v21  ;;  %v1927_v47 = vmax.f32 %v1925_v44, %v4581_v21 }
 0x60a   : > { %v4584_v46 = vpop.f32.mrb[116].mxu1 }
 0x60b   : > { %v1891_v23 = vmax.f32 %v1889_v17, %v4584_v46  ;;  %v4587_v10 = vpop.f32.mrb[117].mxu1 }
 0x60c   : > { %5695 = vst [vmem:[#allocation38_spill] sm:$0xff] %v4587_v10  ;;  %v1928_v52 = vmax.f32 %v1926_v45, %v4587_v10  ;;  %v4590_v42 = vpop.f32.mrb[118].mxu1 }
 0x60d   : > { %v1892_v37 = vmax.f32 %v1890_v33, %v4590_v42  ;;  %v4593_v7 = vpop.f32.mrb[119].mxu1 }
 0x60e   : > { %5696 = vst [vmem:[#allocation39_spill] sm:$0xff] %v4593_v7  ;;  %v1929_v60 = vmax.f32 %v1927_v47, %v4593_v7 }
 0x612   : > { %v4596_v53 = vpop.f32.mrb[120].mxu1 }
 0x613   : > { %v1893_v63 = vmax.f32 %v1891_v23, %v4596_v53  ;;  %v4599_v30 = vpop.f32.mrb[121].mxu1 }
 0x614   : > { %5697 = vst [vmem:[#allocation15_spill] sm:$0xff] %v4599_v30  ;;  %v1930_v57 = vmax.f32 %v1928_v52, %v4599_v30  ;;  %v4602_v28 = vpop.f32.mrb[122].mxu1 }
 0x615   : > { %v1894_v9 = vmax.f32 %v1892_v37, %v4602_v28  ;;  %v4605_v27 = vpop.f32.mrb[123].mxu1 }
 0x616   : > { %5698 = vst [vmem:[#allocation16_spill] sm:$0xff] %v4605_v27  ;;  %v1931_v11 = vmax.f32 %v1929_v60, %v4605_v27 }
 0x61a   : > { %v4608_v13 = vpop.f32.mrb[124].mxu1 }
 0x61b   : > { %v1895_v40 = vmax.f32 %v1893_v63, %v4608_v13  ;;  %v4611_v36 = vpop.f32.mrb[125].mxu1 }
 0x61c   : > { %5699 = vst [vmem:[#allocation17_spill] sm:$0xff] %v4611_v36  ;;  %v1932_v41 = vmax.f32 %v1930_v57, %v4611_v36  ;;  %v4614_v48 = vpop.f32.mrb[126].mxu1 }
 0x61d   : > { %v1896_v26 = vmax.f32 %v1894_v9, %v4614_v48  ;;  %v4617_v20 = vpop.f32.mrb[127].mxu1 }
 0x61e   : > { %5700 = vst [vmem:[#allocation18_spill] sm:$0xff] %v4617_v20  ;;  %v1933_v54 = vmax.f32 %v1931_v11, %v4617_v20 }
 0x622   : > { %v4620_v44 = vpop.f32.mrb[128].mxu1 }
 0x623   : > { %v1897_v17 = vmax.f32 %v1895_v40, %v4620_v44  ;;  %v4623_v45 = vpop.f32.mrb[129].mxu1 }
 0x624   : > { %5701 = vst [vmem:[#allocation19_spill] sm:$0xff] %v4623_v45  ;;  %v1934_v33 = vmax.f32 %v1932_v41, %v4623_v45  ;;  %v4626_v47 = vpop.f32.mrb[130].mxu1 }
 0x625   : > { %v1898_v23 = vmax.f32 %v1896_v26, %v4626_v47  ;;  %v4629_v52 = vpop.f32.mrb[131].mxu1 }
 0x626   : > { %5702 = vst [vmem:[#allocation41_spill] sm:$0xff] %v4629_v52  ;;  %v1935_v37 = vmax.f32 %v1933_v54, %v4629_v52 }
 0x62a   : > { %v4632_v60 = vpop.f32.mrb[132].mxu1 }
 0x62b   : > { %v1899_v63 = vmax.f32 %v1897_v17, %v4632_v60  ;;  %v4635_v57 = vpop.f32.mrb[133].mxu1 }
 0x62c   : > { %5703 = vst [vmem:[#allocation40_spill] sm:$0xff] %v4635_v57  ;;  %v1936_v9 = vmax.f32 %v1934_v33, %v4635_v57  ;;  %v4638_v11 = vpop.f32.mrb[134].mxu1 }
 0x62d   : > { %v1900_v40 = vmax.f32 %v1898_v23, %v4638_v11  ;;  %v4641_v41 = vpop.f32.mrb[135].mxu1 }
 0x62e   : > { %5704 = vst [vmem:[#allocation22_spill] sm:$0xff] %v4641_v41  ;;  %v1937_v26 = vmax.f32 %v1935_v37, %v4641_v41 }
 0x632   : > { %v4644_v16 = vpop.f32.mrb[136].mxu1 }
 0x633   : > { %v1901_v54 = vmax.f32 %v1899_v63, %v4644_v16  ;;  %v4647_v43 = vpop.f32.mrb[137].mxu1 }
 0x634   : > { %5705 = vst [vmem:[#allocation23_spill] sm:$0xff] %v4647_v43  ;;  %v1938_v17 = vmax.f32 %v1936_v9, %v4647_v43  ;;  %v4650_v55 = vpop.f32.mrb[138].mxu1 }
 0x635   : > { %v1902_v33 = vmax.f32 %v1900_v40, %v4650_v55  ;;  %v4653_v38 = vpop.f32.mrb[139].mxu1 }
 0x636   : > { %5706 = vst [vmem:[#allocation24_spill] sm:$0xff] %v4653_v38  ;;  %v1939_v23 = vmax.f32 %v1937_v26, %v4653_v38 }
 0x63a   : > { %v4656_v59 = vpop.f32.mrb[140].mxu1 }
 0x63b   : > { %v1903_v37 = vmax.f32 %v1901_v54, %v4656_v59  ;;  %v4659_v3 = vpop.f32.mrb[141].mxu1 }
 0x63c   : > { %5707 = vst [vmem:[#allocation25_spill] sm:$0xff] %v4659_v3  ;;  %v1940_v63 = vmax.f32 %v1938_v17, %v4659_v3  ;;  %v4662_v4 = vpop.f32.mrb[142].mxu1 }
 0x63d   : > { %v1904_v9 = vmax.f32 %v1902_v33, %v4662_v4  ;;  %v4665_v14 = vpop.f32.mrb[143].mxu1 }
 0x63e   : > { %5708 = vst [vmem:[#allocation26_spill] sm:$0xff] %v4665_v14  ;;  %v1941_v40 = vmax.f32 %v1939_v23, %v4665_v14 }
 0x642   : > { %v4668_v18 = vpop.f32.mrb[144].mxu1 }
 0x643   : > { %v1905_v26 = vmax.f32 %v1903_v37, %v4668_v18  ;;  %v4671_v12 = vpop.f32.mrb[145].mxu1 }
 0x644   : > { %5709 = vst [vmem:[#allocation6_spill] sm:$0xff] %v4671_v12  ;;  %v1942_v54 = vmax.f32 %v1940_v63, %v4671_v12  ;;  %v4674_v39 = vpop.f32.mrb[146].mxu1 }
 0x645   : > { %v1906_v17 = vmax.f32 %v1904_v9, %v4674_v39  ;;  %v4677_v3 = vpop.f32.mrb[147].mxu1 }
 0x646   : > { %5710 = vst [vmem:[#allocation5_spill] sm:$0xff] %v4677_v3  ;;  %v1943_v33 = vmax.f32 %v1941_v40, %v4677_v3 }
 0x64a   : > { %v4680_v38 = vpop.f32.mrb[148].mxu1 }
 0x64b   : > { %v1907_v23 = vmax.f32 %v1905_v26, %v4680_v38  ;;  %v4683_v14 = vpop.f32.mrb[149].mxu1 }
 0x64c   : > { %5711 = vst [vmem:[#allocation12_spill] sm:$0xff] %v4683_v14  ;;  %v1944_v37 = vmax.f32 %v1942_v54, %v4683_v14  ;;  %v4686_v43 = vpop.f32.mrb[150].mxu1 }
 0x64d   : > { %v1908_v63 = vmax.f32 %v1906_v17, %v4686_v43  ;;  %v4689_v12 = vpop.f32.mrb[151].mxu1 }
 0x64e   : > { %5712 = vst [vmem:[#allocation14_spill] sm:$0xff] %v4689_v12  ;;  %v1945_v9 = vmax.f32 %v1943_v33, %v4689_v12 }
 0x652   : > { %v1872_v41 = vpop.f32.mrb[152].mxu1 }
 0x653   : > { %v1909_v57 = vmax.f32 %v1907_v23, %v1872_v41  ;;  %v4692_v52 = vpop.f32.mrb[153].mxu1 }
 0x654   : > { %v1946_v40 = vmax.f32 %v1944_v37, %v4692_v52  ;;  %v1876_v3 = vpop.f32.mrb[154].mxu1 }
 0x655   : > { %v1910_v26 = vmax.f32 %v1908_v63, %v1876_v3  ;;  %v1878_v45 = vpop.f32.mrb[155].mxu1 }
 0x656   : > { %v1947_v20 = vmax.f32 %v1945_v9, %v1878_v45 }
 0x657   : > { %v1911_v36 = vmax.f32 %v1909_v57, %v1910_v26  ;;  %v5717_v26 = vld [vmem:[#allocation37_spill] sm:$0xff] }
 0x658   : > { %v1948_v54 = vmax.f32 %v1946_v40, %v1947_v20 }
 0x659   : > { %v1912_v14 = vrot.slane %v1911_v36, 4 }
 0x65a   : > { %v1949_v27 = vrot.slane %v1948_v54, 4 }
 0x65b   : > { %v1913_v30 = vmax.f32 %v1911_v36, %v1912_v14 }
 0x65c   : > { %v1950_v17 = vmax.f32 %v1948_v54, %v1949_v27  ;;  %v5718_v54 = vld [vmem:[#allocation38_spill] sm:$0xff] }
 0x65d   : > { %v1914_v7 = vrot.slane %v1913_v30, 2 }
 0x65e   : > { %v1951_v10 = vrot.slane %v1950_v17, 2 }
 0x65f   : > { %v1915_v21 = vmax.f32 %v1913_v30, %v1914_v7 }
 0x660   : > { %v1952_v33 = vmax.f32 %v1950_v17, %v1951_v10  ;;  %v5719_v17 = vld [vmem:[#allocation39_spill] sm:$0xff] }
 0x661   : > { %v1916_v12 = vrot.slane %v1915_v21, 1 }
 0x662   : > { %v1953_v29 = vrot.slane %v1952_v33, 1 }
 0x663   : > { %v4695_v23 = vmax.f32 %v1915_v21, %v1916_v12 }
 0x664   : > { %v4733_v40 = vmax.f32 %v1952_v33, %v1953_v29 }
 0x665   : > { %5713 = vst [vmem:[#allocation20_spill] sm:$0xff] %v4695_v23  ;;  %v2015_v37 = vsub.f32 %v1872_v41, %v4695_v23  ;;  %v2017_v63 = vsub.f32 %v1876_v3, %v4695_v23  ;;  %v1965_v21 = vsub.f32 %v4542_v19, %v4695_v23  ;;  %v1967_v3 = vsub.f32 %v4548_v1, %v4695_v23 }
 0x666   : > { %v1969_v30 = vsub.f32 %v4554_v51, %v4695_v23  ;;  %v1971_v27 = vsub.f32 %v4560_v34, %v4695_v23  ;;  %v1973_v36 = vsub.f32 %v4566_v31, %v4695_v23  ;;  %v1975_v41 = vsub.f32 %v4572_v61, %v4695_v23 }
 0x667   : > { %v4711_v7 = vpack.c.bf16 %v2017_v63, %v2015_v37  ;;  %v1977_v19 = vsub.f32 %v4578_v62, %v4695_v23  ;;  %v1979_v9 = vsub.f32 %v4584_v46, %v4695_v23  ;;  %v1981_v1 = vsub.f32 %v4590_v42, %v4695_v23 }
 0x668   : > { %v1983_v51 = vsub.f32 %v4596_v53, %v4695_v23  ;;  %v1985_v34 = vsub.f32 %v4602_v28, %v4695_v23  ;;  %v1987_v31 = vsub.f32 %v4608_v13, %v4695_v23  ;;  %v1989_v61 = vsub.f32 %v4614_v48, %v4695_v23 }
 0x669   : > { %5714 = vst [vmem:[#allocation21_spill] sm:$0xff] %v4711_v7  ;;  %v1991_v62 = vsub.f32 %v4620_v44, %v4695_v23  ;;  %v1993_v46 = vsub.f32 %v4626_v47, %v4695_v23  ;;  %v1995_v42 = vsub.f32 %v4632_v60, %v4695_v23  ;;  %v1997_v53 = vsub.f32 %v4638_v11, %v4695_v23 }
 0x66a   : > { %v1999_v29 = vsub.f32 %v4644_v16, %v4695_v23  ;;  %v2001_v28 = vsub.f32 %v4650_v55, %v4695_v23  ;;  %v2003_v13 = vsub.f32 %v4656_v59, %v4695_v23  ;;  %v2005_v48 = vsub.f32 %v4662_v4, %v4695_v23 }
 0x66b   : > { %v2007_v44 = vsub.f32 %v4668_v18, %v4695_v23  ;;  %v2009_v47 = vsub.f32 %v4674_v39, %v4695_v23  ;;  %v2011_v60 = vsub.f32 %v4680_v38, %v4695_v23  ;;  %v2013_v16 = vsub.f32 %v4686_v43, %v4695_v23 }
 0x66c   : > { %v2016_v55 = vsub.f32 %v4692_v52, %v4733_v40  ;;  %v2018_v59 = vsub.f32 %v1878_v45, %v4733_v40  ;;  %v1956_v4 = vsub.f32 %v4496_v5, %v4733_v40  ;;  %v1958_v18 = vsub.f32 %v4502_v50, %v4733_v40 }
 0x66d   : > { %v1960_v39 = vsub.f32 %v4524_v25, %v4733_v40  ;;  %v1962_v38 = vsub.f32 %v4532_v0, %v4733_v40  ;;  %v1964_v43 = vsub.f32 %v4539_v2, %v4733_v40  ;;  %v1966_v52 = vsub.f32 %v4545_v58, %v4733_v40  ;;  %v5716_v0 = vld [vmem:[#allocation36_spill] sm:$0xff] }
 0x66e   : > { %v1968_v45 = vsub.f32 %v4551_v24, %v4733_v40  ;;  %v4780_v11 = vpack.c.bf16 %v2018_v59, %v2016_v55  ;;  %v1970_v5 = vsub.f32 %v4557_v35, %v4733_v40  ;;  %v1972_v50 = vsub.f32 %v4563_v6, %v4733_v40  ;;  %v5720_v35 = vld [vmem:[#allocation15_spill] sm:$0xff]  ;;  %v5721_v6 = vld [vmem:[#allocation16_spill] sm:$0xff]  ;;  %v5723_v59 = vld [vmem:[#allocation18_spill] sm:$0xff] }
 0x66f   : > { %v1974_v25 = vsub.f32 %v4569_v22, %v4733_v40  ;;  %v1976_v2 = vsub.f32 %v5716_v0, %v4733_v40  ;;  %v1978_v58 = vsub.f32 %v5717_v26, %v4733_v40  ;;  %v1980_v24 = vsub.f32 %v5718_v54, %v4733_v40  ;;  %v5722_v22 = vld [vmem:[#allocation17_spill] sm:$0xff]  ;;  %v5724_v26 = vld [vmem:[#allocation19_spill] sm:$0xff] }
 0x670   : > { %5715 = vst [vmem:[#allocation9_spill] sm:$0xff] %v4780_v11  ;;  %v1982_v33 = vsub.f32 %v5719_v17, %v4733_v40  ;;  %v1984_v37 = vsub.f32 %v5720_v35, %v4733_v40  ;;  %v1986_v63 = vsub.f32 %v5721_v6, %v4733_v40  ;;  %v1988_v55 = vsub.f32 %v5722_v22, %v4733_v40  ;;  %v5725_v54 = vld [vmem:[#allocation41_spill] sm:$0xff]  ;;  %v5726_v17 = vld [vmem:[#allocation40_spill] sm:$0xff]  ;;  %v5727_v35 = vld [vmem:[#allocation22_spill] sm:$0xff] }
 0x671   : > { %v1990_v0 = vsub.f32 %v5723_v59, %v4733_v40  ;;  %v1992_v12 = vsub.f32 %v5724_v26, %v4733_v40  ;;  %v1994_v10 = vsub.f32 %v5725_v54, %v4733_v40  ;;  %v1996_v14 = vsub.f32 %v5726_v17, %v4733_v40  ;;  %v5728_v6 = vld [vmem:[#allocation23_spill] sm:$0xff]  ;;  %v5729_v22 = vld [vmem:[#allocation24_spill] sm:$0xff]  ;;  %v5730_v59 = vld [vmem:[#allocation25_spill] sm:$0xff] }
 0x672   : > { %v1998_v20 = vsub.f32 %v5727_v35, %v4733_v40  ;;  %v2000_v57 = vsub.f32 %v5728_v6, %v4733_v40  ;;  %v2002_v7 = vsub.f32 %v5729_v22, %v4733_v40  ;;  %v2004_v11 = vsub.f32 %v5730_v59, %v4733_v40  ;;  %v5731_v26 = vld [vmem:[#allocation26_spill] sm:$0xff]  ;;  %v5733_v17 = vld [vmem:[#allocation5_spill] sm:$0xff]  ;;  %v5734_v35 = vld [vmem:[#allocation12_spill] sm:$0xff] }
 0x673   : > { %v2006_v56 = vsub.f32 %v5731_v26, %v4733_v40  ;;  %v5732_v54 = vld [vmem:[#allocation6_spill] sm:$0xff]  ;;  %v2010_v49 = vsub.f32 %v5733_v17, %v4733_v40  ;;  %v2012_v15 = vsub.f32 %v5734_v35, %v4733_v40  ;;  %v5736_v22 = vld [vmem:[#allocation20_spill] sm:$0xff]  ;;  %v5740_v35 = vld [vmem:[#allocation33_spill] sm:$0xff] }
 0x674   : > { %v2008_v8 = vsub.f32 %v5732_v54, %v4733_v40  ;;  %v5735_v6 = vld [vmem:[#allocation14_spill] sm:$0xff]  ;;  %v5737_v59 = vsub.f32 %v4494_v32, %v5736_v22  ;;  %v5738_v26 = vld [vmem:[#allocation28_spill] sm:$0xff] }
 0x675   : > { %v2014_v23 = vsub.f32 %v5735_v6, %v4733_v40  ;;  %v5739_v54 = vsub.f32 %v5738_v26, %v5736_v22  ;;  %v5741_v6 = vsub.f32 %v5740_v35, %v5736_v22  ;;  %v5742_v40 = vld [vmem:[#allocation34_spill] sm:$0xff] }
 0x676   : > { %v5743_v32 = vsub.f32 %v5742_v40, %v5736_v22  ;;  %v2025_v40 = vpack.c.bf16 %v1969_v30, %v1967_v3  ;;  %v4851_v3 = vpack.c.bf16 %v1997_v53, %v1995_v42  ;;  %v4853_v30 = vpack.c.bf16 %v2001_v28, %v1999_v29 }
 0x677   : > { %v2019_v17 = vpack.c.bf16 %v5739_v54, %v5737_v59  ;;  %v5744_v54 = vld [vmem:[#allocation35_spill] sm:$0xff]  ;;  %v4863_v42 = vpack.c.bf16 %v1998_v20, %v1996_v14  ;;  %v4865_v53 = vpack.c.bf16 %v2002_v7, %v2000_v57  ;;  %v4867_v29 = vpack.c.bf16 %v2006_v56, %v2004_v11 }
 0x678   : > { %v2021_v26 = vpack.c.bf16 %v5743_v32, %v5741_v6  ;;  %v5745_v59 = vsub.f32 %v5744_v54, %v5736_v22  ;;  %v2027_v6 = vpack.c.bf16 %v1973_v36, %v1971_v27  ;;  %v2029_v32 = vpack.c.bf16 %v1977_v19, %v1975_v41 }
 0x679   : > { %v4843_v22 = vpack.c.bf16 %v1981_v1, %v1979_v9  ;;  %v4845_v54 = vpack.c.bf16 %v1985_v34, %v1983_v51  ;;  %v4855_v27 = vpack.c.bf16 %v2005_v48, %v2003_v13  ;;  %v4857_v36 = vpack.c.bf16 %v2009_v47, %v2007_v44 }
 0x67a   : > { %v2023_v35 = vpack.c.bf16 %v1965_v21, %v5745_v59  ;;  %v4847_v21 = vpack.c.bf16 %v1989_v61, %v1987_v31  ;;  %v4849_v59 = vpack.c.bf16 %v1993_v46, %v1991_v62  ;;  %v4859_v19 = vpack.c.bf16 %v2013_v16, %v2011_v60 }
 0x67b   : > { %5746 = vst [vmem:[#allocation36_spill] sm:$0xff] %v4843_v22  ;;  %v2020_v41 = vpack.c.bf16 %v1958_v18, %v1956_v4  ;;  %v2022_v1 = vpack.c.bf16 %v1962_v38, %v1960_v39  ;;  %v2024_v9 = vpack.c.bf16 %v1966_v52, %v1964_v43  ;;  %v2026_v22 = vpack.c.bf16 %v1970_v5, %v1968_v45 }
 0x67c   : > { %v2028_v51 = vpack.c.bf16 %v1974_v25, %v1972_v50  ;;  %v2030_v34 = vpack.c.bf16 %v1978_v58, %v1976_v2  ;;  %v2032_v31 = vpack.c.bf16 %v1982_v33, %v1980_v24  ;;  %v2034_v61 = vpack.c.bf16 %v1986_v63, %v1984_v37 }
 0x67d   : > { %v2036_v62 = vpack.c.bf16 %v1990_v0, %v1988_v55  ;;  %v4861_v46 = vpack.c.bf16 %v1994_v10, %v1992_v12  ;;  %v4869_v28 = vpack.c.bf16 %v2010_v49, %v2008_v8  ;;  %v4871_v13 = vpack.c.bf16 %v2014_v23, %v2012_v15 }
 0x67e   : > { %v2052_v48 = vmul.bf16 1069105081, %v2019_v17  ;;  %v2055_v44 = vmul.bf16 1069105081, %v2020_v41  ;;  %v2061_v47 = vmul.bf16 1069105081, %v2022_v1 }
 0x67f   : > { %v2058_v60 = vmul.bf16 1069105081, %v2021_v26  ;;  %v2067_v16 = vmul.bf16 1069105081, %v2024_v9  ;;  %v2064_v10 = vmul.bf16 1069105081, %v2023_v35 }
 0x680   : > { %3258 = vpow.bf16 %v2055_v44  ;;  %v2073_v20 = vmul.bf16 1069105081, %v2026_v22  ;;  %v2070_v57 = vmul.bf16 1069105081, %v2025_v40  ;;  %v2079_v56 = vmul.bf16 1069105081, %v2028_v51 }
 0x681   : > { %3260 = vpow.bf16 %v2052_v48  ;;  %v2076_v23 = vmul.bf16 1069105081, %v2027_v6  ;;  %v2085_v14 = vmul.bf16 1069105081, %v2030_v34  ;;  %v2082_v4 = vmul.bf16 1069105081, %v2029_v32 }
 0x682   : > { %3262 = vpow.bf16 %v2061_v47  ;;  %v2091_v18 = vmul.bf16 1069105081, %v2032_v31  ;;  %v5747_v43 = vld [vmem:[#allocation36_spill] sm:$0xff]  ;;  %v2097_v45 = vmul.bf16 1069105081, %v2034_v61  ;;  %v5748_v61 = vld [vmem:[#allocation9_spill] sm:$0xff] }
 0x683   : > { %3264 = vpow.bf16 %v2058_v60  ;;  %v2088_v52 = vmul.bf16 1069105081, %v5747_v43  ;;  %v2094_v50 = vmul.bf16 1069105081, %v4845_v54  ;;  %v2103_v25 = vmul.bf16 1069105081, %v2036_v62  ;;  %v2232_v43 = vpop.trf.xlu1 }
 0x684   : > { %3266 = vpow.bf16 %v2067_v16  ;;  %v2100_v24 = vmul.bf16 1069105081, %v4847_v21  ;;  %v2109_v33 = vmul.bf16 1069105081, %v4861_v46  ;;  %v2106_v55 = vmul.bf16 1069105081, %v4849_v59 }
 0x685   : > { %3268 = vpow.bf16 %v2064_v10  ;;  %v2115_v0 = vmul.bf16 1069105081, %v4863_v42  ;;  %v2112_v35 = vmul.bf16 1069105081, %v4851_v3  ;;  %v2121_v40 = vmul.bf16 1069105081, %v4865_v53 }
 0x686   : > { %3270 = vpow.bf16 %v2073_v20  ;;  %v2118_v22 = vmul.bf16 1069105081, %v4853_v30  ;;  %v2127_v54 = vmul.bf16 1069105081, %v4867_v29  ;;  %v2124_v3 = vmul.bf16 1069105081, %v4855_v27 }
 0x687   : > { %3272 = vpow.bf16 %v2070_v57  ;;  %v2133_v41 = vmul.bf16 1069105081, %v4869_v28  ;;  %v2130_v30 = vmul.bf16 1069105081, %v4857_v36  ;;  %v2139_v51 = vmul.bf16 1069105081, %v4871_v13 }
 0x688   : > { %3274 = vpow.bf16 %v2079_v56  ;;  %v2136_v27 = vmul.bf16 1069105081, %v4859_v19  ;;  %v2145_v62 = vmul.bf16 1069105081, %v5748_v61  ;;  %v5749_v53 = vld [vmem:[#allocation21_spill] sm:$0xff]  ;;  %v5750_v60 = vld [vmem:[#allocation7_spill] sm:$0xff] }
 0x689   : > { %3276 = vpow.bf16 %v2076_v23  ;;  %v2142_v29 = vmul.bf16 1069105081, %v5749_v53  ;;  %v2242_v16 = vrot.slane %v5750_v60, 4  ;;  %v5751_v10 = vld [vmem:[#allocation8_spill] sm:$0xff]  ;;  %v5752_v57 = vld [vmem:[#allocation10_spill] sm:$0xff]  ;;  %v5753_v56 = vld [vmem:[#allocation13_spill] sm:$0xff]  ;;  %v2216_v23 = vpop.trf.xlu0 }
 0x68a   : > { %3278 = vpow.bf16 %v2085_v14  ;;  %v2243_v20 = vrot.slane %v5751_v10, 4 }
 0x68b   : > { %v3259_v49 = vpop.eup %3258  ;;  %3280 = vpow.bf16 %v2082_v4 }
 0x68c   : > { %v3261_v8 = vpop.eup %3260  ;;  %2149 = vmatprep.subr.bf16.mxu0 %v3259_v49  ;;  %3282 = vpow.bf16 %v2091_v18  ;;  %v5754_v49 = vadd.bf16 %v5752_v57, %v5753_v56 }
 0x68d   : > { %v3263_v15 = vpop.eup %3262  ;;  %2150 = vmatpush1.bf16.msra.mxu0 %v3261_v8  ;;  %3284 = vpow.bf16 %v2088_v52  ;;  %v2293_v8 = vsel %vm462_vm1, %v2242_v16, 0  ;;  %v2217_v14 = vpop.trf.xlu0 }
 0x68e   : > { %2151 = vmatprep.subr.bf16.mxu0 %v3263_v15  ;;  %v3265_v12 = vpop.eup %3264  ;;  %3286 = vpow.bf16 %v2097_v45  ;;  %v5755_v15 = vmov 0   ;;  %v2233_v52 = vpop.trf.xlu1 }
 0x68f   : > { %v3267_v7 = vpop.eup %3266  ;;  %3288 = vpow.bf16 %v2094_v50 }
 0x690   : > { %v3269_v39 = vpop.eup %3268  ;;  %3290 = vpow.bf16 %v2103_v25 }
 0x691   : > { %2152 = vmatpush1.bf16.msra.mxu0 %v3265_v12  ;;  %v3271_v38 = vpop.eup %3270  ;;  %3292 = vpow.bf16 %v2100_v24  ;;  %v2218_v12 = vpop.trf.xlu0 }
 0x692   : > { %2153 = vmatprep.subr.bf16.mxu0 %v3267_v7  ;;  %v3273_v11 = vpop.eup %3272  ;;  %3294 = vpow.bf16 %v2109_v33  ;;  %v2234_v45 = vpop.trf.xlu1 }
 0x693   : > { %v3275_v5 = vpop.eup %3274  ;;  %3296 = vpow.bf16 %v2106_v55 }
 0x694   : > { %v3277_v2 = vpop.eup %3276  ;;  %3298 = vpow.bf16 %v2115_v0 }
 0x695   : > { %2154 = vmatpush1.bf16.msra.mxu0 %v3269_v39  ;;  %v3279_v58 = vpop.eup %3278  ;;  %3300 = vpow.bf16 %v2112_v35  ;;  %v2219_v7 = vpop.trf.xlu0 }
 0x696   : > { %2155 = vmatprep.subr.bf16.mxu0 %v3271_v38  ;;  %v3281_v37 = vpop.eup %3280  ;;  %3302 = vpow.bf16 %v2121_v40 }
 0x697   : > { %v3283_v63 = vpop.eup %3282  ;;  %3304 = vpow.bf16 %v2118_v22 }
 0x698   : > { %v3285_v17 = vpop.eup %3284  ;;  %3306 = vpow.bf16 %v2127_v54 }
 0x699   : > { %2156 = vmatpush1.bf16.msra.mxu0 %v3273_v11  ;;  %v3287_v26 = vpop.eup %3286  ;;  %3308 = vpow.bf16 %v2124_v3  ;;  %v2220_v4 = vpop.trf.xlu0 }
 0x69a   : > { %2157 = vmatprep.subr.bf16.mxu0 %v3275_v5  ;;  %v3289_v6 = vpop.eup %3288  ;;  %3310 = vpow.bf16 %v2133_v41  ;;  %v2235_v11 = vpop.trf.xlu1 }
 0x69b   : > { %v3291_v32 = vpop.eup %3290  ;;  %3312 = vpow.bf16 %v2130_v30 }
 0x69c   : > { %v3293_v21 = vpop.eup %3292  ;;  %3314 = vpow.bf16 %v2139_v51 }
 0x69d   : > { %2158 = vmatpush1.bf16.msra.mxu0 %v3277_v2  ;;  %v3295_v59 = vpop.eup %3294  ;;  %3316 = vpow.bf16 %v2136_v27  ;;  %v2221_v18 = vpop.trf.xlu0 }
 0x69e   : > { %2159 = vmatprep.subr.bf16.mxu0 %v3279_v58  ;;  %v3297_v1 = vpop.eup %3296  ;;  %3318 = vpow.bf16 %v2145_v62  ;;  %v2236_v5 = vpop.trf.xlu1 }
 0x69f   : > { %v3299_v9 = vpop.eup %3298  ;;  %3320 = vpow.bf16 %v2142_v29 }
 0x6a0   : > { %v3301_v34 = vpop.eup %3300 }
 0x6a1   : > { %2160 = vmatpush1.bf16.msra.mxu0 %v3281_v37  ;;  %v3303_v31 = vpop.eup %3302  ;;  %v2222_v39 = vpop.trf.xlu0 }
 0x6a2   : > { %2161 = vmatprep.subr.bf16.mxu0 %v3283_v63  ;;  %v3305_v46 = vpop.eup %3304  ;;  %v2237_v50 = vpop.trf.xlu1 }
 0x6a3   : > { %v3307_v42 = vpop.eup %3306 }
 0x6a4   : > { %v3309_v36 = vpop.eup %3308 }
 0x6a5   : > { %2162 = vmatpush1.bf16.msra.mxu0 %v3285_v17  ;;  %v3311_v28 = vpop.eup %3310  ;;  %v2223_v38 = vpop.trf.xlu0 }
 0x6a6   : > { %2163 = vmatprep.subr.bf16.mxu0 %v3287_v26  ;;  %v3313_v13 = vpop.eup %3312  ;;  %v2238_v25 = vpop.trf.xlu1 }
 0x6a7   : > { %v3315_v19 = vpop.eup %3314 }
 0x6a8   : > { %v3317_v48 = vpop.eup %3316 }
 0x6a9   : > { %2164 = vmatpush1.bf16.msra.mxu0 %v3289_v6  ;;  %v3319_v44 = vpop.eup %3318 }
 0x6aa   : > { %2165 = vmatprep.subr.bf16.mxu0 %v3291_v32  ;;  %v3321_v47 = vpop.eup %3320  ;;  %v2239_v2 = vpop.trf.xlu1 }
 0x6ad   : > { %2166 = vmatpush1.bf16.msra.mxu0 %v3293_v21 }
 0x6ae   : > { %2167 = vmatprep.subr.bf16.mxu0 %v3295_v59 }
 0x6b1   : > { %2168 = vmatpush1.bf16.msra.mxu0 %v3297_v1 }
 0x6b2   : > { %2169 = vmatprep.subr.bf16.mxu0 %v3299_v9 }
 0x6b5   : > { %2170 = vmatpush1.bf16.msra.mxu0 %v3301_v34 }
 0x6b6   : > { %2171 = vmatprep.subr.bf16.mxu0 %v3303_v31 }
 0x6b9   : > { %2172 = vmatpush1.bf16.msra.mxu0 %v3305_v46 }
 0x6ba   : > { %2173 = vmatprep.subr.bf16.mxu0 %v3307_v42 }
 0x6bd   : > { %2174 = vmatpush1.bf16.msra.mxu0 %v3309_v36 }
 0x6be   : > { %2175 = vmatprep.subr.bf16.mxu0 %v3311_v28 }
 0x6c1   : > { %2176 = vmatpush1.bf16.msra.mxu0 %v3313_v13 }
 0x6c2   : > { %2177 = vmatprep.subr.bf16.mxu0 %v3315_v19 }
 0x6c5   : > { %2178 = vmatpush1.bf16.msra.mxu0 %v3317_v48 }
 0x6c6   : > { %2179 = vmatprep.subr.bf16.mxu0 %v3319_v44 }
 0x6c9   : > { %2180 = vmatpush1.bf16.msra.mxu0 %v3321_v47 }
 0x6ca   : > { %3041 = vmatprep.subr.msk.bf16.mxu0 %vm462_vm1, %v2243_v20 }
 0x6cc   : > { %2182 = vmatmul.mubr.bf16.vlgmr.msra.gmra.mrb[68].mxu0 %v5754_v49 }
 0x6cd   : > { %2299 = vmatpush1.bf16.msra.mxu0 %v2293_v8  ;;  %2330 = vmatprep.mubr.bf16.mxu0 %v5755_v15 }
 0x6d4   : > { %3042 = vmatmul.mubr.msk.bf16.vlgmr.msra.gmra.mrb[72].mxu0 %vm413_vm2, %v2216_v23 }
 0x6d5   : > { %2340 = vmatprep.mubr.bf16.mxu0 %v5755_v15 }
 0x6dc   : > { %3043 = vmatmul.mubr.msk.bf16.gmra.mrb[76].mxu0 %vm413_vm2, %v2217_v14 }
 0x6dd   : > { %2350 = vmatprep.mubr.bf16.mxu0 %v5755_v15 }
 0x6e4   : > { %3044 = vmatmul.mubr.msk.bf16.gmra.mrb[80].mxu0 %vm413_vm2, %v2218_v12 }
 0x6e5   : > { %2360 = vmatprep.mubr.bf16.mxu0 %v5755_v15 }
 0x6ec   : > { %3045 = vmatmul.mubr.msk.bf16.gmra.mrb[84].mxu0 %vm413_vm2, %v2219_v7 }
 0x6ed   : > { %2370 = vmatprep.mubr.bf16.mxu0 %v5755_v15 }
 0x6f4   : > { %3046 = vmatmul.mubr.msk.bf16.gmra.mrb[88].mxu0 %vm413_vm2, %v2220_v4 }
 0x6f5   : > { %2380 = vmatprep.mubr.bf16.mxu0 %v5755_v15 }
 0x6fc   : > { %3047 = vmatmul.mubr.msk.bf16.gmra.mrb[92].mxu0 %vm413_vm2, %v2221_v18 }
 0x6fd   : > { %2390 = vmatprep.mubr.bf16.mxu0 %v5755_v15 }
 0x704   : > { %3048 = vmatmul.mubr.msk.bf16.gmra.mrb[96].mxu0 %vm413_vm2, %v2222_v39 }
 0x705   : > { %2400 = vmatprep.mubr.bf16.mxu0 %v5755_v15 }
 0x70c   : > { %3049 = vmatmul.mubr.msk.bf16.gmra.mrb[100].mxu0 %vm413_vm2, %v2223_v38 }
 0x70d   : > { %2410 = vmatprep.mubr.bf16.mxu0 %v5755_v15 }
 0x714   : > { %3050 = vmatmul.mubr.msk.bf16.gmra.mrb[104].mxu0 %vm413_vm2, %v2232_v43 }
 0x715   : > { %2420 = vmatprep.mubr.bf16.mxu0 %v5755_v15 }
 0x71c   : > { %3051 = vmatmul.mubr.msk.bf16.gmra.mrb[108].mxu0 %vm413_vm2, %v2233_v52 }
 0x71d   : > { %2430 = vmatprep.mubr.bf16.mxu0 %v5755_v15 }
 0x724   : > { %3052 = vmatmul.mubr.msk.bf16.gmra.mrb[112].mxu0 %vm413_vm2, %v2234_v45 }
 0x725   : > { %2440 = vmatprep.mubr.bf16.mxu0 %v5755_v15 }
 0x72c   : > { %3053 = vmatmul.mubr.msk.bf16.gmra.mrb[116].mxu0 %vm413_vm2, %v2235_v11 }
 0x72d   : > { %2450 = vmatprep.mubr.bf16.mxu0 %v5755_v15 }
 0x734   : > { %3054 = vmatmul.mubr.msk.bf16.gmra.mrb[120].mxu0 %vm413_vm2, %v2236_v5 }
 0x735   : > { %2460 = vmatprep.mubr.bf16.mxu0 %v5755_v15 }
 0x73c   : > { %3055 = vmatmul.mubr.msk.bf16.gmra.mrb[124].mxu0 %vm413_vm2, %v2237_v50 }
 0x73d   : > { %2470 = vmatprep.mubr.bf16.mxu0 %v5755_v15 }
 0x744   : > { %3056 = vmatmul.mubr.msk.bf16.gmra.mrb[128].mxu0 %vm413_vm2, %v2238_v25 }
 0x745   : > { %2480 = vmatprep.mubr.bf16.mxu0 %v5755_v15 }
 0x74c   : > { %3057 = vmatmul.mubr.msk.bf16.gmra.mrb[132].mxu0 %vm413_vm2, %v2239_v2 }
 0x79f   : > { %v4929_v58 = vpop.f32.mrb[68].mxu0 }
 0x7a0   : > { %5756 = vst [vmem:[#allocation37_spill] sm:$0xff] %v4929_v58  ;;  %v4931_v24 = vpop.f32.mrb[69].mxu0 }
 0x7a1   : > { %5757 = vst [vmem:[#allocation38_spill] sm:$0xff] %v4931_v24  ;;  %v2187_v33 = vpop.f32.mrb[70].mxu0 }
 0x7a2   : > { %v2188_v37 = vpop.f32.mrb[71].mxu0 }
 0x7a7   : > { %v4933_v63 = vpop.f32.mrb[72].mxu0 }
 0x7a8   : > { %v4935_v55 = vpop.f32.mrb[73].mxu0 }
 0x7a9   : > { %v4937_v0 = vpop.f32.mrb[74].mxu0 }
 0x7aa   : > { %5758 = vst [vmem:[#allocation39_spill] sm:$0xff] %v4937_v0  ;;  %v4939_v17 = vpop.f32.mrb[75].mxu0 }
 0x7af   : > { %v4941_v26 = vpop.f32.mrb[76].mxu0 }
 0x7b0   : > { %5759 = vst [vmem:[#allocation15_spill] sm:$0xff] %v4941_v26  ;;  %v2491_v35 = vmax.f32 %v4933_v63, %v4941_v26  ;;  %v4945_v40 = vpop.f32.mrb[77].mxu0 }
 0x7b1   : > { %v2528_v6 = vmax.f32 %v4935_v55, %v4945_v40  ;;  %v4949_v32 = vpop.f32.mrb[78].mxu0 }
 0x7b2   : > { %5760 = vst [vmem:[#allocation16_spill] sm:$0xff] %v4949_v32  ;;  %v2492_v22 = vmax.f32 %v4937_v0, %v4949_v32  ;;  %v4953_v54 = vpop.f32.mrb[79].mxu0 }
 0x7b3   : > { %v2529_v21 = vmax.f32 %v4939_v17, %v4953_v54 }
 0x7b7   : > { %v4957_v59 = vpop.f32.mrb[80].mxu0 }
 0x7b8   : > { %5761 = vst [vmem:[#allocation17_spill] sm:$0xff] %v4957_v59  ;;  %v2493_v3 = vmax.f32 %v2491_v35, %v4957_v59  ;;  %v4960_v41 = vpop.f32.mrb[81].mxu0 }
 0x7b9   : > { %v2530_v1 = vmax.f32 %v2528_v6, %v4960_v41  ;;  %v4963_v9 = vpop.f32.mrb[82].mxu0 }
 0x7ba   : > { %v2494_v30 = vmax.f32 %v2492_v22, %v4963_v9  ;;  %v4966_v51 = vpop.f32.mrb[83].mxu0 }
 0x7bb   : > { %v2531_v34 = vmax.f32 %v2529_v21, %v4966_v51 }
 0x7bf   : > { %v4969_v31 = vpop.f32.mrb[84].mxu0 }
 0x7c0   : > { %v2495_v27 = vmax.f32 %v2493_v3, %v4969_v31  ;;  %v4972_v61 = vpop.f32.mrb[85].mxu0 }
 0x7c1   : > { %v2532_v62 = vmax.f32 %v2530_v1, %v4972_v61  ;;  %v4975_v46 = vpop.f32.mrb[86].mxu0 }
 0x7c2   : > { %v2496_v42 = vmax.f32 %v2494_v30, %v4975_v46  ;;  %v4978_v53 = vpop.f32.mrb[87].mxu0 }
 0x7c3   : > { %v2533_v29 = vmax.f32 %v2531_v34, %v4978_v53 }
 0x7c7   : > { %v4981_v36 = vpop.f32.mrb[88].mxu0 }
 0x7c8   : > { %v2497_v28 = vmax.f32 %v2495_v27, %v4981_v36  ;;  %v4984_v13 = vpop.f32.mrb[89].mxu0 }
 0x7c9   : > { %v2534_v19 = vmax.f32 %v2532_v62, %v4984_v13  ;;  %v4987_v48 = vpop.f32.mrb[90].mxu0 }
 0x7ca   : > { %v2498_v44 = vmax.f32 %v2496_v42, %v4987_v48  ;;  %v4990_v47 = vpop.f32.mrb[91].mxu0 }
 0x7cb   : > { %v2535_v60 = vmax.f32 %v2533_v29, %v4990_v47 }
 0x7cf   : > { %v4993_v16 = vpop.f32.mrb[92].mxu0 }
 0x7d0   : > { %v2499_v10 = vmax.f32 %v2497_v28, %v4993_v16  ;;  %v4996_v20 = vpop.f32.mrb[93].mxu0 }
 0x7d1   : > { %5762 = vst [vmem:[#allocation18_spill] sm:$0xff] %v4996_v20  ;;  %v2536_v57 = vmax.f32 %v2534_v19, %v4996_v20  ;;  %v4999_v49 = vpop.f32.mrb[94].mxu0 }
 0x7d2   : > { %v2500_v8 = vmax.f32 %v2498_v44, %v4999_v49  ;;  %v5002_v23 = vpop.f32.mrb[95].mxu0 }
 0x7d3   : > { %5763 = vst [vmem:[#allocation19_spill] sm:$0xff] %v5002_v23  ;;  %v2537_v14 = vmax.f32 %v2535_v60, %v5002_v23 }
 0x7d7   : > { %v5005_v12 = vpop.f32.mrb[96].mxu0 }
 0x7d8   : > { %v2501_v7 = vmax.f32 %v2499_v10, %v5005_v12  ;;  %v5008_v4 = vpop.f32.mrb[97].mxu0 }
 0x7d9   : > { %5764 = vst [vmem:[#allocation41_spill] sm:$0xff] %v5008_v4  ;;  %v2538_v18 = vmax.f32 %v2536_v57, %v5008_v4  ;;  %v5011_v39 = vpop.f32.mrb[98].mxu0 }
 0x7da   : > { %v2502_v38 = vmax.f32 %v2500_v8, %v5011_v39  ;;  %v5014_v43 = vpop.f32.mrb[99].mxu0 }
 0x7db   : > { %5765 = vst [vmem:[#allocation40_spill] sm:$0xff] %v5014_v43  ;;  %v2539_v52 = vmax.f32 %v2537_v14, %v5014_v43 }
 0x7df   : > { %v5017_v45 = vpop.f32.mrb[100].mxu0 }
 0x7e0   : > { %v2503_v11 = vmax.f32 %v2501_v7, %v5017_v45  ;;  %v5020_v5 = vpop.f32.mrb[101].mxu0 }
 0x7e1   : > { %5766 = vst [vmem:[#allocation22_spill] sm:$0xff] %v5020_v5  ;;  %v2540_v50 = vmax.f32 %v2538_v18, %v5020_v5  ;;  %v5023_v25 = vpop.f32.mrb[102].mxu0 }
 0x7e2   : > { %v2504_v2 = vmax.f32 %v2502_v38, %v5023_v25  ;;  %v5026_v33 = vpop.f32.mrb[103].mxu0 }
 0x7e3   : > { %5767 = vst [vmem:[#allocation23_spill] sm:$0xff] %v5026_v33  ;;  %v2541_v37 = vmax.f32 %v2539_v52, %v5026_v33 }
 0x7e7   : > { %v5029_v35 = vpop.f32.mrb[104].mxu0 }
 0x7e8   : > { %v2505_v6 = vmax.f32 %v2503_v11, %v5029_v35  ;;  %v5032_v22 = vpop.f32.mrb[105].mxu0 }
 0x7e9   : > { %5768 = vst [vmem:[#allocation24_spill] sm:$0xff] %v5032_v22  ;;  %v2542_v21 = vmax.f32 %v2540_v50, %v5032_v22  ;;  %v5035_v3 = vpop.f32.mrb[106].mxu0 }
 0x7ea   : > { %v2506_v1 = vmax.f32 %v2504_v2, %v5035_v3  ;;  %v5038_v30 = vpop.f32.mrb[107].mxu0 }
 0x7eb   : > { %5769 = vst [vmem:[#allocation25_spill] sm:$0xff] %v5038_v30  ;;  %v2543_v34 = vmax.f32 %v2541_v37, %v5038_v30 }
 0x7ef   : > { %v5041_v27 = vpop.f32.mrb[108].mxu0 }
 0x7f0   : > { %v2507_v62 = vmax.f32 %v2505_v6, %v5041_v27  ;;  %v5044_v42 = vpop.f32.mrb[109].mxu0 }
 0x7f1   : > { %5770 = vst [vmem:[#allocation26_spill] sm:$0xff] %v5044_v42  ;;  %v2544_v29 = vmax.f32 %v2542_v21, %v5044_v42  ;;  %v5047_v28 = vpop.f32.mrb[110].mxu0 }
 0x7f2   : > { %v2508_v19 = vmax.f32 %v2506_v1, %v5047_v28  ;;  %v5050_v44 = vpop.f32.mrb[111].mxu0 }
 0x7f3   : > { %5771 = vst [vmem:[#allocation6_spill] sm:$0xff] %v5050_v44  ;;  %v2545_v60 = vmax.f32 %v2543_v34, %v5050_v44 }
 0x7f7   : > { %v5053_v10 = vpop.f32.mrb[112].mxu0 }
 0x7f8   : > { %v2509_v57 = vmax.f32 %v2507_v62, %v5053_v10  ;;  %v5056_v8 = vpop.f32.mrb[113].mxu0 }
 0x7f9   : > { %5772 = vst [vmem:[#allocation5_spill] sm:$0xff] %v5056_v8  ;;  %v2546_v14 = vmax.f32 %v2544_v29, %v5056_v8  ;;  %v5059_v7 = vpop.f32.mrb[114].mxu0 }
 0x7fa   : > { %v2510_v18 = vmax.f32 %v2508_v19, %v5059_v7  ;;  %v5062_v38 = vpop.f32.mrb[115].mxu0 }
 0x7fb   : > { %5773 = vst [vmem:[#allocation12_spill] sm:$0xff] %v5062_v38  ;;  %v2547_v52 = vmax.f32 %v2545_v60, %v5062_v38 }
 0x7ff   : > { %v5065_v11 = vpop.f32.mrb[116].mxu0 }
 0x800   : > { %v2511_v50 = vmax.f32 %v2509_v57, %v5065_v11  ;;  %v5068_v2 = vpop.f32.mrb[117].mxu0 }
 0x801   : > { %5774 = vst [vmem:[#allocation14_spill] sm:$0xff] %v5068_v2  ;;  %v2548_v37 = vmax.f32 %v2546_v14, %v5068_v2  ;;  %v5071_v6 = vpop.f32.mrb[118].mxu0 }
 0x802   : > { %v2512_v21 = vmax.f32 %v2510_v18, %v5071_v6  ;;  %v5074_v1 = vpop.f32.mrb[119].mxu0 }
 0x803   : > { %5775 = vst [vmem:[#allocation20_spill] sm:$0xff] %v5074_v1  ;;  %v2549_v34 = vmax.f32 %v2547_v52, %v5074_v1 }
 0x807   : > { %v5077_v62 = vpop.f32.mrb[120].mxu0 }
 0x808   : > { %v2513_v29 = vmax.f32 %v2511_v50, %v5077_v62  ;;  %v5080_v19 = vpop.f32.mrb[121].mxu0 }
 0x809   : > { %5776 = vst [vmem:[#allocation28_spill] sm:$0xff] %v5080_v19  ;;  %v2550_v60 = vmax.f32 %v2548_v37, %v5080_v19  ;;  %v5083_v57 = vpop.f32.mrb[122].mxu0 }
 0x80a   : > { %v2514_v14 = vmax.f32 %v2512_v21, %v5083_v57  ;;  %v5086_v24 = vpop.f32.mrb[123].mxu0 }
 0x80b   : > { %5777 = vst [vmem:[#allocation33_spill] sm:$0xff] %v5086_v24  ;;  %v2551_v18 = vmax.f32 %v2549_v34, %v5086_v24 }
 0x80f   : > { %v5089_v58 = vpop.f32.mrb[124].mxu0 }
 0x810   : > { %v2515_v52 = vmax.f32 %v2513_v29, %v5089_v58  ;;  %v5092_v15 = vpop.f32.mrb[125].mxu0 }
 0x811   : > { %5778 = vst [vmem:[#allocation34_spill] sm:$0xff] %v5092_v15  ;;  %v2552_v50 = vmax.f32 %v2550_v60, %v5092_v15  ;;  %v5095_v56 = vpop.f32.mrb[126].mxu0 }
 0x812   : > { %v2516_v37 = vmax.f32 %v2514_v14, %v5095_v56  ;;  %v5098_v19 = vpop.f32.mrb[127].mxu0 }
 0x813   : > { %5779 = vst [vmem:[#allocation35_spill] sm:$0xff] %v5098_v19  ;;  %v2553_v21 = vmax.f32 %v2551_v18, %v5098_v19 }
 0x817   : > { %v5101_v1 = vpop.f32.mrb[128].mxu0 }
 0x818   : > { %v2517_v34 = vmax.f32 %v2515_v52, %v5101_v1  ;;  %v5104_v24 = vpop.f32.mrb[129].mxu0 }
 0x819   : > { %5780 = vst [vmem:[#allocation36_spill] sm:$0xff] %v5104_v24  ;;  %v2554_v29 = vmax.f32 %v2552_v50, %v5104_v24  ;;  %v5107_v2 = vpop.f32.mrb[130].mxu0 }
 0x81a   : > { %v2518_v60 = vmax.f32 %v2516_v37, %v5107_v2  ;;  %v5110_v15 = vpop.f32.mrb[131].mxu0 }
 0x81b   : > { %5781 = vst [vmem:[#allocation9_spill] sm:$0xff] %v5110_v15  ;;  %v2555_v14 = vmax.f32 %v2553_v21, %v5110_v15 }
 0x81f   : > { %v2482_v38 = vpop.f32.mrb[132].mxu0 }
 0x820   : > { %v2519_v8 = vmax.f32 %v2517_v34, %v2482_v38  ;;  %v5113_v44 = vpop.f32.mrb[133].mxu0 }
 0x821   : > { %v2556_v18 = vmax.f32 %v2554_v29, %v5113_v44  ;;  %v2486_v19 = vpop.f32.mrb[134].mxu0 }
 0x822   : > { %v2520_v52 = vmax.f32 %v2518_v60, %v2486_v19  ;;  %v2488_v42 = vpop.f32.mrb[135].mxu0 }
 0x823   : > { %v2557_v30 = vmax.f32 %v2555_v14, %v2488_v42 }
 0x824   : > { %v2521_v22 = vmax.f32 %v2519_v8, %v2520_v52  ;;  %v5786_v52 = vld [vmem:[#allocation19_spill] sm:$0xff] }
 0x825   : > { %v2558_v50 = vmax.f32 %v2556_v18, %v2557_v30 }
 0x826   : > { %v2522_v24 = vrot.slane %v2521_v22, 4 }
 0x827   : > { %v2559_v33 = vrot.slane %v2558_v50, 4 }
 0x828   : > { %v2523_v5 = vmax.f32 %v2521_v22, %v2522_v24 }
 0x829   : > { %v2560_v37 = vmax.f32 %v2558_v50, %v2559_v33  ;;  %v5787_v50 = vld [vmem:[#allocation41_spill] sm:$0xff] }
 0x82a   : > { %v2524_v43 = vrot.slane %v2523_v5, 2 }
 0x82b   : > { %v2561_v4 = vrot.slane %v2560_v37, 2 }
 0x82c   : > { %v2525_v23 = vmax.f32 %v2523_v5, %v2524_v43 }
 0x82d   : > { %v2562_v21 = vmax.f32 %v2560_v37, %v2561_v4  ;;  %v5788_v37 = vld [vmem:[#allocation40_spill] sm:$0xff] }
 0x82e   : > { %v2526_v15 = vrot.slane %v2525_v23, 1 }
 0x82f   : > { %v2563_v20 = vrot.slane %v2562_v21, 1 }
 0x830   : > { %v5116_v34 = vmax.f32 %v2525_v23, %v2526_v15 }
 0x831   : > { %v5154_v18 = vmax.f32 %v2562_v21, %v2563_v20 }
 0x832   : > { %5782 = vst [vmem:[#allocation21_spill] sm:$0xff] %v5116_v34  ;;  %v2625_v29 = vsub.f32 %v2482_v38, %v5116_v34  ;;  %v2627_v60 = vsub.f32 %v2486_v19, %v5116_v34  ;;  %v2575_v23 = vsub.f32 %v4963_v9, %v5116_v34  ;;  %v2577_v5 = vsub.f32 %v4969_v31, %v5116_v34 }
 0x833   : > { %v2579_v33 = vsub.f32 %v4975_v46, %v5116_v34  ;;  %v2581_v22 = vsub.f32 %v4981_v36, %v5116_v34  ;;  %v2583_v38 = vsub.f32 %v4987_v48, %v5116_v34  ;;  %v2585_v19 = vsub.f32 %v4993_v16, %v5116_v34 }
 0x834   : > { %v5132_v43 = vpack.c.bf16 %v2627_v60, %v2625_v29  ;;  %v2587_v9 = vsub.f32 %v4999_v49, %v5116_v34  ;;  %v2589_v14 = vsub.f32 %v5005_v12, %v5116_v34  ;;  %v2591_v31 = vsub.f32 %v5011_v39, %v5116_v34 }
 0x835   : > { %v2593_v46 = vsub.f32 %v5017_v45, %v5116_v34  ;;  %v2595_v36 = vsub.f32 %v5023_v25, %v5116_v34  ;;  %v2597_v48 = vsub.f32 %v5029_v35, %v5116_v34  ;;  %v2599_v16 = vsub.f32 %v5035_v3, %v5116_v34 }
 0x836   : > { %5783 = vst [vmem:[#allocation7_spill] sm:$0xff] %v5132_v43  ;;  %v2601_v49 = vsub.f32 %v5041_v27, %v5116_v34  ;;  %v2603_v12 = vsub.f32 %v5047_v28, %v5116_v34  ;;  %v2605_v39 = vsub.f32 %v5053_v10, %v5116_v34  ;;  %v2607_v45 = vsub.f32 %v5059_v7, %v5116_v34 }
 0x837   : > { %v2609_v20 = vsub.f32 %v5065_v11, %v5116_v34  ;;  %v2611_v25 = vsub.f32 %v5071_v6, %v5116_v34  ;;  %v2613_v35 = vsub.f32 %v5077_v62, %v5116_v34  ;;  %v2615_v3 = vsub.f32 %v5083_v57, %v5116_v34 }
 0x838   : > { %v2617_v27 = vsub.f32 %v5089_v58, %v5116_v34  ;;  %v2619_v28 = vsub.f32 %v5095_v56, %v5116_v34  ;;  %v2621_v10 = vsub.f32 %v5101_v1, %v5116_v34  ;;  %v2623_v7 = vsub.f32 %v5107_v2, %v5116_v34 }
 0x839   : > { %v2626_v11 = vsub.f32 %v5113_v44, %v5154_v18  ;;  %v2628_v6 = vsub.f32 %v2488_v42, %v5154_v18  ;;  %v2566_v62 = vsub.f32 %v4935_v55, %v5154_v18  ;;  %v2568_v58 = vsub.f32 %v4939_v17, %v5154_v18 }
 0x83a   : > { %v2570_v56 = vsub.f32 %v4945_v40, %v5154_v18  ;;  %v2572_v1 = vsub.f32 %v4953_v54, %v5154_v18  ;;  %v2574_v2 = vsub.f32 %v4960_v41, %v5154_v18  ;;  %v2576_v44 = vsub.f32 %v4966_v51, %v5154_v18  ;;  %v5785_v54 = vld [vmem:[#allocation18_spill] sm:$0xff] }
 0x83b   : > { %v2578_v42 = vsub.f32 %v4972_v61, %v5154_v18  ;;  %v5201_v57 = vpack.c.bf16 %v2628_v6, %v2626_v11  ;;  %v2580_v55 = vsub.f32 %v4978_v53, %v5154_v18  ;;  %v2582_v17 = vsub.f32 %v4984_v13, %v5154_v18  ;;  %v5789_v53 = vld [vmem:[#allocation22_spill] sm:$0xff]  ;;  %v5790_v13 = vld [vmem:[#allocation23_spill] sm:$0xff]  ;;  %v5792_v6 = vld [vmem:[#allocation25_spill] sm:$0xff] }
 0x83c   : > { %v2584_v40 = vsub.f32 %v4990_v47, %v5154_v18  ;;  %v2586_v41 = vsub.f32 %v5785_v54, %v5154_v18  ;;  %v2588_v51 = vsub.f32 %v5786_v52, %v5154_v18  ;;  %v2590_v61 = vsub.f32 %v5787_v50, %v5154_v18  ;;  %v5791_v47 = vld [vmem:[#allocation24_spill] sm:$0xff]  ;;  %v5793_v52 = vld [vmem:[#allocation26_spill] sm:$0xff] }
 0x83d   : > { %5784 = vst [vmem:[#allocation8_spill] sm:$0xff] %v5201_v57  ;;  %v2592_v21 = vsub.f32 %v5788_v37, %v5154_v18  ;;  %v2594_v29 = vsub.f32 %v5789_v53, %v5154_v18  ;;  %v2596_v60 = vsub.f32 %v5790_v13, %v5154_v18  ;;  %v2598_v11 = vsub.f32 %v5791_v47, %v5154_v18  ;;  %v5794_v50 = vld [vmem:[#allocation6_spill] sm:$0xff]  ;;  %v5795_v37 = vld [vmem:[#allocation5_spill] sm:$0xff]  ;;  %v5796_v53 = vld [vmem:[#allocation12_spill] sm:$0xff] }
 0x83e   : > { %v2600_v54 = vsub.f32 %v5792_v6, %v5154_v18  ;;  %v2602_v15 = vsub.f32 %v5793_v52, %v5154_v18  ;;  %v2604_v4 = vsub.f32 %v5794_v50, %v5154_v18  ;;  %v2606_v24 = vsub.f32 %v5795_v37, %v5154_v18  ;;  %v5797_v13 = vld [vmem:[#allocation14_spill] sm:$0xff]  ;;  %v5798_v47 = vld [vmem:[#allocation20_spill] sm:$0xff]  ;;  %v5800_v52 = vld [vmem:[#allocation33_spill] sm:$0xff] }
 0x83f   : > { %v2608_v30 = vsub.f32 %v5796_v53, %v5154_v18  ;;  %v2610_v8 = vsub.f32 %v5797_v13, %v5154_v18  ;;  %v2612_v43 = vsub.f32 %v5798_v47, %v5154_v18  ;;  %v5799_v6 = vld [vmem:[#allocation28_spill] sm:$0xff]  ;;  %v2616_v59 = vsub.f32 %v5800_v52, %v5154_v18  ;;  %v5801_v50 = vld [vmem:[#allocation34_spill] sm:$0xff]  ;;  %v5802_v37 = vld [vmem:[#allocation35_spill] sm:$0xff] }
 0x840   : > { %v2614_v57 = vsub.f32 %v5799_v6, %v5154_v18  ;;  %v2618_v32 = vsub.f32 %v5801_v50, %v5154_v18  ;;  %v2620_v26 = vsub.f32 %v5802_v37, %v5154_v18  ;;  %v5803_v53 = vld [vmem:[#allocation36_spill] sm:$0xff]  ;;  %v5804_v13 = vld [vmem:[#allocation9_spill] sm:$0xff]  ;;  %v5807_v52 = vld [vmem:[#allocation39_spill] sm:$0xff] }
 0x841   : > { %v2622_v0 = vsub.f32 %v5803_v53, %v5154_v18  ;;  %v2624_v34 = vsub.f32 %v5804_v13, %v5154_v18  ;;  %v5805_v47 = vld [vmem:[#allocation21_spill] sm:$0xff]  ;;  %v5809_v53 = vld [vmem:[#allocation15_spill] sm:$0xff]  ;;  %v5811_v18 = vld [vmem:[#allocation16_spill] sm:$0xff] }
 0x842   : > { %v5806_v6 = vsub.f32 %v4933_v63, %v5805_v47  ;;  %v5808_v50 = vsub.f32 %v5807_v52, %v5805_v47  ;;  %v5810_v13 = vsub.f32 %v5809_v53, %v5805_v47  ;;  %v5812_v63 = vsub.f32 %v5811_v18, %v5805_v47 }
 0x843   : > { %v2635_v18 = vpack.c.bf16 %v2579_v33, %v2577_v5  ;;  %v5272_v5 = vpack.c.bf16 %v2607_v45, %v2605_v39  ;;  %v5274_v33 = vpack.c.bf16 %v2611_v25, %v2609_v20  ;;  %v5284_v39 = vpack.c.bf16 %v2608_v30, %v2606_v24 }
 0x844   : > { %v2629_v37 = vpack.c.bf16 %v5808_v50, %v5806_v6  ;;  %v2631_v52 = vpack.c.bf16 %v5812_v63, %v5810_v13  ;;  %v5813_v6 = vld [vmem:[#allocation17_spill] sm:$0xff]  ;;  %v2637_v13 = vpack.c.bf16 %v2583_v38, %v2581_v22  ;;  %v2639_v63 = vpack.c.bf16 %v2587_v9, %v2585_v19 }
 0x845   : > { %v5814_v50 = vsub.f32 %v5813_v6, %v5805_v47  ;;  %v5264_v6 = vpack.c.bf16 %v2591_v31, %v2589_v14  ;;  %v5266_v47 = vpack.c.bf16 %v2595_v36, %v2593_v46  ;;  %v5276_v22 = vpack.c.bf16 %v2615_v3, %v2613_v35 }
 0x846   : > { %v5278_v38 = vpack.c.bf16 %v2619_v28, %v2617_v27  ;;  %v5280_v9 = vpack.c.bf16 %v2623_v7, %v2621_v10  ;;  %v2630_v19 = vpack.c.bf16 %v2568_v58, %v2566_v62  ;;  %v2632_v14 = vpack.c.bf16 %v2572_v1, %v2570_v56 }
 0x847   : > { %v2633_v53 = vpack.c.bf16 %v2575_v23, %v5814_v50  ;;  %5815 = vst [vmem:[#allocation10_spill] sm:$0xff] %v5264_v6  ;;  %v5268_v23 = vpack.c.bf16 %v2599_v16, %v2597_v48  ;;  %v5270_v50 = vpack.c.bf16 %v2603_v12, %v2601_v49  ;;  %v2634_v31 = vpack.c.bf16 %v2576_v44, %v2574_v2 }
 0x848   : > { %v2636_v6 = vpack.c.bf16 %v2580_v55, %v2578_v42  ;;  %v2638_v46 = vpack.c.bf16 %v2584_v40, %v2582_v17  ;;  %v2640_v36 = vpack.c.bf16 %v2588_v51, %v2586_v41  ;;  %v2642_v48 = vpack.c.bf16 %v2592_v21, %v2590_v61 }
 0x849   : > { %v2644_v16 = vpack.c.bf16 %v2596_v60, %v2594_v29  ;;  %v2646_v49 = vpack.c.bf16 %v2600_v54, %v2598_v11  ;;  %v5282_v12 = vpack.c.bf16 %v2604_v4, %v2602_v15  ;;  %v5286_v45 = vpack.c.bf16 %v2612_v43, %v2610_v8 }
 0x84a   : > { %v5288_v20 = vpack.c.bf16 %v2616_v59, %v2614_v57  ;;  %v5290_v25 = vpack.c.bf16 %v2620_v26, %v2618_v32  ;;  %v5292_v35 = vpack.c.bf16 %v2624_v34, %v2622_v0  ;;  %v2662_v3 = vmul.bf16 1069105081, %v2629_v37 }
 0x84b   : > { %v2665_v27 = vmul.bf16 1069105081, %v2630_v19  ;;  %v2671_v28 = vmul.bf16 1069105081, %v2632_v14  ;;  %v2668_v10 = vmul.bf16 1069105081, %v2631_v52 }
 0x84c   : > { %v2677_v7 = vmul.bf16 1069105081, %v2634_v31  ;;  %v2674_v4 = vmul.bf16 1069105081, %v2633_v53  ;;  %v2683_v30 = vmul.bf16 1069105081, %v2636_v6 }
 0x84d   : > { %3322 = vpow.bf16 %v2665_v27  ;;  %v2680_v8 = vmul.bf16 1069105081, %v2635_v18  ;;  %v2689_v59 = vmul.bf16 1069105081, %v2638_v46  ;;  %v2686_v34 = vmul.bf16 1069105081, %v2637_v13 }
 0x84e   : > { %3324 = vpow.bf16 %v2662_v3  ;;  %v2695_v24 = vmul.bf16 1069105081, %v2640_v36  ;;  %v2692_v62 = vmul.bf16 1069105081, %v2639_v63  ;;  %v2701_v58 = vmul.bf16 1069105081, %v2642_v48 }
 0x84f   : > { %3326 = vpow.bf16 %v2671_v28  ;;  %v5816_v2 = vld [vmem:[#allocation10_spill] sm:$0xff]  ;;  %v2707_v42 = vmul.bf16 1069105081, %v2644_v16  ;;  %v2704_v17 = vmul.bf16 1069105081, %v5266_v47  ;;  %v5817_v16 = vld [vmem:[#allocation8_spill] sm:$0xff] }
 0x850   : > { %3328 = vpow.bf16 %v2668_v10  ;;  %v2698_v44 = vmul.bf16 1069105081, %v5816_v2  ;;  %v2713_v40 = vmul.bf16 1069105081, %v2646_v49  ;;  %v2710_v61 = vmul.bf16 1069105081, %v5268_v23 }
 0x851   : > { %3330 = vpow.bf16 %v2677_v7  ;;  %v2719_v21 = vmul.bf16 1069105081, %v5282_v12  ;;  %v2716_v11 = vmul.bf16 1069105081, %v5270_v50  ;;  %v2725_v54 = vmul.bf16 1069105081, %v5284_v39 }
 0x852   : > { %3332 = vpow.bf16 %v2674_v4  ;;  %v2722_v53 = vmul.bf16 1069105081, %v5272_v5  ;;  %v2731_v18 = vmul.bf16 1069105081, %v5286_v45  ;;  %v2728_v6 = vmul.bf16 1069105081, %v5274_v33 }
 0x853   : > { %3334 = vpow.bf16 %v2683_v30  ;;  %v2737_v47 = vmul.bf16 1069105081, %v5288_v20  ;;  %v2734_v5 = vmul.bf16 1069105081, %v5276_v22  ;;  %v2743_v19 = vmul.bf16 1069105081, %v5290_v25 }
 0x854   : > { %3336 = vpow.bf16 %v2680_v8  ;;  %v2740_v33 = vmul.bf16 1069105081, %v5278_v38  ;;  %v2749_v46 = vmul.bf16 1069105081, %v5292_v35  ;;  %v2746_v22 = vmul.bf16 1069105081, %v5280_v9 }
 0x855   : > { %3338 = vpow.bf16 %v2689_v59  ;;  %v2755_v49 = vmul.bf16 1069105081, %v5817_v16  ;;  %v5818_v45 = vld [vmem:[#allocation7_spill] sm:$0xff]  ;;  %v5820_v7 = vld [vmem:[#allocation13_spill] sm:$0xff]  ;;  %v5822_v8 = vld [vmem:[#allocation32_spill] sm:$0xff] }
 0x856   : > { %3340 = vpow.bf16 %v2686_v34  ;;  %v2752_v20 = vmul.bf16 1069105081, %v5818_v45  ;;  %v5819_v10 = vld [vmem:[#allocation11_spill] sm:$0xff] }
 0x857   : > { %3342 = vpow.bf16 %v2695_v24  ;;  %v5821_v4 = vadd.bf16 %v5819_v10, %v5820_v7  ;;  %v5823_v59 = vld [vmem:[#allocation31_spill] sm:$0xff]  ;;  %v5828_v24 = vmov 0  }
 0x858   : > { %v3323_v26 = vpop.eup %3322  ;;  %3344 = vpow.bf16 %v2692_v62  ;;  %v5829_v62 = vld [vmem:[#allocation37_spill] sm:$0xff] }
 0x859   : > { %v3325_v32 = vpop.eup %3324  ;;  %2765 = vmatprep.subr.bf16.mxu1 %v3323_v26  ;;  %3346 = vpow.bf16 %v2701_v58  ;;  %v2761_v30 = vrot.slane %v5821_v4, 4  ;;  %v5824_v26 = vpack.c.bf16 %v5822_v8, %v5823_v59  ;;  %v5830_v58 = vld [vmem:[#allocation38_spill] sm:$0xff] }
 0x85a   : > { %v3327_v0 = vpop.eup %3326  ;;  %2766 = vmatpush1.bf16.msra.mxu1 %v3325_v32  ;;  %3348 = vpow.bf16 %v2698_v44  ;;  %v5825_v32 = vld [vmem:[#allocation30_spill] sm:$0xff] }
 0x85b   : > { %2767 = vmatprep.subr.bf16.mxu1 %v3327_v0  ;;  %v3329_v15 = vpop.eup %3328  ;;  %3350 = vpow.bf16 %v2707_v42  ;;  %v5826_v0 = vld [vmem:[#allocation29_spill] sm:$0xff] }
 0x85c   : > { %v3331_v43 = vpop.eup %3330  ;;  %3352 = vpow.bf16 %v2704_v17  ;;  %v5827_v34 = vpack.c.bf16 %v5825_v32, %v5826_v0 }
 0x85d   : > { %v3333_v56 = vpop.eup %3332  ;;  %3354 = vpow.bf16 %v2713_v40 }
 0x85e   : > { %2768 = vmatpush1.bf16.msra.mxu1 %v3329_v15  ;;  %v3335_v1 = vpop.eup %3334  ;;  %3356 = vpow.bf16 %v2710_v61  ;;  %v2824_v15 = vld [vmem:[%s5391_s3] sm:$0xff] }
 0x85f   : > { %2769 = vmatprep.subr.bf16.mxu1 %v3331_v43  ;;  %v3337_v57 = vpop.eup %3336  ;;  %3358 = vpow.bf16 %v2719_v21  ;;  %v2825_v43 = vld [vmem:[%s5391_s3 + $0x8] sm:$0xff]  ;;  %2828 = vperm.xlu0 %3110, %v2824_v15  }
 0x860   : > { %v3339_v55 = vpop.eup %3338  ;;  %3360 = vpow.bf16 %v2716_v11  ;;  %2833 = vperm.xlu1 %3111, %v2825_v43  }
 0x861   : > { %v3341_v41 = vpop.eup %3340  ;;  %3362 = vpow.bf16 %v2725_v54 }
 0x862   : > { %2770 = vmatpush1.bf16.msra.mxu1 %v3333_v56  ;;  %v3343_v51 = vpop.eup %3342  ;;  %3364 = vpow.bf16 %v2722_v53  ;;  %v3121_v53 = vld [vmem:[%s5390_s2] sm:$0xff]  }
 0x863   : > { %2771 = vmatprep.subr.bf16.mxu1 %v3335_v1  ;;  %v3345_v29 = vpop.eup %3344  ;;  %3366 = vpow.bf16 %v2731_v18 }
 0x864   : > { %v3347_v60 = vpop.eup %3346  ;;  %3368 = vpow.bf16 %v2728_v6 }
 0x865   : > { %v3349_v37 = vpop.eup %3348  ;;  %3370 = vpow.bf16 %v2737_v47 }
 0x866   : > { %2772 = vmatpush1.bf16.msra.mxu1 %v3337_v57  ;;  %v3351_v52 = vpop.eup %3350  ;;  %3372 = vpow.bf16 %v2734_v5 }
 0x867   : > { %2773 = vmatprep.subr.bf16.mxu1 %v3339_v55  ;;  %v3353_v13 = vpop.eup %3352  ;;  %3374 = vpow.bf16 %v2743_v19  ;;  %v5831_v55 = vld [vmem:[#allocation27_spill] sm:$0xff] }
 0x868   : > { %v3355_v63 = vpop.eup %3354  ;;  %3376 = vpow.bf16 %v2740_v33 }
 0x869   : > { %v3357_v23 = vpop.eup %3356  ;;  %3378 = vpow.bf16 %v2749_v46 }
 0x86a   : > { %2774 = vmatpush1.bf16.msra.mxu1 %v3341_v41  ;;  %v3359_v50 = vpop.eup %3358  ;;  %3380 = vpow.bf16 %v2746_v22 }
 0x86b   : > { %2775 = vmatprep.subr.bf16.mxu1 %v3343_v51  ;;  %v3361_v14 = vpop.eup %3360  ;;  %3382 = vpow.bf16 %v2755_v49 }
 0x86c   : > { %v3363_v31 = vpop.eup %3362  ;;  %3384 = vpow.bf16 %v2752_v20 }
 0x86d   : > { %v3365_v36 = vpop.eup %3364  ;;  %3386 = vrcp.f32 %v5829_v62 }
 0x86e   : > { %2776 = vmatpush1.bf16.msra.mxu1 %v3345_v29  ;;  %v3367_v48 = vpop.eup %3366  ;;  %3388 = vrcp.f32 %v5830_v58 }
 0x86f   : > { %2777 = vmatprep.subr.bf16.mxu1 %v3347_v60  ;;  %v3369_v12 = vpop.eup %3368 }
 0x870   : > { %v3371_v39 = vpop.eup %3370 }
 0x871   : > { %v3373_v38 = vpop.eup %3372 }
 0x872   : > { %2778 = vmatpush1.bf16.msra.mxu1 %v3349_v37  ;;  %v3375_v25 = vpop.eup %3374 }
 0x873   : > { %2779 = vmatprep.subr.bf16.mxu1 %v3351_v52  ;;  %v3377_v35 = vpop.eup %3376 }
 0x874   : > { %v3379_v9 = vpop.eup %3378 }
 0x875   : > { %v3381_v3 = vpop.eup %3380 }
 0x876   : > { %2780 = vmatpush1.bf16.msra.mxu1 %v3353_v13  ;;  %v3383_v27 = vpop.eup %3382 }
 0x877   : > { %2781 = vmatprep.subr.bf16.mxu1 %v3355_v63  ;;  %v3385_v28 = vpop.eup %3384 }
 0x878   : > { %v3387_v42 = vpop.eup %3386 }
 0x879   : > { %v3389_v57 = vpop.eup %3388  ;;  %v2195_v17 = vrot.slane %v3387_v42, %v5831_v55 }
 0x87a   : > { %2782 = vmatpush1.bf16.msra.mxu1 %v3357_v23  ;;  %v2199_v41 = vrot.slane %v3389_v57, %v5831_v55 }
 0x87b   : > { %2783 = vmatprep.subr.bf16.mxu1 %v3359_v50  ;;  %v2200_v29 = vmul.f32 %v2195_v17, %v5829_v62 }
 0x87c   : > { %v2201_v11 = vmul.f32 %v2199_v41, %v5830_v58 }
 0x87e   : > { %2784 = vmatpush1.bf16.msra.mxu1 %v3361_v14 }
 0x87f   : > { %2785 = vmatprep.subr.bf16.mxu1 %v3363_v31 }
 0x882   : > { %2786 = vmatpush1.bf16.msra.mxu1 %v3365_v36 }
 0x883   : > { %2787 = vmatprep.subr.bf16.mxu1 %v3367_v48 }
 0x886   : > { %2788 = vmatpush1.bf16.msra.mxu1 %v3369_v12 }
 0x887   : > { %2789 = vmatprep.subr.bf16.mxu1 %v3371_v39 }
 0x88a   : > { %2790 = vmatpush1.bf16.msra.mxu1 %v3373_v38 }
 0x88b   : > { %2791 = vmatprep.subr.bf16.mxu1 %v3375_v25 }
 0x88e   : > { %2792 = vmatpush1.bf16.msra.mxu1 %v3377_v35 }
 0x88f   : > { %2793 = vmatprep.subr.bf16.mxu1 %v3379_v9 }
 0x892   : > { %2794 = vmatpush1.bf16.msra.mxu1 %v3381_v3 }
 0x893   : > { %2795 = vmatprep.subr.bf16.mxu1 %v3383_v27 }
 0x896   : > { %2796 = vmatpush1.bf16.msra.mxu1 %v3385_v28 }
 0x897   : > { %2845 = vmatprep.subr.bf16.mxu1 %v5824_v26 }
 0x899   : > { %2798 = vmatmul.mubr.bf16.vlgmr.msra.gmra.mrb[156].mxu1 %v2761_v30 }
 0x89a   : > { %2846 = vmatpush1.bf16.msra.mxu1 %v5827_v34  ;;  %2877 = vmatprep.mubr.bf16.mxu1 %v5828_v24 }
 0x8de   : > { %v2829_v18 = vpop.permute.xlu0 %2828 }
 0x8df   : > { %v2834_v63 = vpop.permute.xlu1 %2833 }
 0x96c   : > { %v2799_v56 = vpop.f32.mrb[156].mxu1 }
 0x96d   : > { %3390 = vrcp.f32 %v2799_v56  ;;  %v2801_v1 = vpop.f32.mrb[157].mxu1 }
 0x96e   : > { %3392 = vrcp.f32 %v2801_v1  ;;  %v2803_v2 = vpop.f32.mrb[158].mxu1 }
 0x96f   : > { %v2804_v44 = vpop.f32.mrb[159].mxu1 }
 0x977   : > { %v3391_v40 = vpop.eup %3390 }
 0x978   : > { %v3393_v51 = vpop.eup %3392  ;;  %v2811_v61 = vrot.slane %v3391_v40, %v5831_v55 }
 0x979   : > { %v2815_v21 = vrot.slane %v3393_v51, %v5831_v55 }
 0x97a   : > { %v2816_v60 = vmul.f32 %v2811_v61, %v2799_v56 }
 0x97b   : > { %v2817_v54 = vmul.f32 %v2815_v21, %v2801_v1 }
 0x97c   : > { %v2820_v37 = vpack.c.bf16 %v2816_v60, %v2200_v29 }
 0x97d   : > { %v2821_v52 = vpack.c.bf16 %v2817_v54, %v2201_v11 }
 0x97f   : > { %2847 = vmatprep.subr.bf16.mxu1 %v2821_v52 }
 0x980   : > { %2848 = vmatpush1.bf16.msra.mxu1 %v2820_v37 }
 0x983   : > { %3059 = vmatmul.mubr.msk.bf16.vlgmr.msra.gmra.mrb[160].mxu1 %vm2841_vm4, %v3121_v53 }
 0xa56   : > { %v2879_v13 = vpop.f32.mrb[160].mxu1 }
 0xa57   : > { %v2881_v6 = vpop.f32.mrb[161].mxu1  ;;  %v2880_v47 = vadd.f32 %v2879_v13, %v2829_v18 }
 0xa58   : > { %v2883_v23 = vpop.f32.mrb[162].mxu1  ;;  %v2882_v50 = vadd.f32 %v2881_v6, %v2829_v18 }
 0xa59   : > { %2888 = vst [vmem:[%s190_s9] sm:$0xff] %v2880_v47  ;;  %v2884_v5 = vadd.f32 %v2883_v23, %v2834_v63  ;;  %v2885_v19 = vpop.f32.mrb[163].mxu1 }
 0xa5a   : > { %2889 = vst [vmem:[%s190_s9 + $0x8] sm:$0xff] %v2882_v50  ;;  %v2886_v14 = vadd.f32 %v2885_v19, %v2834_v63 }
 0xa5b   : > { %2890 = vst [vmem:[%s190_s9 + $0x10] sm:$0xff] %v2884_v5 }
 0xa5c   : > { %2891 = vst [vmem:[%s190_s9 + $0x18] sm:$0xff] %v2886_v14 }
 0xa5d   : > { %3407 = shalt.err (!%p3404_p3)
}
 0xa5e   : > { %s3408_s28 = scalar_lea.hbm %s5345_s14, 512  ;;  %s3412_s5 = scalar_lea.hbm %s5392_s4, 1024 }
 0xa5f   : > { %p3409_p4 = scmp.ne.s32.totalorder %s5345_s14, %s3408_s28  ;;  %p3413_p9 = scmp.lt.u32.totalorder %s5345_s14, %s5392_s4 }
 0xa60   : > { %p3414_p10 = scmp.lt.u32.totalorder %s3412_s5, %s3408_s28  ;;  %p3416_p12 = scmp.lt.u32.totalorder %s3408_s28, %s5345_s14 }
 0xa61   : > { %p3410_p7 = pnand %p3409_p4, %p3526_p5 }
 0xa62   : > { %p3415_p11 = por %p3414_p10, %p3413_p9 }
 0xa63   : > { %p3411_p8 = pneg %p3410_p7 }
 0xa64   : > { %p3417_p13 = por %p3416_p12, %p3415_p11 }
 0xa66   : > { %p3418_p0 = pnand %p3417_p13, %p3411_p8 }
 0xa68   : > { %3421 = shalt.err (!%p3418_p0)
}
 0xa69   : > { %s3461_s8 = smov 256   ;;  %s3462_s9 = smov 16  }
 0xa6a   : > { %3067 = dma.vmem_to_hbm [thread:$0]  (%p3526_p5), %s5340_s10, 512, %s5345_s14, %s5347_s19, %s3461_s8, %s3461_s8, %s3462_s9  }
 0xa6b PF: > { %p3073_p1 = scmp.ge.s32.totalorder %s3456_s18, 2  ;;  %s2921_s11 = sand.u32 1, %s3444_s15  }
 0xa6c   : > { %s2922_s12 = scalar_lea.sflag [#allocation3], %s2921_s11 }
 0xa6d   : > { %p3070_p2 = pnand %p3073_p1, %p3530_p6 }
 0xa6f   : > { %3439 = dma.done.wait (!%p3070_p2), %s2922_s12, 512  }
 0xa70   : > { %3441 = vsyncadd (!%p3070_p2), %s2922_s12, 4294966784  ;;  %p14_p3 = scmp.ge.s32.totalorder %s3513_s21, 4   ;;  %s5832_s15 = smov %s3448_s16 }
 0xa71   : > { %s5833_s16 = smov %s3452_s17  ;;  %s5834_s17 = smov %s3524_s24 }
 0xa72   : > { %s5835_s18 = smov %s3513_s21  ;;  %16 = sbr.rel (!%p14_p3) target bundleno = 3 (0x3), region = 71 }
 0xa79   :  { %2927 = vsyncpa [#allocation3], 1 }
 0xa7a   :  { %2929 = vsyncpa [#allocation3 + $0x1], 1 }

</bundles_post_ra>
